<compile_context>
chip_gen: v6e
topology: v6e:2x2x1
jax: 0.10.0
libtpu: 0.0.40
codegen_flags: <defaults>
</compile_context>

<pallas_src>
import functools

import jax
import jax.numpy as jnp
from jax.experimental import pallas as pl
from jax.experimental.pallas import tpu as pltpu


def _conv3x3_s2_kernel(x_ref, h_ref, wm_ref, wt_ref, o_ref):
    # x_ref : (TH*Wo, 6C) bf16   packed input rows for this tile's TH output rows
    # h_ref : (1, Wo, 3C) bf16   halo row (s2d row index row0+TH), kh=2 channels only
    # wm_ref: (6C, O)     bf16   weights for kh in {0,1}, kw in {0,1,2} (block-diag groups)
    # wt_ref: (3C, O)     bf16   weights for kh = 2
    # o_ref : (TH*Wo, O)  f32    output rows [row0, row0+TH) x all columns
    m = x_ref.shape[0]
    k3 = wt_ref.shape[0]
    wo = h_ref.shape[1]

    # (1) six taps (kh in {0,1}) in one K=6C matmul; init-writes the output block.
    o_ref[...] = jnp.dot(x_ref[...], wm_ref[...], preferred_element_type=jnp.float32)

    # (2) kh = 2 taps for output rows [0, TH-1): one K=3C matmul over the whole block;
    #     result row r contributes to output row r - Wo, so the first Wo rows (which
    #     belong to the previous tile) are simply dropped.  ~1/TH extra MACs, but no
    #     unaligned bf16 sublane slice or shifted copy.
    if m > wo:
        res = jnp.dot(x_ref[:, :k3], wt_ref[...], preferred_element_type=jnp.float32)
        o_ref[: m - wo] += res[wo:]

    # (3) kh = 2 taps for the tile's last output row come from the one-row halo operand.
    o_ref[m - wo:] += jnp.dot(h_ref[0], wt_ref[...], preferred_element_type=jnp.float32)


def pack_weights(w_oihw, groups=2):
    """Pack torch-layout (O, C//g, 3, 3) grouped-conv weights into the two bf16
    block-diagonal matmul operands used by the kernel.  Cache the result across calls
    in a real network (hoisted out of the per-forward path)."""
    O, cg_in, kh, kw = w_oihw.shape
    assert kh == 3 and kw == 3 and O % groups == 0
    C = cg_in * groups
    cg_out = O // groups
    wg = jnp.transpose(w_oihw.reshape(groups, cg_out, cg_in, 3, 3),
                       (3, 4, 0, 2, 1)).astype(jnp.bfloat16)        # (3, 3, g, ci, co)
    w_bd = jnp.zeros((3, 3, groups, cg_in, groups, cg_out), jnp.bfloat16)
    for g in range(groups):
        w_bd = w_bd.at[:, :, g, :, g, :].set(wg[:, :, g])
    w_bd = w_bd.reshape(3, 3, C, O)          # block-diagonal (kh, kw, C, O)
    w_main = w_bd[:2].reshape(6 * C, O)      # rows ordered (kh in {0,1}, kw, ci)
    w_kh2 = w_bd[2].reshape(3 * C, O)        # rows ordered (kw, ci), kh = 2
    return w_main, w_kh2


def _pick_tile_h(ho, wo, cap):
    # largest divisor of Ho <= cap, preferring (TH*Wo) % 16 == 0 (clean bf16 sublane tiles)
    fallback = 1
    for d in range(min(cap, ho), 0, -1):
        if ho % d:
            continue
        if (d * wo) % 16 == 0:
            return d
        if fallback == 1:
            fallback = d
    return fallback


@functools.partial(jax.jit, static_argnames=("tile_h",))
def conv2d_g2_3x3_s2(x_nchw, w_main, w_kh2, *, tile_h=14):
    """Equivalent of Conv2d(C, O, 3, stride=2, padding=1, groups=2, bias=False)."""
    N, C, H, W = x_nchw.shape
    O = w_main.shape[-1]
    assert N == 1
    assert w_main.shape[0] == 6 * C and w_kh2.shape[0] == 3 * C
    Ho = (H - 1) // 2 + 1
    Wo = (W - 1) // 2 + 1
    Hq = Ho + 1                      # one extra s2d row feeds the kh=2 halo of the last tile
    assert Wo % 8 == 0, "kernel assumes the output width is a multiple of 8"

    TH = _pick_tile_h(Ho, Wo, tile_h)
    M = TH * Wo

    # ---- layout glue (bf16; pad + strided slices + transpose fuse under jit) ----
    xb = x_nchw[0].astype(jnp.bfloat16)                              # (C, H, W)
    Hp, Wp = 2 * Hq, 2 * Wo + 1
    xb = jnp.pad(xb, ((0, 0), (1, Hp - H - 1), (1, Wp - W - 1)))     # (C, Hp, Wp)
    # x6[a, b, (p*3 + j)*C + c] == x_padded[2a + p, 2b + j, c]
    planes = [xb[:, p:p + 2 * Hq:2, j:j + 2 * Wo:2]                  # (C, Hq, Wo) each
              for p in (0, 1) for j in (0, 1, 2)]
    x6 = jnp.transpose(jnp.stack(planes, 0), (2, 3, 0, 1))           # (Hq, Wo, 6, C)
    x6 = x6.reshape(Hq, Wo, 6 * C)
    x6_flat = x6.reshape(Hq * Wo, 6 * C)                             # bitcast view of x6

    out = pl.pallas_call(
        _conv3x3_s2_kernel,
        out_shape=jax.ShapeDtypeStruct((Ho * Wo, O), jnp.float32),
        grid=(Ho // TH,),
        in_specs=[
            # main tile: TH output rows worth of packed input, all 6C channels
            pl.BlockSpec((M, 6 * C), lambda i: (i, 0)),
            # one-row halo for the kh=2 taps of the tile's last output row; only the
            # kh-parity-0 half of the channels is ever used, so DMA just 3C of them
            pl.BlockSpec((1, Wo, 3 * C), lambda i: ((i + 1) * TH, 0, 0)),
            # weights: index-invariant -> stay resident across grid steps
            # (pipeline_mode=pl.Buffered(1) would also drop their second buffer)
            pl.BlockSpec((6 * C, O), lambda i: (0, 0)),
            pl.BlockSpec((3 * C, O), lambda i: (0, 0)),
        ],
        out_specs=pl.BlockSpec((M, O), lambda i: (i, 0)),
        compiler_params=pltpu.CompilerParams(dimension_semantics=("parallel",)),
    )(x6_flat, x6, w_main, w_kh2)

    # (Ho*Wo, O) channels-last -> NCHW (1, O, Ho, Wo)
    out = jnp.transpose(out.reshape(Ho, Wo, O), (2, 0, 1))[None]
    return out.astype(x_nchw.dtype)


if __name__ == "__main__":
    key = jax.random.PRNGKey(0)
    kx, kw_key = jax.random.split(key)

    # Channel counts (256 in / 256 out, groups=2) are fixed by the module; spatial size
    # kept small (48x48 instead of the real 112x112) for a quick run.  At the real shape:
    # Ho = 56, TH = 14 -> 4 grid steps, M = 784 rows per (784,1536)x(1536,256) main matmul.
    N, C, H, W = 1, 256, 48, 48
    groups = 2

    x = jax.random.normal(kx, (N, C, H, W), dtype=jnp.float32)

    # Conv2d(256, 256, 3, stride=2, padding=1, groups=2, bias=False) default-style init
    fan_in = (C // groups) * 3 * 3
    bound = 1.0 / (fan_in ** 0.5)
    w = jax.random.uniform(kw_key, (C, C // groups, 3, 3), dtype=jnp.float32,
                           minval=-bound, maxval=bound)

    # Weight packing hoisted out of the per-call path (cache these in a real network).
    w_main, w_kh2 = pack_weights(w, groups)

    y = conv2d_g2_3x3_s2(x, w_main, w_kh2)
    y = jax.block_until_ready(y)

    # Reference on the same bf16-rounded inputs (kernel multiplies in bf16, accumulates f32).
    xb = x.astype(jnp.bfloat16).astype(jnp.float32)
    wb = w.astype(jnp.bfloat16).astype(jnp.float32)
    y_ref = jax.lax.conv_general_dilated(
        xb, wb, window_strides=(2, 2), padding=((1, 1), (1, 1)),
        dimension_numbers=("NCHW", "OIHW", "NCHW"),
        feature_group_count=groups, precision=jax.lax.Precision.HIGHEST)

    assert y.shape == (N, C, H // 2, W // 2), y.shape
    if not jnp.allclose(y, y_ref, atol=5e-3, rtol=5e-3):
        err = float(jnp.max(jnp.abs(y - y_ref)))
        raise AssertionError(f"Pallas grouped conv mismatch vs reference, max abs err {err}")

    print("KERNEL_OK")
</pallas_src>

<mosaic_0001>
module attributes {stable_mosaic.version = 11 : i64} {
  func.func @_conv3x3_s2_kernel(%arg0: i32, %arg1: memref<288x1536xbf16, #tpu.memory_space<vmem>>, %arg2: memref<1x24x768xbf16, #tpu.memory_space<vmem>>, %arg3: memref<1536x256xbf16, #tpu.memory_space<vmem>>, %arg4: memref<768x256xbf16, #tpu.memory_space<vmem>>, %arg5: memref<288x256xf32, #tpu.memory_space<vmem>>) attributes {dimension_semantics = [#tpu.dimension_semantics<parallel>], iteration_bounds = array<i64: 2>, scalar_prefetch = 0 : i64, scratch_operands = 0 : i64, tpu.core_type = #tpu.core_type<tc>, window_params = [{transform_indices = @transform_0, window_bounds = array<i64: 288, 1536>}, {transform_indices = @transform_1, window_bounds = array<i64: 1, 24, 768>}, {pipeline_mode = #tpu.pipeline_mode<synchronous>, transform_indices = @transform_2, window_bounds = array<i64: 1536, 256>}, {pipeline_mode = #tpu.pipeline_mode<synchronous>, transform_indices = @transform_3, window_bounds = array<i64: 768, 256>}, {transform_indices = @transform_4, window_bounds = array<i64: 288, 256>}]} {
    %c0 = arith.constant 0 : index
    %c0_0 = arith.constant 0 : index
    %0 = vector.load %arg1[%c0, %c0_0] : memref<288x1536xbf16, #tpu.memory_space<vmem>>, vector<288x1536xbf16>
    %c0_1 = arith.constant 0 : index
    %c0_2 = arith.constant 0 : index
    %1 = vector.load %arg3[%c0_1, %c0_2] : memref<1536x256xbf16, #tpu.memory_space<vmem>>, vector<1536x256xbf16>
    %cst = arith.constant dense<0.000000e+00> : vector<288x256xf32>
    %2 = tpu.matmul %0, %1, %cst {dimension_numbers = #tpu.dot_dimension_numbers<[1], [0], [0], [1], [0, 0, 1, 1], [], []>} : vector<288x1536xbf16>, vector<1536x256xbf16>, vector<288x256xf32> -> vector<288x256xf32>
    %c0_3 = arith.constant 0 : index
    %c0_4 = arith.constant 0 : index
    %3 = vector.load %arg5[%c0_3, %c0_4] : memref<288x256xf32, #tpu.memory_space<vmem>>, vector<288x256xf32>
    tpu.vector_store %arg5[%c0_3, %c0_4], %2 {strides = array<i32>} : memref<288x256xf32, #tpu.memory_space<vmem>>, vector<288x256xf32>,
    %c0_5 = arith.constant 0 : index
    %c0_6 = arith.constant 0 : index
    %4 = vector.load %arg1[%c0_5, %c0_6] : memref<288x1536xbf16, #tpu.memory_space<vmem>>, vector<288x768xbf16>
    %c0_7 = arith.constant 0 : index
    %c0_8 = arith.constant 0 : index
    %5 = vector.load %arg4[%c0_7, %c0_8] : memref<768x256xbf16, #tpu.memory_space<vmem>>, vector<768x256xbf16>
    %cst_9 = arith.constant dense<0.000000e+00> : vector<288x256xf32>
    %6 = tpu.matmul %4, %5, %cst_9 {dimension_numbers = #tpu.dot_dimension_numbers<[1], [0], [0], [1], [0, 0, 1, 1], [], []>} : vector<288x768xbf16>, vector<768x256xbf16>, vector<288x256xf32> -> vector<288x256xf32>
    %c0_10 = arith.constant 0 : index
    %c0_11 = arith.constant 0 : index
    %7 = vector.load %arg5[%c0_10, %c0_11] : memref<288x256xf32, #tpu.memory_space<vmem>>, vector<264x256xf32>
    %8 = vector.extract_strided_slice %6 {offsets = [24, 0], sizes = [264, 256], strides = [1, 1]} : vector<288x256xf32> to vector<264x256xf32>
    %9 = arith.addf %7, %8 : vector<264x256xf32>
    %c0_12 = arith.constant 0 : index
    %c0_13 = arith.constant 0 : index
    %10 = vector.load %arg5[%c0_12, %c0_13] : memref<288x256xf32, #tpu.memory_space<vmem>>, vector<264x256xf32>
    tpu.vector_store %arg5[%c0_12, %c0_13], %9 {strides = array<i32>} : memref<288x256xf32, #tpu.memory_space<vmem>>, vector<264x256xf32>,
    %c264 = arith.constant 264 : index
    %c0_14 = arith.constant 0 : index
    %11 = vector.load %arg5[%c264, %c0_14] : memref<288x256xf32, #tpu.memory_space<vmem>>, vector<24x256xf32>
    %c0_15 = arith.constant 0 : index
    %c0_16 = arith.constant 0 : index
    %c0_17 = arith.constant 0 : index
    %12 = vector.load %arg2[%c0_15, %c0_16, %c0_17] : memref<1x24x768xbf16, #tpu.memory_space<vmem>>, vector<1x24x768xbf16>
    %13 = vector.shape_cast %12 : vector<1x24x768xbf16> to vector<24x768xbf16>
    %c0_18 = arith.constant 0 : index
    %c0_19 = arith.constant 0 : index
    %14 = vector.load %arg4[%c0_18, %c0_19] : memref<768x256xbf16, #tpu.memory_space<vmem>>, vector<768x256xbf16>
    %cst_20 = arith.constant dense<0.000000e+00> : vector<24x256xf32>
    %15 = tpu.matmul %13, %14, %cst_20 {dimension_numbers = #tpu.dot_dimension_numbers<[1], [0], [0], [1], [0, 0, 1, 1], [], []>} : vector<24x768xbf16>, vector<768x256xbf16>, vector<24x256xf32> -> vector<24x256xf32>
    %16 = arith.addf %11, %15 : vector<24x256xf32>
    %c264_21 = arith.constant 264 : index
    %c0_22 = arith.constant 0 : index
    %17 = vector.load %arg5[%c264_21, %c0_22] : memref<288x256xf32, #tpu.memory_space<vmem>>, vector<24x256xf32>
    tpu.vector_store %arg5[%c264_21, %c0_22], %16 {strides = array<i32>} : memref<288x256xf32, #tpu.memory_space<vmem>>, vector<24x256xf32>,
    return
  }
  func.func @transform_0(%arg0: i32) -> (i32, i32) {
    %c0_i32 = arith.constant 0 : i32
    %c0_i32_0 = arith.constant 0 : i32
    return %arg0, %c0_i32 : i32, i32
  }
  func.func @transform_1(%arg0: i32) -> (i32, i32, i32) {
    %c1_i32 = arith.constant 1 : i32
    %0 = arith.addi %arg0, %c1_i32 : i32
    %c12_i32 = arith.constant 12 : i32
    %1 = arith.muli %0, %c12_i32 : i32
    %c0_i32 = arith.constant 0 : i32
    %c0_i32_0 = arith.constant 0 : i32
    %c0_i32_1 = arith.constant 0 : i32
    return %1, %c0_i32, %c0_i32_0 : i32, i32, i32
  }
  func.func @transform_2(%arg0: i32) -> (i32, i32) {
    %c0_i32 = arith.constant 0 : i32
    %c0_i32_0 = arith.constant 0 : i32
    %c0_i32_1 = arith.constant 0 : i32
    return %c0_i32, %c0_i32_0 : i32, i32
  }
  func.func @transform_3(%arg0: i32) -> (i32, i32) {
    %c0_i32 = arith.constant 0 : i32
    %c0_i32_0 = arith.constant 0 : i32
    %c0_i32_1 = arith.constant 0 : i32
    return %c0_i32, %c0_i32_0 : i32, i32
  }
  func.func @transform_4(%arg0: i32) -> (i32, i32) {
    %c0_i32 = arith.constant 0 : i32
    %c0_i32_0 = arith.constant 0 : i32
    return %arg0, %c0_i32 : i32, i32
  }
}

</mosaic_0001>

<bundles_post_ra>
// kernel: conv2d_g2_3x3_s2.1
= control target key start
LH: loop header
LB: loop body
LE: loop exit
PB: predicated region body
PF: predicated region fallthrough
CT: control target
= control target key end

     0   :  { %9 = vsyncpa [#allocation4], 0  ;;  %s11537_s0 = inlined_call_operand.vmem [shape: bf16[600,1536], index: 0, kind: input, shape index: {}]   ;;  %s11538_s1 = inlined_call_operand.vmem [shape: bf16[25,24,1536], index: 1, kind: input, shape index: {}]   ;;  %s11539_s2 = inlined_call_operand.vmem [shape: bf16[1536,256], index: 2, kind: input, shape index: {}]   ;;  %s11540_s3 = inlined_call_operand.vmem [shape: bf16[768,256], index: 3, kind: input, shape index: {}]   ;;  %s11541_s4 = inlined_call_operand.hbm [shape: f32[576,256], index: 4, kind: output, shape index: {}]  }
   0x1   :  { %11 = vsyncpa [#allocation4 + $0x1], 0  ;;  %s9020_s15 = smov 0   ;;  %s9022_s16 = smov 0  }
   0x2   :  { %s9024_s17 = smov 0   ;;  %s9026_s18 = smov 0  }
   0x3   :  { %s9028_s19 = smov 0   ;;  %s9030_s20 = smov 0  }
   0x4 LB: > { %s9051_s21 = sadd.s32 4294967295, %s8990_s20   ;;  %s7035_s22 = sadd.s32 4294967294, %s8990_s20   ;;  %s8990_s20 = sphi %s9030_s20, %s11695_s20   ;;  %s8986_s19 = sphi %s9028_s19, %s11694_s19   ;;  %s8982_s18 = sphi %s9026_s18, %s11693_s18   ;;  %s8978_s17 = sphi %s9024_s17, %s11692_s17   ;;  %s8974_s16 = sphi %s9022_s16, %s11691_s16   ;;  %s8970_s15 = sphi %s9020_s15, %s11690_s15  }
   0x5   : > { %s9055_s23 = sadd.s32 1, %s8990_s20   ;;  %s54_s24 = sadd.s32 1, %s8986_s19 }
   0x6   : > { %s48_s25 = smul.u32 12, %s9055_s23  ;;  %s49_s26 = sadd.s32 1, %s9055_s23 }
   0x7   : > { %s50_s27 = smul.u32 12, %s49_s26  ;;  %p61_p0 = scmp.ne.s32.totalorder %s8986_s19, %s8982_s18 }
   0x8   : > { %p62_p1 = scmp.eq.s32.totalorder %s8990_s20, 0  ;;  %s119_s28 = ssub.s32 %s8990_s20, %s9055_s23 }
   0x9   : > { %s51_s29 = ssub.s32 %s48_s25, %s50_s27  ;;  %p120_p2 = scmp.eq.s32.totalorder %s119_s28, 0 }
   0xa   : > { %p52_p3 = scmp.eq.s32.totalorder %s51_s29, 0  ;;  %p63_p4 = por %p62_p1, %p61_p0 }
   0xb   : > { %s122_s30 = sadd.s32 1, %s8978_s17  ;;  %p132_p5 = scmp.ne.s32.totalorder %s8978_s17, %s8974_s16 }
   0xc   : > { %s9069_s5 = scalar_select %p52_p3, %s8986_s19, %s54_s24  }
   0xd   : > { %s9072_s6 = scalar_select %p120_p2, %s8978_s17, %s122_s30  }
   0xe   : > { %p133_p6 = scmp.eq.s32.totalorder %s9051_s21, 1  ;;  %p138_p7 = scmp.ne.s32.totalorder %s8974_s16, %s8970_s15 }
   0xf   : > { %p139_p8 = scmp.eq.s32.totalorder %s7035_s22, 1  ;;  %p7037_p11 = scmp.ge.s32.totalorder %s8990_s20, 2 }
  0x10   : > { %p9077_p9 = por %p133_p6, %p132_p5 }
  0x11   : > { %p9081_p10 = por %p139_p8, %p138_p7  ;;  %161 = sbr.rel (%p7037_p11) target bundleno = 32 (0x20), region = 24 }
  0x16   : > { %184 = sbr.rel (!%p63_p4) target bundleno = 32 (0x20), region = 32  ;;  %s186_s9 = sand.u32 (%p63_p4), 1, %s8986_s19  }
  0x17   : > { %s6982_s10 = smul.u32 (%p63_p4), 1728, %s8990_s20 }
  0x18   : > { %s7776_s11 = smul.u32 (%p63_p4), 72, %s186_s9 }
  0x19   : > { %s6983_s14 = scalar_lea.vmem (%p63_p4), %s11538_s1, %s6982_s10 }
  0x1a   : > { %v7038_v0 = vld [vmem:[%s6983_s14 + $0x6c0] sm:$0xff] (%p63_p4)  ;;  %v7039_v1 = vld [vmem:[%s6983_s14 + $0x6c8] sm:$0xff] (%p63_p4)  ;;  %v7040_v2 = vld [vmem:[%s6983_s14 + $0x6d0] sm:$0xff] (%p63_p4)  ;;  %s188_s22 = scalar_lea.vmem (%p63_p4), [#allocation2], %s7776_s11 }
  0x1b   : > { %207 = vst [vmem:[%s188_s22] sm:$0xff] %v7038_v0  ;;  %209 = vst [vmem:[%s188_s22 + $0x8] sm:$0xff] %v7039_v1  ;;  %v7041_v3 = vld [vmem:[%s6983_s14 + $0x6f0] sm:$0xff]  ;;  %v7042_v4 = vld [vmem:[%s6983_s14 + $0x6f8] sm:$0xff] }
  0x1c   : > { %211 = vst [vmem:[%s188_s22 + $0x10] sm:$0xff] %v7040_v2  ;;  %v7043_v5 = vld [vmem:[%s6983_s14 + $0x700] sm:$0xff]  ;;  %213 = vst [vmem:[%s188_s22 + $0x18] sm:$0xff] %v7041_v3  ;;  %v7045_v7 = vld [vmem:[%s6983_s14 + $0x728] sm:$0xff] }
  0x1d   : > { %215 = vst [vmem:[%s188_s22 + $0x20] sm:$0xff] %v7042_v4  ;;  %217 = vst [vmem:[%s188_s22 + $0x28] sm:$0xff] %v7043_v5  ;;  %v7044_v6 = vld [vmem:[%s6983_s14 + $0x720] sm:$0xff]  ;;  %v7046_v8 = vld [vmem:[%s6983_s14 + $0x730] sm:$0xff] }
  0x1e   : > { %219 = vst [vmem:[%s188_s22 + $0x30] sm:$0xff] %v7044_v6  ;;  %221 = vst [vmem:[%s188_s22 + $0x38] sm:$0xff] %v7045_v7 }
  0x1f   : > { %223 = vst [vmem:[%s188_s22 + $0x40] sm:$0xff] %v7046_v8 }
  0x20 PF: > { %p7047_p12 = scmp.ge.s32.totalorder %s8990_s20, 1  ;;  %p228_p13 = scmp.lt.s32.totalorder %s8990_s20, 3 }
  0x22   : > { %p229_p0 = pnand %p7047_p12, %p228_p13 }
  0x24   : > { %232 = sbr.rel (%p229_p0) target bundleno = 1035 (0x40b), region = 55 }
  0x29   : > { %v7837_v9 = vld [vmem:[%s11539_s2 + $0x74] ss:$8 sps:$4 sm:$0xff]   ;;  %v7841_v11 = vld [vmem:[%s11539_s2 + $0x70] ss:$8 sps:$4 sm:$0xff]   ;;  %v7843_v13 = vld [vmem:[%s11539_s2 + $0x64] ss:$8 sps:$4 sm:$0xff]  }
  0x2a   : > { %v7839_v10 = vld [vmem:[%s11539_s2 + $0x174] ss:$8 sps:$4 sm:$0xff]   ;;  %2739 = vmatprep.subr.bf16.mxu0 %v7837_v9  ;;  %v7842_v12 = vld [vmem:[%s11539_s2 + $0x170] ss:$8 sps:$4 sm:$0xff]   ;;  %v7845_v14 = vld [vmem:[%s11539_s2 + $0x164] ss:$8 sps:$4 sm:$0xff]  }
  0x2b   : > { %2952 = vmatprep.subr.bf16.mxu1 %v7839_v10  ;;  %2740 = vmatpush1.bf16.msra.mxu0 %v7841_v11  ;;  %v7847_v15 = vld [vmem:[%s11539_s2 + $0x60] ss:$8 sps:$4 sm:$0xff]   ;;  %v7849_v17 = vld [vmem:[%s11539_s2 + $0x54] ss:$8 sps:$4 sm:$0xff]   ;;  %v7853_v19 = vld [vmem:[%s11539_s2 + $0x50] ss:$8 sps:$4 sm:$0xff]  }
  0x2c   : > { %2953 = vmatpush1.bf16.msra.mxu1 %v7842_v12  ;;  %2741 = vmatprep.subr.bf16.mxu0 %v7843_v13  ;;  %v7848_v16 = vld [vmem:[%s11539_s2 + $0x160] ss:$8 sps:$4 sm:$0xff]   ;;  %v7851_v18 = vld [vmem:[%s11539_s2 + $0x154] ss:$8 sps:$4 sm:$0xff]   ;;  %v7854_v20 = vld [vmem:[%s11539_s2 + $0x150] ss:$8 sps:$4 sm:$0xff]  }
  0x2d   : > { %2954 = vmatprep.subr.bf16.mxu1 %v7845_v14  ;;  %v7855_v21 = vld [vmem:[%s11539_s2 + $0x44] ss:$8 sps:$4 sm:$0xff]   ;;  %v7859_v23 = vld [vmem:[%s11539_s2 + $0x40] ss:$8 sps:$4 sm:$0xff]   ;;  %v7861_v25 = vld [vmem:[%s11539_s2 + $0x34] ss:$8 sps:$4 sm:$0xff]  }
  0x2e   : > { %v7857_v22 = vld [vmem:[%s11539_s2 + $0x144] ss:$8 sps:$4 sm:$0xff]   ;;  %v7860_v24 = vld [vmem:[%s11539_s2 + $0x140] ss:$8 sps:$4 sm:$0xff]   ;;  %v7863_v26 = vld [vmem:[%s11539_s2 + $0x134] ss:$8 sps:$4 sm:$0xff]  }
  0x2f   : > { %2742 = vmatpush1.bf16.msra.mxu0 %v7847_v15  ;;  %v7865_v27 = vld [vmem:[%s11539_s2 + $0x30] ss:$8 sps:$4 sm:$0xff]   ;;  %v7867_v29 = vld [vmem:[%s11539_s2 + $0x24] ss:$8 sps:$4 sm:$0xff]   ;;  %v7871_v31 = vld [vmem:[%s11539_s2 + $0x20] ss:$8 sps:$4 sm:$0xff]  }
  0x30   : > { %2955 = vmatpush1.bf16.msra.mxu1 %v7848_v16  ;;  %2743 = vmatprep.subr.bf16.mxu0 %v7849_v17  ;;  %v7866_v28 = vld [vmem:[%s11539_s2 + $0x130] ss:$8 sps:$4 sm:$0xff]   ;;  %v7869_v30 = vld [vmem:[%s11539_s2 + $0x124] ss:$8 sps:$4 sm:$0xff]   ;;  %v7872_v32 = vld [vmem:[%s11539_s2 + $0x120] ss:$8 sps:$4 sm:$0xff]  }
  0x31   : > { %2956 = vmatprep.subr.bf16.mxu1 %v7851_v18  ;;  %v7873_v33 = vld [vmem:[%s11539_s2 + $0x14] ss:$8 sps:$4 sm:$0xff]   ;;  %v7877_v35 = vld [vmem:[%s11539_s2 + $0x10] ss:$8 sps:$4 sm:$0xff]   ;;  %v7879_v37 = vld [vmem:[%s11539_s2 + $0x4] ss:$8 sps:$4 sm:$0xff]  }
  0x32   : > { %v7875_v34 = vld [vmem:[%s11539_s2 + $0x114] ss:$8 sps:$4 sm:$0xff]   ;;  %v7878_v36 = vld [vmem:[%s11539_s2 + $0x110] ss:$8 sps:$4 sm:$0xff]   ;;  %s271_s26 = smul.u32 36, %s9051_s21 }
  0x33   : > { %2744 = vmatpush1.bf16.msra.mxu0 %v7853_v19  ;;  %v7881_v38 = vld [vmem:[%s11539_s2 + $0x104] ss:$8 sps:$4 sm:$0xff]   ;;  %v7883_v39 = vld [vmem:[%s11539_s2] ss:$8 sps:$4 sm:$0xff]   ;;  %v7885_v41 = vld [vmem:[%s11539_s2 + $0xf4] ss:$8 sps:$4 sm:$0xff]  }
  0x34   : > { %2957 = vmatpush1.bf16.msra.mxu1 %v7854_v20  ;;  %2745 = vmatprep.subr.bf16.mxu0 %v7855_v21  ;;  %v7884_v40 = vld [vmem:[%s11539_s2 + $0x100] ss:$8 sps:$4 sm:$0xff]   ;;  %p277_p1 = scmp.lt.s32.totalorder %s271_s26, 74  ;;  %v7887_v42 = vld [vmem:[%s11539_s2 + $0x1f4] ss:$8 sps:$4 sm:$0xff]  }
  0x35   : > { %2958 = vmatprep.subr.bf16.mxu1 %v7857_v22  ;;  %v7889_v43 = vld [vmem:[%s11539_s2 + $0xf0] ss:$8 sps:$4 sm:$0xff]   ;;  %v7891_v45 = vld [vmem:[%s11539_s2 + $0xe4] ss:$8 sps:$4 sm:$0xff]   ;;  %v7895_v47 = vld [vmem:[%s11539_s2 + $0xe0] ss:$8 sps:$4 sm:$0xff]  }
  0x36   : > { %v7890_v44 = vld [vmem:[%s11539_s2 + $0x1f0] ss:$8 sps:$4 sm:$0xff]   ;;  %s11697_s26 = smov (!%p277_p1, %s271_s26), 74  ;;  %v7893_v46 = vld [vmem:[%s11539_s2 + $0x1e4] ss:$8 sps:$4 sm:$0xff]  }
  0x37   : > { %2746 = vmatpush1.bf16.msra.mxu0 %v7859_v23  ;;  %v7896_v48 = vld [vmem:[%s11539_s2 + $0x1e0] ss:$8 sps:$4 sm:$0xff]   ;;  %v7897_v49 = vld [vmem:[%s11539_s2 + $0xd4] ss:$8 sps:$4 sm:$0xff]   ;;  %s7779_s24 = smul.u32 48, %s11697_s26 }
  0x38   : > { %2959 = vmatpush1.bf16.msra.mxu1 %v7860_v24  ;;  %2747 = vmatprep.subr.bf16.mxu0 %v7861_v25  ;;  %v7899_v50 = vld [vmem:[%s11539_s2 + $0x1d4] ss:$8 sps:$4 sm:$0xff]   ;;  %v7901_v51 = vld [vmem:[%s11539_s2 + $0xd0] ss:$8 sps:$4 sm:$0xff]   ;;  %v7903_v53 = vld [vmem:[%s11539_s2 + $0xc4] ss:$8 sps:$4 sm:$0xff]  }
  0x39   : > { %2960 = vmatprep.subr.bf16.mxu1 %v7863_v26  ;;  %v7902_v52 = vld [vmem:[%s11539_s2 + $0x1d0] ss:$8 sps:$4 sm:$0xff]   ;;  %s9234_s13 = scalar_lea.vmem %s11537_s0, %s7779_s24  ;;  %v7905_v54 = vld [vmem:[%s11539_s2 + $0x1c4] ss:$8 sps:$4 sm:$0xff]   ;;  %v7907_v55 = vld [vmem:[%s11539_s2 + $0xc0] ss:$8 sps:$4 sm:$0xff]  }
  0x3a   : > { %v7908_v56 = vld [vmem:[%s11539_s2 + $0x1c0] ss:$8 sps:$4 sm:$0xff]   ;;  %v7909_v57 = vld [vmem:[%s11539_s2 + $0xb4] ss:$8 sps:$4 sm:$0xff]   ;;  %v7913_v61 = vld [vmem:[%s11539_s2 + $0xb0] ss:$8 sps:$4 sm:$0xff]  }
  0x3b   : > { %2748 = vmatpush1.bf16.msra.mxu0 %v7865_v27  ;;  %v7935_v58 = vld [vmem:[%s9234_s13 + $0x4] ss:$48 sps:$4 sm:$0xff]   ;;  %v7938_v60 = vld [vmem:[%s9234_s13 + $0xc] ss:$48 sps:$4 sm:$0xff]   ;;  %v7914_v62 = vld [vmem:[%s11539_s2 + $0x1b0] ss:$8 sps:$4 sm:$0xff]  }
  0x3c   : > { %2961 = vmatpush1.bf16.msra.mxu1 %v7866_v28  ;;  %2749 = vmatprep.subr.bf16.mxu0 %v7867_v29  ;;  %v7911_v59 = vld [vmem:[%s11539_s2 + $0x1b4] ss:$8 sps:$4 sm:$0xff]   ;;  %v7915_v63 = vld [vmem:[%s11539_s2 + $0xa4] ss:$8 sps:$4 sm:$0xff]   ;;  %v7919_v1 = vld [vmem:[%s11539_s2 + $0xa0] ss:$8 sps:$4 sm:$0xff]  }
  0x3d   : > { %2962 = vmatprep.subr.bf16.mxu1 %v7869_v30  ;;  %2771 = vmatprep.mubr.bf16.mxu0 %v7935_v58  ;;  %v7917_v0 = vld [vmem:[%s11539_s2 + $0x1a4] ss:$8 sps:$4 sm:$0xff]   ;;  %v7920_v2 = vld [vmem:[%s11539_s2 + $0x1a0] ss:$8 sps:$4 sm:$0xff]   ;;  %v7921_v3 = vld [vmem:[%s11539_s2 + $0x94] ss:$8 sps:$4 sm:$0xff]  }
  0x3e   : > { %2984 = vmatprep.mubr.bf16.mxu1 %v7938_v60  ;;  %v7923_v4 = vld [vmem:[%s11539_s2 + $0x194] ss:$8 sps:$4 sm:$0xff]   ;;  %v7925_v5 = vld [vmem:[%s11539_s2 + $0x90] ss:$8 sps:$4 sm:$0xff]   ;;  %v7927_v7 = vld [vmem:[%s11539_s2 + $0x84] ss:$8 sps:$4 sm:$0xff]  }
  0x3f   : > { %2750 = vmatpush1.bf16.msra.mxu0 %v7871_v31  ;;  %v7926_v6 = vld [vmem:[%s11539_s2 + $0x190] ss:$8 sps:$4 sm:$0xff]   ;;  %v7929_v8 = vld [vmem:[%s11539_s2 + $0x184] ss:$8 sps:$4 sm:$0xff]   ;;  %v7931_v9 = vld [vmem:[%s11539_s2 + $0x80] ss:$8 sps:$4 sm:$0xff]  }
  0x40   : > { %2963 = vmatpush1.bf16.msra.mxu1 %v7872_v32  ;;  %2751 = vmatprep.subr.bf16.mxu0 %v7873_v33  ;;  %v7932_v10 = vld [vmem:[%s11539_s2 + $0x180] ss:$8 sps:$4 sm:$0xff]   ;;  %v7941_v11 = vld [vmem:[%s11539_s2 + $0x274] ss:$8 sps:$4 sm:$0xff]   ;;  %v7939_v15 = vld [vmem:[%s11539_s2 + $0x270] ss:$8 sps:$4 sm:$0xff]  }
  0x41   : > { %2964 = vmatprep.subr.bf16.mxu1 %v7875_v34  ;;  %v7944_v12 = vld [vmem:[%s11539_s2 + $0x374] ss:$8 sps:$4 sm:$0xff]   ;;  %v7933_v13 = vld [vmem:[%s9234_s13] ss:$48 sps:$4 sm:$0xff]   ;;  %v7936_v14 = vld [vmem:[%s9234_s13 + $0x8] ss:$48 sps:$4 sm:$0xff]  }
  0x42   : > { %v7942_v16 = vld [vmem:[%s11539_s2 + $0x370] ss:$8 sps:$4 sm:$0xff]   ;;  %v7945_v17 = vld [vmem:[%s9234_s13 + $0x64] ss:$48 sps:$4 sm:$0xff]   ;;  %v7947_v18 = vld [vmem:[%s9234_s13 + $0x6c] ss:$48 sps:$4 sm:$0xff]  }
  0x43   : > { %2752 = vmatpush1.bf16.msra.mxu0 %v7877_v35  ;;  %v7953_v19 = vld [vmem:[%s11539_s2 + $0x264] ss:$8 sps:$4 sm:$0xff]   ;;  %v7951_v21 = vld [vmem:[%s11539_s2 + $0x260] ss:$8 sps:$4 sm:$0xff]   ;;  %v7965_v23 = vld [vmem:[%s11539_s2 + $0x254] ss:$8 sps:$4 sm:$0xff]  }
  0x44   : > { %2965 = vmatpush1.bf16.msra.mxu1 %v7878_v36  ;;  %2753 = vmatprep.subr.bf16.mxu0 %v7879_v37  ;;  %v7956_v20 = vld [vmem:[%s11539_s2 + $0x364] ss:$8 sps:$4 sm:$0xff]   ;;  %v7954_v22 = vld [vmem:[%s11539_s2 + $0x360] ss:$8 sps:$4 sm:$0xff]   ;;  %v7972_v25 = vld [vmem:[%s11539_s2 + $0x354] ss:$8 sps:$4 sm:$0xff]  }
  0x45   : > { %2966 = vmatprep.subr.bf16.mxu1 %v7881_v38  ;;  %v7949_v24 = vld [vmem:[%s9234_s13 + $0x60] ss:$48 sps:$4 sm:$0xff]   ;;  %v7950_v26 = vld [vmem:[%s9234_s13 + $0x68] ss:$48 sps:$4 sm:$0xff]   ;;  %v7957_v27 = vld [vmem:[%s9234_s13 + $0xc4] ss:$48 sps:$4 sm:$0xff]  }
  0x46   : > { %v7959_v28 = vld [vmem:[%s9234_s13 + $0xcc] ss:$48 sps:$4 sm:$0xff]   ;;  %v7963_v29 = vld [vmem:[%s11539_s2 + $0x250] ss:$8 sps:$4 sm:$0xff]   ;;  %v7975_v33 = vld [vmem:[%s11539_s2 + $0x240] ss:$8 sps:$4 sm:$0xff]  }
  0x47   : > { %2754 = vmatpush1.bf16.msra.mxu0 %v7883_v39  ;;  %v7970_v30 = vld [vmem:[%s11539_s2 + $0x350] ss:$8 sps:$4 sm:$0xff]   ;;  %v7977_v31 = vld [vmem:[%s11539_s2 + $0x244] ss:$8 sps:$4 sm:$0xff]   ;;  %v7984_v36 = vld [vmem:[%s11539_s2 + $0x340] ss:$8 sps:$4 sm:$0xff]  }
  0x48   : > { %2967 = vmatpush1.bf16.msra.mxu1 %v7884_v40  ;;  %2755 = vmatprep.subr.bf16.mxu0 %v7885_v41  ;;  %v7986_v32 = vld [vmem:[%s11539_s2 + $0x344] ss:$8 sps:$4 sm:$0xff]   ;;  %v7961_v34 = vld [vmem:[%s9234_s13 + $0xc0] ss:$48 sps:$4 sm:$0xff]   ;;  %v7962_v35 = vld [vmem:[%s9234_s13 + $0xc8] ss:$48 sps:$4 sm:$0xff]  }
  0x49   : > { %2968 = vmatprep.subr.bf16.mxu1 %v7887_v42  ;;  %v7989_v37 = vld [vmem:[%s11539_s2 + $0x234] ss:$8 sps:$4 sm:$0xff]   ;;  %v7987_v41 = vld [vmem:[%s11539_s2 + $0x230] ss:$8 sps:$4 sm:$0xff]   ;;  %v8032_v58 = vld [vmem:[%s11539_s2 + $0x300] ss:$8 sps:$4 sm:$0xff]  }
  0x4a   : > { %v7998_v38 = vld [vmem:[%s11539_s2 + $0x334] ss:$8 sps:$4 sm:$0xff]   ;;  %v7996_v42 = vld [vmem:[%s11539_s2 + $0x330] ss:$8 sps:$4 sm:$0xff]   ;;  %s235_s24 = sand.u32 1, %s8982_s18   ;;  %s8992_s18 = smov [#allocation3]  }
  0x4b   : > { %2756 = vmatpush2.bf16.msra.mxu0 %v7889_v43  ;;  %v7966_v39 = vld [vmem:[%s9234_s13 + $0x124] ss:$48 sps:$4 sm:$0xff]   ;;  %v7968_v40 = vld [vmem:[%s9234_s13 + $0x12c] ss:$48 sps:$4 sm:$0xff]   ;;  %s7777_s14 = smul.u32 72, %s235_s24  ;;  %s8918_s22 = sshll.u32 %s8992_s18, 4  ;;  %s8919_s22 = int_to_ptr.vmem [resolvable:$false] %s8918_s22 }
  0x4c   : > { %2969 = vmatpush2.bf16.msra.mxu1 %v7890_v44  ;;  %2757 = vmatprep.subr.bf16.mxu0 %v7891_v45  ;;  %v8001_v43 = vld [vmem:[%s11539_s2 + $0x224] ss:$8 sps:$4 sm:$0xff]   ;;  %v7973_v45 = vld [vmem:[%s9234_s13 + $0x120] ss:$48 sps:$4 sm:$0xff]   ;;  %v8043_v60 = vld [vmem:[%s11539_s2 + $0x2f4] ss:$8 sps:$4 sm:$0xff]  }
  0x4d   : > { %2970 = vmatprep.subr.bf16.mxu1 %v7893_v46  ;;  %v8010_v44 = vld [vmem:[%s11539_s2 + $0x324] ss:$8 sps:$4 sm:$0xff]   ;;  %v7974_v46 = vld [vmem:[%s9234_s13 + $0x128] ss:$48 sps:$4 sm:$0xff]   ;;  %s10461_s28 = scalar_lea.vmem [#allocation2], %s7777_s14  ;;  %s268_s14 = sand.u32 1, %s8974_s16  }
  0x4e   : > { %s10626_s29 = smul.u32 576, %s268_s14  ;;  %s11490_s11 = scalar_lea.sflag [#allocation4], %s268_s14 }
  0x4f   : > { %2758 = vmatpush2.bf16.msra.mxu0 %v7895_v47  ;;  %v7999_v47 = vld [vmem:[%s11539_s2 + $0x220] ss:$8 sps:$4 sm:$0xff]  }
  0x50   : > { %2971 = vmatpush2.bf16.msra.mxu1 %v7896_v48  ;;  %2759 = vmatprep.subr.bf16.mxu0 %v7897_v49  ;;  %v8008_v48 = vld [vmem:[%s11539_s2 + $0x320] ss:$8 sps:$4 sm:$0xff]   ;;  %v8013_v49 = vld [vmem:[%s11539_s2 + $0x214] ss:$8 sps:$4 sm:$0xff]   ;;  %s10662_s26 = scalar_lea.vmem [#allocation3], %s10626_s29  ;;  %s8920_s29 = scalar_lea.vmem %s8919_s22, 18432 }
  0x51   : > { %2972 = vmatprep.subr.bf16.mxu1 %v7899_v50  ;;  %v8022_v50 = vld [vmem:[%s11539_s2 + $0x314] ss:$8 sps:$4 sm:$0xff]  }
  0x53   : > { %2760 = vmatpush2.bf16.msra.mxu0 %v7901_v51  ;;  %v7978_v51 = vld [vmem:[%s9234_s13 + $0x184] ss:$48 sps:$4 sm:$0xff]  }
  0x54   : > { %2973 = vmatpush2.bf16.msra.mxu1 %v7902_v52  ;;  %2761 = vmatprep.subr.bf16.mxu0 %v7903_v53  ;;  %v7980_v52 = vld [vmem:[%s9234_s13 + $0x18c] ss:$48 sps:$4 sm:$0xff]   ;;  %v8011_v53 = vld [vmem:[%s11539_s2 + $0x210] ss:$8 sps:$4 sm:$0xff]  }
  0x55   : > { %2974 = vmatprep.subr.bf16.mxu1 %v7905_v54  ;;  %v8020_v54 = vld [vmem:[%s11539_s2 + $0x310] ss:$8 sps:$4 sm:$0xff]  }
  0x57   : > { %2762 = vmatpush2.bf16.msra.mxu0 %v7907_v55  ;;  %v8029_v55 = vld [vmem:[%s11539_s2 + $0x204] ss:$8 sps:$4 sm:$0xff]  }
  0x58   : > { %2975 = vmatpush2.bf16.msra.mxu1 %v7908_v56  ;;  %2763 = vmatprep.subr.bf16.mxu0 %v7909_v57  ;;  %v8034_v56 = vld [vmem:[%s11539_s2 + $0x304] ss:$8 sps:$4 sm:$0xff]   ;;  %v8027_v57 = vld [vmem:[%s11539_s2 + $0x200] ss:$8 sps:$4 sm:$0xff]  }
  0x59   : > { %2976 = vmatprep.subr.bf16.mxu1 %v7911_v59  ;;  %v7982_v59 = vld [vmem:[%s9234_s13 + $0x180] ss:$48 sps:$4 sm:$0xff]  }
  0x5b   : > { %2764 = vmatpush2.bf16.msra.mxu0 %v7913_v61  ;;  %v8046_v61 = vld [vmem:[%s11539_s2 + $0x3f4] ss:$8 sps:$4 sm:$0xff]  }
  0x5c   : > { %2977 = vmatpush2.bf16.msra.mxu1 %v7914_v62  ;;  %2765 = vmatprep.subr.bf16.mxu0 %v7915_v63  ;;  %v7983_v62 = vld [vmem:[%s9234_s13 + $0x188] ss:$48 sps:$4 sm:$0xff]   ;;  %v7990_v63 = vld [vmem:[%s9234_s13 + $0x1e4] ss:$48 sps:$4 sm:$0xff]  }
  0x5d   : > { %2978 = vmatprep.subr.bf16.mxu1 %v7917_v0  ;;  %v7992_v0 = vld [vmem:[%s9234_s13 + $0x1ec] ss:$48 sps:$4 sm:$0xff]  }
  0x5f   : > { %2766 = vmatpush2.bf16.msra.mxu0 %v7919_v1  ;;  %v8041_v1 = vld [vmem:[%s11539_s2 + $0x2f0] ss:$8 sps:$4 sm:$0xff]  }
  0x60   : > { %2979 = vmatpush2.bf16.msra.mxu1 %v7920_v2  ;;  %2767 = vmatprep.subr.bf16.mxu0 %v7921_v3  ;;  %v8044_v2 = vld [vmem:[%s11539_s2 + $0x3f0] ss:$8 sps:$4 sm:$0xff]   ;;  %v8055_v3 = vld [vmem:[%s11539_s2 + $0x2e4] ss:$8 sps:$4 sm:$0xff]  }
  0x61   : > { %2980 = vmatprep.subr.bf16.mxu1 %v7923_v4  ;;  %v8058_v4 = vld [vmem:[%s11539_s2 + $0x3e4] ss:$8 sps:$4 sm:$0xff]  }
  0x63   : > { %2768 = vmatpush2.bf16.msra.mxu0 %v7925_v5  ;;  %v8053_v5 = vld [vmem:[%s11539_s2 + $0x2e0] ss:$8 sps:$4 sm:$0xff]  }
  0x64   : > { %2981 = vmatpush2.bf16.msra.mxu1 %v7926_v6  ;;  %2769 = vmatprep.subr.bf16.mxu0 %v7927_v7  ;;  %v7994_v6 = vld [vmem:[%s9234_s13 + $0x1e0] ss:$48 sps:$4 sm:$0xff]  }
  0x65   : > { %2982 = vmatprep.subr.bf16.mxu1 %v7929_v8  ;;  %v8056_v7 = vld [vmem:[%s11539_s2 + $0x3e0] ss:$8 sps:$4 sm:$0xff]  }
  0x66   : > { %v7995_v8 = vld [vmem:[%s9234_s13 + $0x1e8] ss:$48 sps:$4 sm:$0xff]  }
  0x67   : > { %2770 = vmatpush2.bf16.msra.mxu0 %v7931_v9  ;;  %v8067_v9 = vld [vmem:[%s11539_s2 + $0x2d4] ss:$8 sps:$4 sm:$0xff]  }
  0x68   : > { %2983 = vmatpush2.bf16.msra.mxu1 %v7932_v10  ;;  %3165 = vmatprep.subr.bf16.mxu0 %v7941_v11  ;;  %v8002_v10 = vld [vmem:[%s9234_s13 + $0x244] ss:$48 sps:$4 sm:$0xff]   ;;  %v8004_v11 = vld [vmem:[%s9234_s13 + $0x24c] ss:$48 sps:$4 sm:$0xff]  }
  0x69   : > { %3378 = vmatprep.subr.bf16.mxu1 %v7944_v12  ;;  %v8065_v12 = vld [vmem:[%s11539_s2 + $0x2d0] ss:$8 sps:$4 sm:$0xff]  }
  0x6a   : > { %2772 = vmatmul.mubr.bf16.vlgmr.msra.gmra.mxu0 %v7933_v13  ;;  %v8074_v13 = vld [vmem:[%s11539_s2 + $0x3d4] ss:$8 sps:$4 sm:$0xff]  }
  0x6b   : > { %2985 = vmatmul.mubr.bf16.vlgmr.msra.gmra.mxu1 %v7936_v14  ;;  %3166 = vmatpush1.bf16.msra.mxu0 %v7939_v15  ;;  %v8072_v14 = vld [vmem:[%s11539_s2 + $0x3d0] ss:$8 sps:$4 sm:$0xff]   ;;  %v8079_v15 = vld [vmem:[%s11539_s2 + $0x2c4] ss:$8 sps:$4 sm:$0xff]  }
  0x6c   : > { %3379 = vmatpush1.bf16.msra.mxu1 %v7942_v16  ;;  %2781 = vmatprep.mubr.bf16.mxu0 %v7945_v17  ;;  %v8006_v16 = vld [vmem:[%s9234_s13 + $0x240] ss:$48 sps:$4 sm:$0xff]  }
  0x6d   : > { %2994 = vmatprep.mubr.bf16.mxu1 %v7947_v18  ;;  %3167 = vmatprep.subr.bf16.mxu0 %v7953_v19  ;;  %v8077_v17 = vld [vmem:[%s11539_s2 + $0x2c0] ss:$8 sps:$4 sm:$0xff]   ;;  %v8014_v19 = vld [vmem:[%s9234_s13 + $0x2a4] ss:$48 sps:$4 sm:$0xff]  }
  0x6e   : > { %3380 = vmatprep.subr.bf16.mxu1 %v7956_v20  ;;  %v8007_v18 = vld [vmem:[%s9234_s13 + $0x248] ss:$48 sps:$4 sm:$0xff]  }
  0x6f   : > { %3168 = vmatpush1.bf16.msra.mxu0 %v7951_v21  ;;  %v8086_v20 = vld [vmem:[%s11539_s2 + $0x3c0] ss:$8 sps:$4 sm:$0xff]   ;;  %v8088_v21 = vld [vmem:[%s11539_s2 + $0x3c4] ss:$8 sps:$4 sm:$0xff]  }
  0x70   : > { %3381 = vmatpush1.bf16.msra.mxu1 %v7954_v22  ;;  %3169 = vmatprep.subr.bf16.mxu0 %v7965_v23  ;;  %v8016_v22 = vld [vmem:[%s9234_s13 + $0x2ac] ss:$48 sps:$4 sm:$0xff]  }
  0x71   : > { %3382 = vmatprep.subr.bf16.mxu1 %v7972_v25  ;;  %v8091_v23 = vld [vmem:[%s11539_s2 + $0x2b4] ss:$8 sps:$4 sm:$0xff]   ;;  %v8098_v25 = vld [vmem:[%s11539_s2 + $0x3b0] ss:$8 sps:$4 sm:$0xff]  }
  0x72   : > { %2782 = vmatmul.mubr.bf16.gmra.mxu0 %v7949_v24  ;;  %v8089_v24 = vld [vmem:[%s11539_s2 + $0x2b0] ss:$8 sps:$4 sm:$0xff]  }
  0x73   : > { %2995 = vmatmul.mubr.bf16.gmra.mxu1 %v7950_v26  ;;  %2791 = vmatprep.mubr.bf16.mxu0 %v7957_v27  ;;  %v8018_v26 = vld [vmem:[%s9234_s13 + $0x2a0] ss:$48 sps:$4 sm:$0xff]   ;;  %v8100_v27 = vld [vmem:[%s11539_s2 + $0x3b4] ss:$8 sps:$4 sm:$0xff]  }
  0x74   : > { %3004 = vmatprep.mubr.bf16.mxu1 %v7959_v28  ;;  %3170 = vmatpush1.bf16.msra.mxu0 %v7963_v29  ;;  %v8101_v28 = vld [vmem:[%s11539_s2 + $0x2a0] ss:$8 sps:$4 sm:$0xff]   ;;  %v8103_v29 = vld [vmem:[%s11539_s2 + $0x2a4] ss:$8 sps:$4 sm:$0xff]  }
  0x75   : > { %3383 = vmatpush1.bf16.msra.mxu1 %v7970_v30  ;;  %3171 = vmatprep.subr.bf16.mxu0 %v7977_v31  ;;  %v8019_v30 = vld [vmem:[%s9234_s13 + $0x2a8] ss:$48 sps:$4 sm:$0xff]   ;;  %v8023_v31 = vld [vmem:[%s9234_s13 + $0x304] ss:$48 sps:$4 sm:$0xff]  }
  0x76   : > { %3384 = vmatprep.subr.bf16.mxu1 %v7986_v32  ;;  %v8025_v32 = vld [vmem:[%s9234_s13 + $0x30c] ss:$48 sps:$4 sm:$0xff]  }
  0x78   : > { %3172 = vmatpush1.bf16.msra.mxu0 %v7975_v33  ;;  %v8110_v33 = vld [vmem:[%s11539_s2 + $0x3a0] ss:$8 sps:$4 sm:$0xff]  }
  0x79   : > { %3385 = vmatpush1.bf16.msra.mxu1 %v7984_v36  ;;  %3173 = vmatprep.subr.bf16.mxu0 %v7989_v37  ;;  %v8115_v36 = vld [vmem:[%s11539_s2 + $0x294] ss:$8 sps:$4 sm:$0xff]   ;;  %v8030_v37 = vld [vmem:[%s9234_s13 + $0x300] ss:$48 sps:$4 sm:$0xff]  }
  0x7a   : > { %3386 = vmatprep.subr.bf16.mxu1 %v7998_v38  ;;  %2792 = vmatmul.mubr.bf16.gmra.mxu0 %v7961_v34  ;;  %v8112_v34 = vld [vmem:[%s11539_s2 + $0x3a4] ss:$8 sps:$4 sm:$0xff]   ;;  %v8031_v38 = vld [vmem:[%s9234_s13 + $0x308] ss:$48 sps:$4 sm:$0xff]  }
  0x7b   : > { %3005 = vmatmul.mubr.bf16.gmra.mxu1 %v7962_v35  ;;  %2801 = vmatprep.mubr.bf16.mxu0 %v7966_v39  ;;  %v8113_v35 = vld [vmem:[%s11539_s2 + $0x290] ss:$8 sps:$4 sm:$0xff]   ;;  %v8035_v39 = vld [vmem:[%s9234_s13 + $0x364] ss:$48 sps:$4 sm:$0xff]  }
  0x7c   : > { %3014 = vmatprep.mubr.bf16.mxu1 %v7968_v40  ;;  %3174 = vmatpush1.bf16.msra.mxu0 %v7987_v41  ;;  %v8122_v40 = vld [vmem:[%s11539_s2 + $0x390] ss:$8 sps:$4 sm:$0xff]   ;;  %v8124_v41 = vld [vmem:[%s11539_s2 + $0x394] ss:$8 sps:$4 sm:$0xff]  }
  0x7d   : > { %3387 = vmatpush1.bf16.msra.mxu1 %v7996_v42  ;;  %3175 = vmatprep.subr.bf16.mxu0 %v8001_v43  ;;  %v8037_v42 = vld [vmem:[%s9234_s13 + $0x36c] ss:$48 sps:$4 sm:$0xff]   ;;  %v8129_v43 = vld [vmem:[%s11539_s2 + $0x280] ss:$8 sps:$4 sm:$0xff]  }
  0x7e   : > { %3388 = vmatprep.subr.bf16.mxu1 %v8010_v44  ;;  %v8131_v44 = vld [vmem:[%s11539_s2 + $0x284] ss:$8 sps:$4 sm:$0xff]  }
  0x80   : > { %3176 = vmatpush1.bf16.msra.mxu0 %v7999_v47  ;;  %v8039_v47 = vld [vmem:[%s9234_s13 + $0x360] ss:$48 sps:$4 sm:$0xff]  }
  0x81   : > { %3389 = vmatpush1.bf16.msra.mxu1 %v8008_v48  ;;  %3177 = vmatprep.subr.bf16.mxu0 %v8013_v49  ;;  %v8040_v48 = vld [vmem:[%s9234_s13 + $0x368] ss:$48 sps:$4 sm:$0xff]   ;;  %v8047_v49 = vld [vmem:[%s9234_s13 + $0x3c4] ss:$48 sps:$4 sm:$0xff]  }
  0x82   : > { %3390 = vmatprep.subr.bf16.mxu1 %v8022_v50  ;;  %2802 = vmatmul.mubr.bf16.gmra.mxu0 %v7973_v45  ;;  %v8134_v45 = vld [vmem:[%s11539_s2 + $0x380] ss:$8 sps:$4 sm:$0xff]   ;;  %v8049_v50 = vld [vmem:[%s9234_s13 + $0x3cc] ss:$48 sps:$4 sm:$0xff]  }
  0x83   : > { %3015 = vmatmul.mubr.bf16.gmra.mxu1 %v7974_v46  ;;  %2811 = vmatprep.mubr.bf16.mxu0 %v7978_v51  ;;  %v8136_v46 = vld [vmem:[%s11539_s2 + $0x384] ss:$8 sps:$4 sm:$0xff]   ;;  %v8145_v51 = vld [vmem:[%s11539_s2 + $0x474] ss:$8 sps:$4 sm:$0xff]  }
  0x84   : > { %3024 = vmatprep.mubr.bf16.mxu1 %v7980_v52  ;;  %3178 = vmatpush1.bf16.msra.mxu0 %v8011_v53  ;;  %v8148_v52 = vld [vmem:[%s11539_s2 + $0x574] ss:$8 sps:$4 sm:$0xff]   ;;  %v8051_v53 = vld [vmem:[%s9234_s13 + $0x3c0] ss:$48 sps:$4 sm:$0xff]  }
  0x85   : > { %3391 = vmatpush1.bf16.msra.mxu1 %v8020_v54  ;;  %3179 = vmatprep.subr.bf16.mxu0 %v8029_v55  ;;  %v8052_v54 = vld [vmem:[%s9234_s13 + $0x3c8] ss:$48 sps:$4 sm:$0xff]   ;;  %v8059_v55 = vld [vmem:[%s9234_s13 + $0x424] ss:$48 sps:$4 sm:$0xff]  }
  0x86   : > { %3392 = vmatprep.subr.bf16.mxu1 %v8034_v56  ;;  %v8061_v56 = vld [vmem:[%s9234_s13 + $0x42c] ss:$48 sps:$4 sm:$0xff]  }
  0x88   : > { %3180 = vmatpush1.bf16.msra.mxu0 %v8027_v57  ;;  %v8063_v57 = vld [vmem:[%s9234_s13 + $0x420] ss:$48 sps:$4 sm:$0xff]  }
  0x89   : > { %3393 = vmatpush1.bf16.msra.mxu1 %v8032_v58  ;;  %3181 = vmatprep.subr.bf16.mxu0 %v8043_v60  ;;  %v8064_v58 = vld [vmem:[%s9234_s13 + $0x428] ss:$48 sps:$4 sm:$0xff]   ;;  %v8070_v60 = vld [vmem:[%s9234_s13 + $0x48c] ss:$48 sps:$4 sm:$0xff]  }
  0x8a   : > { %3394 = vmatprep.subr.bf16.mxu1 %v8046_v61  ;;  %2812 = vmatmul.mubr.bf16.gmra.mxu0 %v7982_v59  ;;  %v8068_v59 = vld [vmem:[%s9234_s13 + $0x484] ss:$48 sps:$4 sm:$0xff]   ;;  %v8075_v61 = vld [vmem:[%s9234_s13 + $0x480] ss:$48 sps:$4 sm:$0xff]  }
  0x8b   : > { %3025 = vmatmul.mubr.bf16.gmra.mxu1 %v7983_v62  ;;  %2821 = vmatprep.mubr.bf16.mxu0 %v7990_v63  ;;  %v8076_v62 = vld [vmem:[%s9234_s13 + $0x488] ss:$48 sps:$4 sm:$0xff]   ;;  %v8080_v63 = vld [vmem:[%s9234_s13 + $0x4e4] ss:$48 sps:$4 sm:$0xff]  }
  0x8c   : > { %3034 = vmatprep.mubr.bf16.mxu1 %v7992_v0  ;;  %3182 = vmatpush2.bf16.msra.mxu0 %v8041_v1  ;;  %v8082_v0 = vld [vmem:[%s9234_s13 + $0x4ec] ss:$48 sps:$4 sm:$0xff]   ;;  %v8084_v1 = vld [vmem:[%s9234_s13 + $0x4e0] ss:$48 sps:$4 sm:$0xff]  }
  0x8d   : > { %3395 = vmatpush2.bf16.msra.mxu1 %v8044_v2  ;;  %3183 = vmatprep.subr.bf16.mxu0 %v8055_v3  ;;  %v8085_v2 = vld [vmem:[%s9234_s13 + $0x4e8] ss:$48 sps:$4 sm:$0xff]   ;;  %v8092_v3 = vld [vmem:[%s9234_s13 + $0x544] ss:$48 sps:$4 sm:$0xff]  }
  0x8e   : > { %3396 = vmatprep.subr.bf16.mxu1 %v8058_v4  ;;  %v8094_v4 = vld [vmem:[%s9234_s13 + $0x54c] ss:$48 sps:$4 sm:$0xff]  }
  0x90   : > { %3184 = vmatpush2.bf16.msra.mxu0 %v8053_v5  ;;  %v8096_v5 = vld [vmem:[%s9234_s13 + $0x540] ss:$48 sps:$4 sm:$0xff]  }
  0x91   : > { %3397 = vmatpush2.bf16.msra.mxu1 %v8056_v7  ;;  %3185 = vmatprep.subr.bf16.mxu0 %v8067_v9  ;;  %v8104_v7 = vld [vmem:[%s9234_s13 + $0x5a4] ss:$48 sps:$4 sm:$0xff]   ;;  %v8108_v9 = vld [vmem:[%s9234_s13 + $0x5a0] ss:$48 sps:$4 sm:$0xff]  }
  0x92   : > { %2822 = vmatmul.mubr.bf16.gmra.mxu0 %v7994_v6  ;;  %3398 = vmatprep.subr.bf16.mxu1 %v8074_v13  ;;  %v8097_v6 = vld [vmem:[%s9234_s13 + $0x548] ss:$48 sps:$4 sm:$0xff]   ;;  %v8120_v13 = vld [vmem:[%s9234_s13 + $0x600] ss:$48 sps:$4 sm:$0xff]  }
  0x93   : > { %3035 = vmatmul.mubr.bf16.gmra.mxu1 %v7995_v8  ;;  %2831 = vmatprep.mubr.bf16.mxu0 %v8002_v10  ;;  %v8106_v8 = vld [vmem:[%s9234_s13 + $0x5ac] ss:$48 sps:$4 sm:$0xff]   ;;  %v8109_v10 = vld [vmem:[%s9234_s13 + $0x5a8] ss:$48 sps:$4 sm:$0xff]  }
  0x94   : > { %3044 = vmatprep.mubr.bf16.mxu1 %v8004_v11  ;;  %3186 = vmatpush2.bf16.msra.mxu0 %v8065_v12  ;;  %v8116_v11 = vld [vmem:[%s9234_s13 + $0x604] ss:$48 sps:$4 sm:$0xff]   ;;  %v8118_v12 = vld [vmem:[%s9234_s13 + $0x60c] ss:$48 sps:$4 sm:$0xff]  }
  0x95   : > { %3399 = vmatpush2.bf16.msra.mxu1 %v8072_v14  ;;  %3187 = vmatprep.subr.bf16.mxu0 %v8079_v15  ;;  %v8121_v14 = vld [vmem:[%s9234_s13 + $0x608] ss:$48 sps:$4 sm:$0xff]   ;;  %v8125_v15 = vld [vmem:[%s9234_s13 + $0x664] ss:$48 sps:$4 sm:$0xff]  }
  0x96   : > { %3400 = vmatprep.subr.bf16.mxu1 %v8088_v21  ;;  %v8137_v21 = vld [vmem:[%s9234_s13 + $0x10] ss:$48 sps:$4 sm:$0xff]  }
  0x98   : > { %3188 = vmatpush2.bf16.msra.mxu0 %v8077_v17  ;;  %v8132_v17 = vld [vmem:[%s9234_s13 + $0x660] ss:$48 sps:$4 sm:$0xff]  }
  0x99   : > { %3401 = vmatpush2.bf16.msra.mxu1 %v8086_v20  ;;  %3189 = vmatprep.subr.bf16.mxu0 %v8091_v23  ;;  %v8142_v20 = vld [vmem:[%s9234_s13 + $0x1c] ss:$48 sps:$4 sm:$0xff]   ;;  %v8143_v23 = vld [vmem:[%s11539_s2 + $0x470] ss:$8 sps:$4 sm:$0xff]  }
  0x9a   : > { %2832 = vmatmul.mubr.bf16.gmra.mxu0 %v8006_v16  ;;  %3402 = vmatprep.subr.bf16.mxu1 %v8100_v27  ;;  %v8127_v16 = vld [vmem:[%s9234_s13 + $0x66c] ss:$48 sps:$4 sm:$0xff]  }
  0x9b   : > { %3045 = vmatmul.mubr.bf16.gmra.mxu1 %v8007_v18  ;;  %2841 = vmatprep.mubr.bf16.mxu0 %v8014_v19  ;;  %v8133_v18 = vld [vmem:[%s9234_s13 + $0x668] ss:$48 sps:$4 sm:$0xff]   ;;  %v8139_v19 = vld [vmem:[%s9234_s13 + $0x14] ss:$48 sps:$4 sm:$0xff]  }
  0x9c   : > { %3054 = vmatprep.mubr.bf16.mxu1 %v8016_v22  ;;  %3190 = vmatpush2.bf16.msra.mxu0 %v8089_v24  ;;  %v8140_v22 = vld [vmem:[%s9234_s13 + $0x18] ss:$48 sps:$4 sm:$0xff]   ;;  %v8157_v27 = vld [vmem:[%s11539_s2 + $0x464] ss:$8 sps:$4 sm:$0xff]  }
  0x9d   : > { %3403 = vmatpush2.bf16.msra.mxu1 %v8098_v25  ;;  %3191 = vmatprep.subr.bf16.mxu0 %v8103_v29  ;;  %v8146_v24 = vld [vmem:[%s11539_s2 + $0x570] ss:$8 sps:$4 sm:$0xff]   ;;  %v8149_v25 = vld [vmem:[%s9234_s13 + $0x74] ss:$48 sps:$4 sm:$0xff]   ;;  %v8155_v29 = vld [vmem:[%s11539_s2 + $0x460] ss:$8 sps:$4 sm:$0xff]  }
  0x9e   : > { %3404 = vmatprep.subr.bf16.mxu1 %v8112_v34  ;;  %v8154_v34 = vld [vmem:[%s9234_s13 + $0x78] ss:$48 sps:$4 sm:$0xff]  }
  0xa0   : > { %3192 = vmatpush2.bf16.msra.mxu0 %v8101_v28  ;;  %v8160_v28 = vld [vmem:[%s11539_s2 + $0x564] ss:$8 sps:$4 sm:$0xff]  }
  0xa1   : > { %3193 = vmatprep.subr.bf16.mxu0 %v8115_v36  ;;  %3405 = vmatpush2.bf16.msra.mxu1 %v8110_v33  ;;  %v8153_v33 = vld [vmem:[%s9234_s13 + $0x70] ss:$48 sps:$4 sm:$0xff]   ;;  %v8163_v36 = vld [vmem:[%s9234_s13 + $0xdc] ss:$48 sps:$4 sm:$0xff]  }
  0xa2   : > { %2842 = vmatmul.mubr.bf16.gmra.mxu0 %v8018_v26  ;;  %3406 = vmatprep.subr.bf16.mxu1 %v8124_v41  ;;  %v8151_v26 = vld [vmem:[%s9234_s13 + $0x7c] ss:$48 sps:$4 sm:$0xff]   ;;  %v8179_v41 = vld [vmem:[%s11539_s2 + $0x440] ss:$8 sps:$4 sm:$0xff]  }
  0xa3   : > { %3055 = vmatmul.mubr.bf16.gmra.mxu1 %v8019_v30  ;;  %2851 = vmatprep.mubr.bf16.mxu0 %v8023_v31  ;;  %v8158_v30 = vld [vmem:[%s11539_s2 + $0x560] ss:$8 sps:$4 sm:$0xff]   ;;  %v8169_v31 = vld [vmem:[%s11539_s2 + $0x454] ss:$8 sps:$4 sm:$0xff]  }
  0xa4   : > { %3064 = vmatprep.mubr.bf16.mxu1 %v8025_v32  ;;  %3194 = vmatpush2.bf16.msra.mxu0 %v8113_v35  ;;  %v8176_v32 = vld [vmem:[%s11539_s2 + $0x554] ss:$8 sps:$4 sm:$0xff]  }
  0xa5   : > { %3407 = vmatpush2.bf16.msra.mxu1 %v8122_v40  ;;  %3195 = vmatprep.subr.bf16.mxu0 %v8131_v44  ;;  %v8161_v35 = vld [vmem:[%s9234_s13 + $0xd4] ss:$48 sps:$4 sm:$0xff]   ;;  %v8188_v44 = vld [vmem:[%s11539_s2 + $0x540] ss:$8 sps:$4 sm:$0xff]  }
  0xa6   : > { %3408 = vmatprep.subr.bf16.mxu1 %v8136_v46  ;;  %v8190_v40 = vld [vmem:[%s11539_s2 + $0x544] ss:$8 sps:$4 sm:$0xff]   ;;  %v8202_v46 = vld [vmem:[%s11539_s2 + $0x534] ss:$8 sps:$4 sm:$0xff]  }
  0xa8   : > { %3196 = vmatpush2.bf16.msra.mxu0 %v8129_v43  ;;  %v8166_v43 = vld [vmem:[%s9234_s13 + $0xd8] ss:$48 sps:$4 sm:$0xff]  }
  0xa9   : > { %3409 = vmatpush2.bf16.msra.mxu1 %v8134_v45  ;;  %3591 = vmatprep.subr.bf16.mxu0 %v8145_v51  ;;  %v8193_v45 = vld [vmem:[%s11539_s2 + $0x434] ss:$8 sps:$4 sm:$0xff]   ;;  %v8205_v51 = vld [vmem:[%s11539_s2 + $0x424] ss:$8 sps:$4 sm:$0xff]  }
  0xaa   : > { %2852 = vmatmul.mubr.bf16.gmra.mxu0 %v8030_v37  ;;  %3804 = vmatprep.subr.bf16.mxu1 %v8148_v52  ;;  %v8167_v37 = vld [vmem:[%s11539_s2 + $0x450] ss:$8 sps:$4 sm:$0xff]   ;;  %v8214_v52 = vld [vmem:[%s11539_s2 + $0x524] ss:$8 sps:$4 sm:$0xff]  }
  0xab   : > { %3065 = vmatmul.mubr.bf16.gmra.mxu1 %v8031_v38  ;;  %2861 = vmatprep.mubr.bf16.mxu0 %v8035_v39  ;;  %v8174_v38 = vld [vmem:[%s11539_s2 + $0x550] ss:$8 sps:$4 sm:$0xff]   ;;  %v8181_v39 = vld [vmem:[%s11539_s2 + $0x444] ss:$8 sps:$4 sm:$0xff]  }
  0xac   : > { %3074 = vmatprep.mubr.bf16.mxu1 %v8037_v42  ;;  %v8165_v42 = vld [vmem:[%s9234_s13 + $0xd0] ss:$48 sps:$4 sm:$0xff]  }
  0xb2   : > { %2862 = vmatmul.mubr.bf16.gmra.mxu0 %v8039_v47  ;;  %v8170_v47 = vld [vmem:[%s9234_s13 + $0x134] ss:$48 sps:$4 sm:$0xff]  }
  0xb3   : > { %3075 = vmatmul.mubr.bf16.gmra.mxu1 %v8040_v48  ;;  %2871 = vmatprep.mubr.bf16.mxu0 %v8047_v49  ;;  %v8172_v48 = vld [vmem:[%s9234_s13 + $0x13c] ss:$48 sps:$4 sm:$0xff]   ;;  %v8191_v49 = vld [vmem:[%s11539_s2 + $0x430] ss:$8 sps:$4 sm:$0xff]  }
  0xb4   : > { %3084 = vmatprep.mubr.bf16.mxu1 %v8049_v50  ;;  %v8200_v50 = vld [vmem:[%s11539_s2 + $0x530] ss:$8 sps:$4 sm:$0xff]  }
  0xba   : > { %2872 = vmatmul.mubr.bf16.gmra.mxu0 %v8051_v53  ;;  %v8203_v53 = vld [vmem:[%s11539_s2 + $0x420] ss:$8 sps:$4 sm:$0xff]  }
  0xbb   : > { %3085 = vmatmul.mubr.bf16.gmra.mxu1 %v8052_v54  ;;  %2881 = vmatprep.mubr.bf16.mxu0 %v8059_v55  ;;  %v8212_v54 = vld [vmem:[%s11539_s2 + $0x520] ss:$8 sps:$4 sm:$0xff]   ;;  %v8217_v55 = vld [vmem:[%s11539_s2 + $0x414] ss:$8 sps:$4 sm:$0xff]  }
  0xbc   : > { %3094 = vmatprep.mubr.bf16.mxu1 %v8061_v56  ;;  %v8226_v56 = vld [vmem:[%s11539_s2 + $0x514] ss:$8 sps:$4 sm:$0xff]  }
  0xc2   : > { %2882 = vmatmul.mubr.bf16.gmra.mxu0 %v8063_v57  ;;  %v8177_v57 = vld [vmem:[%s9234_s13 + $0x130] ss:$48 sps:$4 sm:$0xff]  }
  0xc3   : > { %3095 = vmatmul.mubr.bf16.gmra.mxu1 %v8064_v58  ;;  %2891 = vmatprep.mubr.bf16.mxu0 %v8068_v59  ;;  %v8178_v58 = vld [vmem:[%s9234_s13 + $0x138] ss:$48 sps:$4 sm:$0xff]   ;;  %v8182_v59 = vld [vmem:[%s9234_s13 + $0x194] ss:$48 sps:$4 sm:$0xff]  }
  0xc4   : > { %3104 = vmatprep.mubr.bf16.mxu1 %v8070_v60  ;;  %v8184_v60 = vld [vmem:[%s9234_s13 + $0x19c] ss:$48 sps:$4 sm:$0xff]  }
  0xca   : > { %2892 = vmatmul.mubr.bf16.gmra.mxu0 %v8075_v61  ;;  %v8215_v61 = vld [vmem:[%s11539_s2 + $0x410] ss:$8 sps:$4 sm:$0xff]  }
  0xcb   : > { %3105 = vmatmul.mubr.bf16.gmra.mxu1 %v8076_v62  ;;  %2901 = vmatprep.mubr.bf16.mxu0 %v8080_v63  ;;  %v8224_v62 = vld [vmem:[%s11539_s2 + $0x510] ss:$8 sps:$4 sm:$0xff]   ;;  %v8233_v63 = vld [vmem:[%s11539_s2 + $0x404] ss:$8 sps:$4 sm:$0xff]  }
  0xcc   : > { %3114 = vmatprep.mubr.bf16.mxu1 %v8082_v0  ;;  %v8238_v0 = vld [vmem:[%s11539_s2 + $0x504] ss:$8 sps:$4 sm:$0xff]  }
  0xd2   : > { %2902 = vmatmul.mubr.bf16.gmra.mxu0 %v8084_v1  ;;  %v8231_v1 = vld [vmem:[%s11539_s2 + $0x400] ss:$8 sps:$4 sm:$0xff]  }
  0xd3   : > { %3115 = vmatmul.mubr.bf16.gmra.mxu1 %v8085_v2  ;;  %2911 = vmatprep.mubr.bf16.mxu0 %v8092_v3  ;;  %v8236_v2 = vld [vmem:[%s11539_s2 + $0x500] ss:$8 sps:$4 sm:$0xff]   ;;  %v8247_v3 = vld [vmem:[%s11539_s2 + $0x4f4] ss:$8 sps:$4 sm:$0xff]  }
  0xd4   : > { %3124 = vmatprep.mubr.bf16.mxu1 %v8094_v4  ;;  %v8250_v4 = vld [vmem:[%s11539_s2 + $0x5f4] ss:$8 sps:$4 sm:$0xff]  }
  0xda   : > { %2912 = vmatmul.mubr.bf16.gmra.mxu0 %v8096_v5  ;;  %v8186_v5 = vld [vmem:[%s9234_s13 + $0x190] ss:$48 sps:$4 sm:$0xff]  }
  0xdb   : > { %3125 = vmatmul.mubr.bf16.gmra.mxu1 %v8097_v6  ;;  %2921 = vmatprep.mubr.bf16.mxu0 %v8104_v7  ;;  %v8187_v6 = vld [vmem:[%s9234_s13 + $0x198] ss:$48 sps:$4 sm:$0xff]   ;;  %v8194_v7 = vld [vmem:[%s9234_s13 + $0x1f4] ss:$48 sps:$4 sm:$0xff]  }
  0xdc   : > { %3134 = vmatprep.mubr.bf16.mxu1 %v8106_v8  ;;  %v8196_v8 = vld [vmem:[%s9234_s13 + $0x1fc] ss:$48 sps:$4 sm:$0xff]  }
  0xe2   : > { %2922 = vmatmul.mubr.bf16.gmra.mxu0 %v8108_v9  ;;  %v8245_v9 = vld [vmem:[%s11539_s2 + $0x4f0] ss:$8 sps:$4 sm:$0xff]  }
  0xe3   : > { %3135 = vmatmul.mubr.bf16.gmra.mxu1 %v8109_v10  ;;  %2931 = vmatprep.mubr.bf16.mxu0 %v8116_v11  ;;  %v8248_v10 = vld [vmem:[%s11539_s2 + $0x5f0] ss:$8 sps:$4 sm:$0xff]   ;;  %v8259_v11 = vld [vmem:[%s11539_s2 + $0x4e4] ss:$8 sps:$4 sm:$0xff]  }
  0xe4   : > { %3144 = vmatprep.mubr.bf16.mxu1 %v8118_v12  ;;  %v8262_v12 = vld [vmem:[%s11539_s2 + $0x5e4] ss:$8 sps:$4 sm:$0xff]  }
  0xea   : > { %2932 = vmatmul.mubr.bf16.gmra.mxu0 %v8120_v13  ;;  %v8257_v13 = vld [vmem:[%s11539_s2 + $0x4e0] ss:$8 sps:$4 sm:$0xff]  }
  0xeb   : > { %3145 = vmatmul.mubr.bf16.gmra.mxu1 %v8121_v14  ;;  %2941 = vmatprep.mubr.bf16.mxu0 %v8125_v15  ;;  %v8260_v14 = vld [vmem:[%s11539_s2 + $0x5e0] ss:$8 sps:$4 sm:$0xff]  }
  0xec   : > { %3154 = vmatprep.mubr.bf16.mxu1 %v8127_v16  ;;  %v8198_v15 = vld [vmem:[%s9234_s13 + $0x1f0] ss:$48 sps:$4 sm:$0xff]   ;;  %v8199_v16 = vld [vmem:[%s9234_s13 + $0x1f8] ss:$48 sps:$4 sm:$0xff]  }
  0xf2   : > { %2942 = vmatmul.mubr.bf16.gmra.mxu0 %v8132_v17  ;;  %v8271_v17 = vld [vmem:[%s11539_s2 + $0x4d4] ss:$8 sps:$4 sm:$0xff]  }
  0xf3   : > { %3155 = vmatmul.mubr.bf16.gmra.mxu1 %v8133_v18  ;;  %3197 = vmatprep.mubr.bf16.mxu0 %v8139_v19  ;;  %v8280_v18 = vld [vmem:[%s11539_s2 + $0x5d4] ss:$8 sps:$4 sm:$0xff]  }
  0xf4   : > { %3410 = vmatprep.mubr.bf16.mxu1 %v8142_v20  ;;  %v8206_v19 = vld [vmem:[%s9234_s13 + $0x254] ss:$48 sps:$4 sm:$0xff]   ;;  %v8208_v20 = vld [vmem:[%s9234_s13 + $0x25c] ss:$48 sps:$4 sm:$0xff]  }
  0xfa   : > { %3198 = vmatmul.mubr.bf16.vlgmr.msra.gmra.mxu0 %v8137_v21  ;;  %v8269_v21 = vld [vmem:[%s11539_s2 + $0x4d0] ss:$8 sps:$4 sm:$0xff]  }
  0xfb   : > { %3411 = vmatmul.mubr.bf16.vlgmr.msra.gmra.mxu1 %v8140_v22  ;;  %3592 = vmatpush1.bf16.msra.mxu0 %v8143_v23  ;;  %v8278_v22 = vld [vmem:[%s11539_s2 + $0x5d0] ss:$8 sps:$4 sm:$0xff]   ;;  %v8283_v23 = vld [vmem:[%s11539_s2 + $0x4c4] ss:$8 sps:$4 sm:$0xff]  }
  0xfc   : > { %3805 = vmatpush1.bf16.msra.mxu1 %v8146_v24  ;;  %3207 = vmatprep.mubr.bf16.mxu0 %v8149_v25  ;;  %v8292_v24 = vld [vmem:[%s11539_s2 + $0x5c4] ss:$8 sps:$4 sm:$0xff]   ;;  %v8281_v25 = vld [vmem:[%s11539_s2 + $0x4c0] ss:$8 sps:$4 sm:$0xff]  }
  0xfd   : > { %3420 = vmatprep.mubr.bf16.mxu1 %v8151_v26  ;;  %3593 = vmatprep.subr.bf16.mxu0 %v8157_v27  ;;  %v8290_v26 = vld [vmem:[%s11539_s2 + $0x5c0] ss:$8 sps:$4 sm:$0xff]  }
  0xfe   : > { %3806 = vmatprep.subr.bf16.mxu1 %v8160_v28  ;;  %v8210_v27 = vld [vmem:[%s9234_s13 + $0x250] ss:$48 sps:$4 sm:$0xff]   ;;  %v8211_v28 = vld [vmem:[%s9234_s13 + $0x258] ss:$48 sps:$4 sm:$0xff]  }
  0xff   : > { %3594 = vmatpush1.bf16.msra.mxu0 %v8155_v29  ;;  %v8218_v29 = vld [vmem:[%s9234_s13 + $0x2b4] ss:$48 sps:$4 sm:$0xff]  }
 0x100   : > { %3807 = vmatpush1.bf16.msra.mxu1 %v8158_v30  ;;  %3595 = vmatprep.subr.bf16.mxu0 %v8169_v31  ;;  %v8220_v30 = vld [vmem:[%s9234_s13 + $0x2bc] ss:$48 sps:$4 sm:$0xff]  }
 0x101   : > { %3808 = vmatprep.subr.bf16.mxu1 %v8176_v32  ;;  %v8295_v31 = vld [vmem:[%s11539_s2 + $0x4b4] ss:$8 sps:$4 sm:$0xff]  }
 0x102   : > { %3208 = vmatmul.mubr.bf16.gmra.mxu0 %v8153_v33  ;;  %v8304_v32 = vld [vmem:[%s11539_s2 + $0x5b4] ss:$8 sps:$4 sm:$0xff]   ;;  %v8293_v33 = vld [vmem:[%s11539_s2 + $0x4b0] ss:$8 sps:$4 sm:$0xff]  }
 0x103   : > { %3421 = vmatmul.mubr.bf16.gmra.mxu1 %v8154_v34  ;;  %3217 = vmatprep.mubr.bf16.mxu0 %v8161_v35  ;;  %v8302_v34 = vld [vmem:[%s11539_s2 + $0x5b0] ss:$8 sps:$4 sm:$0xff]   ;;  %v8307_v35 = vld [vmem:[%s11539_s2 + $0x4a4] ss:$8 sps:$4 sm:$0xff]  }
 0x104   : > { %3430 = vmatprep.mubr.bf16.mxu1 %v8163_v36  ;;  %3596 = vmatpush1.bf16.msra.mxu0 %v8167_v37  ;;  %v8316_v36 = vld [vmem:[%s11539_s2 + $0x5a4] ss:$8 sps:$4 sm:$0xff]  }
 0x105   : > { %3809 = vmatpush1.bf16.msra.mxu1 %v8174_v38  ;;  %3597 = vmatprep.subr.bf16.mxu0 %v8181_v39  ;;  %v8305_v39 = vld [vmem:[%s11539_s2 + $0x4a0] ss:$8 sps:$4 sm:$0xff]  }
 0x106   : > { %3810 = vmatprep.subr.bf16.mxu1 %v8190_v40  ;;  %v8314_v40 = vld [vmem:[%s11539_s2 + $0x5a0] ss:$8 sps:$4 sm:$0xff]  }
 0x108   : > { %3598 = vmatpush1.bf16.msra.mxu0 %v8179_v41 }
 0x109   : > { %3811 = vmatpush1.bf16.msra.mxu1 %v8188_v44  ;;  %3599 = vmatprep.subr.bf16.mxu0 %v8193_v45 }
 0x10a   : > { %3812 = vmatprep.subr.bf16.mxu1 %v8202_v46  ;;  %3218 = vmatmul.mubr.bf16.gmra.mxu0 %v8165_v42  ;;  %v8319_v42 = vld [vmem:[%s11539_s2 + $0x494] ss:$8 sps:$4 sm:$0xff]   ;;  %v8222_v46 = vld [vmem:[%s9234_s13 + $0x2b0] ss:$48 sps:$4 sm:$0xff]  }
 0x10b   : > { %3431 = vmatmul.mubr.bf16.gmra.mxu1 %v8166_v43  ;;  %3227 = vmatprep.mubr.bf16.mxu0 %v8170_v47  ;;  %v8328_v43 = vld [vmem:[%s11539_s2 + $0x594] ss:$8 sps:$4 sm:$0xff]   ;;  %v8223_v47 = vld [vmem:[%s9234_s13 + $0x2b8] ss:$48 sps:$4 sm:$0xff]  }
 0x10c   : > { %3440 = vmatprep.mubr.bf16.mxu1 %v8172_v48  ;;  %3600 = vmatpush1.bf16.msra.mxu0 %v8191_v49 }
 0x10d   : > { %3813 = vmatpush1.bf16.msra.mxu1 %v8200_v50  ;;  %3601 = vmatprep.subr.bf16.mxu0 %v8205_v51 }
 0x10e   : > { %3814 = vmatprep.subr.bf16.mxu1 %v8214_v52  ;;  %v8227_v52 = vld [vmem:[%s9234_s13 + $0x314] ss:$48 sps:$4 sm:$0xff]  }
 0x110   : > { %3602 = vmatpush1.bf16.msra.mxu0 %v8203_v53  ;;  %v8229_v53 = vld [vmem:[%s9234_s13 + $0x31c] ss:$48 sps:$4 sm:$0xff]  }
 0x111   : > { %3815 = vmatpush1.bf16.msra.mxu1 %v8212_v54  ;;  %3603 = vmatprep.subr.bf16.mxu0 %v8217_v55  ;;  %v8317_v54 = vld [vmem:[%s11539_s2 + $0x490] ss:$8 sps:$4 sm:$0xff]  }
 0x112   : > { %3816 = vmatprep.subr.bf16.mxu1 %v8226_v56  ;;  %3228 = vmatmul.mubr.bf16.gmra.mxu0 %v8177_v57  ;;  %v8326_v57 = vld [vmem:[%s11539_s2 + $0x590] ss:$8 sps:$4 sm:$0xff]  }
 0x113   : > { %3441 = vmatmul.mubr.bf16.gmra.mxu1 %v8178_v58  ;;  %3237 = vmatprep.mubr.bf16.mxu0 %v8182_v59  ;;  %v8337_v58 = vld [vmem:[%s11539_s2 + $0x484] ss:$8 sps:$4 sm:$0xff]  }
 0x114   : > { %3450 = vmatprep.mubr.bf16.mxu1 %v8184_v60  ;;  %3604 = vmatpush1.bf16.msra.mxu0 %v8215_v61  ;;  %v8340_v59 = vld [vmem:[%s11539_s2 + $0x584] ss:$8 sps:$4 sm:$0xff]  }
 0x115   : > { %3817 = vmatpush1.bf16.msra.mxu1 %v8224_v62  ;;  %3605 = vmatprep.subr.bf16.mxu0 %v8233_v63  ;;  %v8335_v63 = vld [vmem:[%s11539_s2 + $0x480] ss:$8 sps:$4 sm:$0xff]  }
 0x116   : > { %3818 = vmatprep.subr.bf16.mxu1 %v8238_v0  ;;  %v8338_v0 = vld [vmem:[%s11539_s2 + $0x580] ss:$8 sps:$4 sm:$0xff]  }
 0x118   : > { %3606 = vmatpush1.bf16.msra.mxu0 %v8231_v1 }
 0x119   : > { %3819 = vmatpush1.bf16.msra.mxu1 %v8236_v2  ;;  %3607 = vmatprep.subr.bf16.mxu0 %v8247_v3  ;;  %v8349_v2 = vld [vmem:[%s11540_s3 + $0x74] ss:$8 sps:$4 sm:$0xff]  }
 0x11a   : > { %3820 = vmatprep.subr.bf16.mxu1 %v8250_v4  ;;  %3238 = vmatmul.mubr.bf16.gmra.mxu0 %v8186_v5  ;;  %v8352_v3 = vld [vmem:[%s11540_s3 + $0x174] ss:$8 sps:$4 sm:$0xff]  }
 0x11b   : > { %3451 = vmatmul.mubr.bf16.gmra.mxu1 %v8187_v6  ;;  %3247 = vmatprep.mubr.bf16.mxu0 %v8194_v7  ;;  %v8234_v6 = vld [vmem:[%s9234_s13 + $0x310] ss:$48 sps:$4 sm:$0xff]   ;;  %v8235_v7 = vld [vmem:[%s9234_s13 + $0x318] ss:$48 sps:$4 sm:$0xff]  }
 0x11c   : > { %3460 = vmatprep.mubr.bf16.mxu1 %v8196_v8  ;;  %3608 = vmatpush2.bf16.msra.mxu0 %v8245_v9 }
 0x11d   : > { %3821 = vmatpush2.bf16.msra.mxu1 %v8248_v10  ;;  %3609 = vmatprep.subr.bf16.mxu0 %v8259_v11 }
 0x11e   : > { %3822 = vmatprep.subr.bf16.mxu1 %v8262_v12  ;;  %v8239_v12 = vld [vmem:[%s9234_s13 + $0x374] ss:$48 sps:$4 sm:$0xff]  }
 0x120   : > { %3610 = vmatpush2.bf16.msra.mxu0 %v8257_v13  ;;  %v8241_v13 = vld [vmem:[%s9234_s13 + $0x37c] ss:$48 sps:$4 sm:$0xff]  }
 0x121   : > { %3823 = vmatpush2.bf16.msra.mxu1 %v8260_v14  ;;  %3611 = vmatprep.subr.bf16.mxu0 %v8271_v17 }
 0x122   : > { %3824 = vmatprep.subr.bf16.mxu1 %v8280_v18  ;;  %3248 = vmatmul.mubr.bf16.gmra.mxu0 %v8198_v15 }
 0x123   : > { %3461 = vmatmul.mubr.bf16.gmra.mxu1 %v8199_v16  ;;  %3257 = vmatprep.mubr.bf16.mxu0 %v8206_v19 }
 0x124   : > { %3470 = vmatprep.mubr.bf16.mxu1 %v8208_v20  ;;  %3612 = vmatpush2.bf16.msra.mxu0 %v8269_v21 }
 0x125   : > { %3825 = vmatpush2.bf16.msra.mxu1 %v8278_v22  ;;  %3613 = vmatprep.subr.bf16.mxu0 %v8283_v23  ;;  %v8243_v22 = vld [vmem:[%s9234_s13 + $0x370] ss:$48 sps:$4 sm:$0xff]   ;;  %v8244_v23 = vld [vmem:[%s9234_s13 + $0x378] ss:$48 sps:$4 sm:$0xff]  }
 0x126   : > { %3826 = vmatprep.subr.bf16.mxu1 %v8292_v24 }
 0x128   : > { %3614 = vmatpush2.bf16.msra.mxu0 %v8281_v25 }
 0x129   : > { %3827 = vmatpush2.bf16.msra.mxu1 %v8290_v26  ;;  %3615 = vmatprep.subr.bf16.mxu0 %v8295_v31 }
 0x12a   : > { %3828 = vmatprep.subr.bf16.mxu1 %v8304_v32  ;;  %v2773_v37 = vpop.f32.mrf.mxu0  ;;  %3258 = vmatmul.mubr.bf16.gmra.mxu0 %v8210_v27 }
 0x12b   : > { %v2986_v38 = vpop.f32.mrf.mxu1  ;;  %3471 = vmatmul.mubr.bf16.gmra.mxu1 %v8211_v28  ;;  %3267 = vmatprep.mubr.bf16.mxu0 %v8218_v29  ;;  %v8253_v28 = vld [vmem:[%s9234_s13 + $0x3d4] ss:$48 sps:$4 sm:$0xff]   ;;  %v8256_v29 = vld [vmem:[%s9234_s13 + $0x3dc] ss:$48 sps:$4 sm:$0xff]  }
 0x12c   : > { %v9755_v41 = vadd.f32 %v2986_v38, %v2773_v37  ;;  %3480 = vmatprep.mubr.bf16.mxu1 %v8220_v30  ;;  %v2775_v44 = vpop.f32.mrf.mxu0  ;;  %3616 = vmatpush2.bf16.msra.mxu0 %v8293_v33  ;;  %v8251_v38 = vld [vmem:[%s9234_s13 + $0x3d0] ss:$48 sps:$4 sm:$0xff]  }
 0x12d   : > { %v2988_v45 = vpop.f32.mrf.mxu1  ;;  %3829 = vmatpush2.bf16.msra.mxu1 %v8302_v34  ;;  %3617 = vmatprep.subr.bf16.mxu0 %v8307_v35 }
 0x12e   : > { %v9765_v48 = vadd.f32 %v2988_v45, %v2775_v44  ;;  %3830 = vmatprep.subr.bf16.mxu1 %v8316_v36  ;;  %v2777_v49 = vpop.f32.mrf.mxu0  ;;  %v8265_v45 = vld [vmem:[%s9234_s13 + $0x434] ss:$48 sps:$4 sm:$0xff]  }
 0x12f   : > { %v2990_v50 = vpop.f32.mrf.mxu1 }
 0x130   : > { %v9767_v51 = vadd.f32 %v2990_v50, %v2777_v49  ;;  %v2779_v55 = vpop.f32.mrf.mxu0  ;;  %3618 = vmatpush2.bf16.msra.mxu0 %v8305_v39  ;;  %v8254_v39 = vld [vmem:[%s9234_s13 + $0x3d8] ss:$48 sps:$4 sm:$0xff]  }
 0x131   : > { %v2992_v56 = vpop.f32.mrf.mxu1  ;;  %3831 = vmatpush2.bf16.msra.mxu1 %v8314_v40  ;;  %3619 = vmatprep.subr.bf16.mxu0 %v8319_v42 }
 0x132   : > { %v9783_v60 = vadd.f32 %v2992_v56, %v2779_v55  ;;  %3832 = vmatprep.subr.bf16.mxu1 %v8328_v43  ;;  %v2783_v61 = vpop.f32.mrf.mxu0  ;;  %3268 = vmatmul.mubr.bf16.gmra.mxu0 %v8222_v46  ;;  %v8268_v46 = vld [vmem:[%s9234_s13 + $0x43c] ss:$48 sps:$4 sm:$0xff]  }
 0x133   : > { %v2996_v62 = vpop.f32.mrf.mxu1  ;;  %3481 = vmatmul.mubr.bf16.gmra.mxu1 %v8223_v47  ;;  %3277 = vmatprep.mubr.bf16.mxu0 %v8227_v52 }
 0x134   : > { %v9791_v1 = vadd.f32 %v2996_v62, %v2783_v61  ;;  %3490 = vmatprep.mubr.bf16.mxu1 %v8229_v53  ;;  %v2785_v4 = vpop.f32.mrf.mxu0  ;;  %3620 = vmatpush2.bf16.msra.mxu0 %v8317_v54 }
 0x135   : > { %v2998_v5 = vpop.f32.mrf.mxu1  ;;  %3833 = vmatpush2.bf16.msra.mxu1 %v8326_v57  ;;  %3621 = vmatprep.subr.bf16.mxu0 %v8337_v58  ;;  %v8263_v57 = vld [vmem:[%s9234_s13 + $0x430] ss:$48 sps:$4 sm:$0xff]   ;;  %v8266_v58 = vld [vmem:[%s9234_s13 + $0x438] ss:$48 sps:$4 sm:$0xff]  }
 0x136   : > { %v9801_v8 = vadd.f32 %v2998_v5, %v2785_v4  ;;  %3834 = vmatprep.subr.bf16.mxu1 %v8340_v59  ;;  %v2787_v9 = vpop.f32.mrf.mxu0 }
 0x137   : > { %v3000_v10 = vpop.f32.mrf.mxu1 }
 0x138   : > { %v9803_v11 = vadd.f32 %v3000_v10, %v2787_v9  ;;  %v2789_v14 = vpop.f32.mrf.mxu0  ;;  %3622 = vmatpush2.bf16.msra.mxu0 %v8335_v63 }
 0x139   : > { %v3002_v15 = vpop.f32.mrf.mxu1  ;;  %3835 = vmatpush2.bf16.msra.mxu1 %v8338_v0  ;;  %5313 = vmatprep.subr.bf16.mxu0 %v8349_v2  ;;  %v8274_v0 = vld [vmem:[%s9234_s13 + $0x494] ss:$48 sps:$4 sm:$0xff]   ;;  %v8277_v2 = vld [vmem:[%s9234_s13 + $0x49c] ss:$48 sps:$4 sm:$0xff]  }
 0x13a   : > { %v9807_v16 = vadd.f32 %v3002_v15, %v2789_v14  ;;  %5520 = vmatprep.subr.bf16.mxu1 %v8352_v3  ;;  %v2793_v17 = vpop.f32.mrf.mxu0  ;;  %3278 = vmatmul.mubr.bf16.gmra.mxu0 %v8234_v6  ;;  %v8272_v14 = vld [vmem:[%s9234_s13 + $0x490] ss:$48 sps:$4 sm:$0xff]   ;;  %v8275_v15 = vld [vmem:[%s9234_s13 + $0x498] ss:$48 sps:$4 sm:$0xff]  }
 0x13b   : > { %v3006_v18 = vpop.f32.mrf.mxu1  ;;  %3491 = vmatmul.mubr.bf16.gmra.mxu1 %v8235_v7  ;;  %3287 = vmatprep.mubr.bf16.mxu0 %v8239_v12 }
 0x13c   : > { %v9809_v19 = vadd.f32 %v3006_v18, %v2793_v17  ;;  %3500 = vmatprep.mubr.bf16.mxu1 %v8241_v13  ;;  %v2795_v20 = vpop.f32.mrf.mxu0 }
 0x13d   : > { %v3008_v21 = vpop.f32.mrf.mxu1 }
 0x13e   : > { %v9813_v24 = vadd.f32 %v3008_v21, %v2795_v20  ;;  %v2797_v25 = vpop.f32.mrf.mxu0  ;;  %v8286_v21 = vld [vmem:[%s9234_s13 + $0x4f4] ss:$48 sps:$4 sm:$0xff]  }
 0x13f   : > { %v3010_v26 = vpop.f32.mrf.mxu1 }
 0x140   : > { %v9815_v27 = vadd.f32 %v3010_v26, %v2797_v25  ;;  %v2799_v30 = vpop.f32.mrf.mxu0 }
 0x141   : > { %v3012_v31 = vpop.f32.mrf.mxu1 }
 0x142   : > { %v9819_v32 = vadd.f32 %v3012_v31, %v2799_v30  ;;  %v2803_v33 = vpop.f32.mrf.mxu0  ;;  %3288 = vmatmul.mubr.bf16.gmra.mxu0 %v8243_v22  ;;  %v8289_v22 = vld [vmem:[%s9234_s13 + $0x4fc] ss:$48 sps:$4 sm:$0xff]  }
 0x143   : > { %v3016_v34 = vpop.f32.mrf.mxu1  ;;  %3501 = vmatmul.mubr.bf16.gmra.mxu1 %v8244_v23  ;;  %3297 = vmatprep.mubr.bf16.mxu0 %v8253_v28 }
 0x144   : > { %v9821_v35 = vadd.f32 %v3016_v34, %v2803_v33  ;;  %3510 = vmatprep.mubr.bf16.mxu1 %v8256_v29  ;;  %v2805_v36 = vpop.f32.mrf.mxu0 }
 0x145   : > { %v3018_v37 = vpop.f32.mrf.mxu1 }
 0x146   : > { %v9825_v40 = vadd.f32 %v3018_v37, %v2805_v36  ;;  %v2807_v42 = vpop.f32.mrf.mxu0  ;;  %v8284_v36 = vld [vmem:[%s9234_s13 + $0x4f0] ss:$48 sps:$4 sm:$0xff]   ;;  %v8287_v37 = vld [vmem:[%s9234_s13 + $0x4f8] ss:$48 sps:$4 sm:$0xff]  }
 0x147   : > { %v3020_v43 = vpop.f32.mrf.mxu1 }
 0x148   : > { %v9827_v44 = vadd.f32 %v3020_v43, %v2807_v42  ;;  %v2809_v47 = vpop.f32.mrf.mxu0  ;;  %v8298_v43 = vld [vmem:[%s9234_s13 + $0x554] ss:$48 sps:$4 sm:$0xff]  }
 0x149   : > { %v3022_v49 = vpop.f32.mrf.mxu1 }
 0x14a   : > { %v9831_v50 = vadd.f32 %v3022_v49, %v2809_v47  ;;  %v2813_v52 = vpop.f32.mrf.mxu0  ;;  %3298 = vmatmul.mubr.bf16.gmra.mxu0 %v8251_v38 }
 0x14b   : > { %v3026_v53 = vpop.f32.mrf.mxu1  ;;  %3511 = vmatmul.mubr.bf16.gmra.mxu1 %v8254_v39  ;;  %3307 = vmatprep.mubr.bf16.mxu0 %v8265_v45  ;;  %v8301_v45 = vld [vmem:[%s9234_s13 + $0x55c] ss:$48 sps:$4 sm:$0xff]  }
 0x14c   : > { %v9833_v54 = vadd.f32 %v3026_v53, %v2813_v52  ;;  %3520 = vmatprep.mubr.bf16.mxu1 %v8268_v46  ;;  %v2815_v55 = vpop.f32.mrf.mxu0 }
 0x14d   : > { %v3028_v56 = vpop.f32.mrf.mxu1 }
 0x14e   : > { %v9837_v59 = vadd.f32 %v3028_v56, %v2815_v55  ;;  %v2817_v61 = vpop.f32.mrf.mxu0 }
 0x14f   : > { %v3030_v62 = vpop.f32.mrf.mxu1 }
 0x150   : > { %v9839_v63 = vadd.f32 %v3030_v62, %v2817_v61  ;;  %v2819_v3 = vpop.f32.mrf.mxu0  ;;  %v8299_v61 = vld [vmem:[%s9234_s13 + $0x558] ss:$48 sps:$4 sm:$0xff]  }
 0x151   : > { %v3032_v4 = vpop.f32.mrf.mxu1 }
 0x152   : > { %v9843_v5 = vadd.f32 %v3032_v4, %v2819_v3  ;;  %v2823_v6 = vpop.f32.mrf.mxu0  ;;  %3308 = vmatmul.mubr.bf16.gmra.mxu0 %v8263_v57  ;;  %v8310_v4 = vld [vmem:[%s9234_s13 + $0x5b4] ss:$48 sps:$4 sm:$0xff]  }
 0x153   : > { %v3036_v7 = vpop.f32.mrf.mxu1  ;;  %3521 = vmatmul.mubr.bf16.gmra.mxu1 %v8266_v58  ;;  %3317 = vmatprep.mubr.bf16.mxu0 %v8274_v0  ;;  %v8296_v58 = vld [vmem:[%s9234_s13 + $0x550] ss:$48 sps:$4 sm:$0xff]  }
 0x154   : > { %v9845_v9 = vadd.f32 %v3036_v7, %v2823_v6  ;;  %3530 = vmatprep.mubr.bf16.mxu1 %v8277_v2  ;;  %v2825_v10 = vpop.f32.mrf.mxu0  ;;  %v8313_v6 = vld [vmem:[%s9234_s13 + $0x5bc] ss:$48 sps:$4 sm:$0xff]  }
 0x155   : > { %v3038_v12 = vpop.f32.mrf.mxu1 }
 0x156   : > { %v9847_v13 = vadd.f32 %v3038_v12, %v2825_v10  ;;  %v2827_v17 = vpop.f32.mrf.mxu0 }
 0x157   : > { %v3040_v18 = vpop.f32.mrf.mxu1 }
 0x158   : > { %v9851_v20 = vadd.f32 %v3040_v18, %v2827_v17  ;;  %v2829_v23 = vpop.f32.mrf.mxu0 }
 0x159   : > { %v3042_v25 = vpop.f32.mrf.mxu1 }
 0x15a   : > { %v9855_v26 = vadd.f32 %v3042_v25, %v2829_v23  ;;  %v2833_v28 = vpop.f32.mrf.mxu0  ;;  %3318 = vmatmul.mubr.bf16.gmra.mxu0 %v8272_v14  ;;  %v8311_v23 = vld [vmem:[%s9234_s13 + $0x5b8] ss:$48 sps:$4 sm:$0xff]  }
 0x15b   : > { %v3046_v29 = vpop.f32.mrf.mxu1  ;;  %3531 = vmatmul.mubr.bf16.gmra.mxu1 %v8275_v15  ;;  %3327 = vmatprep.mubr.bf16.mxu0 %v8286_v21 }
 0x15c   : > { %v9857_v30 = vadd.f32 %v3046_v29, %v2833_v28  ;;  %3540 = vmatprep.mubr.bf16.mxu1 %v8289_v22  ;;  %v2835_v31 = vpop.f32.mrf.mxu0  ;;  %v8308_v22 = vld [vmem:[%s9234_s13 + $0x5b0] ss:$48 sps:$4 sm:$0xff]  }
 0x15d   : > { %v3048_v33 = vpop.f32.mrf.mxu1 }
 0x15e   : > { %v9859_v34 = vadd.f32 %v3048_v33, %v2835_v31  ;;  %v2837_v38 = vpop.f32.mrf.mxu0  ;;  %v8322_v33 = vld [vmem:[%s9234_s13 + $0x614] ss:$48 sps:$4 sm:$0xff]  }
 0x15f   : > { %v3050_v39 = vpop.f32.mrf.mxu1 }
 0x160   : > { %v9863_v42 = vadd.f32 %v3050_v39, %v2837_v38  ;;  %v2839_v46 = vpop.f32.mrf.mxu0 }
 0x161   : > { %v3052_v47 = vpop.f32.mrf.mxu1 }
 0x162   : > { %v9867_v49 = vadd.f32 %v3052_v47, %v2839_v46  ;;  %v2843_v52 = vpop.f32.mrf.mxu0  ;;  %3328 = vmatmul.mubr.bf16.gmra.mxu0 %v8284_v36  ;;  %v8325_v36 = vld [vmem:[%s9234_s13 + $0x61c] ss:$48 sps:$4 sm:$0xff]  }
 0x163   : > { %v3056_v53 = vpop.f32.mrf.mxu1  ;;  %3541 = vmatmul.mubr.bf16.gmra.mxu1 %v8287_v37  ;;  %3337 = vmatprep.mubr.bf16.mxu0 %v8298_v43 }
 0x164   : > { %v9869_v55 = vadd.f32 %v3056_v53, %v2843_v52  ;;  %3550 = vmatprep.mubr.bf16.mxu1 %v8301_v45  ;;  %v2845_v56 = vpop.f32.mrf.mxu0 }
 0x165   : > { %v3058_v57 = vpop.f32.mrf.mxu1 }
 0x166   : > { %v9873_v62 = vadd.f32 %v3058_v57, %v2845_v56  ;;  %v2847_v0 = vpop.f32.mrf.mxu0  ;;  %v8320_v56 = vld [vmem:[%s9234_s13 + $0x610] ss:$48 sps:$4 sm:$0xff]   ;;  %v8323_v57 = vld [vmem:[%s9234_s13 + $0x618] ss:$48 sps:$4 sm:$0xff]  }
 0x167   : > { %v3060_v2 = vpop.f32.mrf.mxu1 }
 0x168   : > { %v9875_v3 = vadd.f32 %v3060_v2, %v2847_v0  ;;  %v2849_v7 = vpop.f32.mrf.mxu0  ;;  %v8331_v2 = vld [vmem:[%s9234_s13 + $0x674] ss:$48 sps:$4 sm:$0xff]  }
 0x169   : > { %v3062_v10 = vpop.f32.mrf.mxu1 }
 0x16a   : > { %v9879_v12 = vadd.f32 %v3062_v10, %v2849_v7  ;;  %v2853_v14 = vpop.f32.mrf.mxu0  ;;  %3338 = vmatmul.mubr.bf16.gmra.mxu0 %v8296_v58 }
 0x16b   : > { %v3066_v15 = vpop.f32.mrf.mxu1  ;;  %3551 = vmatmul.mubr.bf16.gmra.mxu1 %v8299_v61  ;;  %3347 = vmatprep.mubr.bf16.mxu0 %v8310_v4  ;;  %v8334_v4 = vld [vmem:[%s9234_s13 + $0x67c] ss:$48 sps:$4 sm:$0xff]  }
 0x16c   : > { %v9881_v17 = vadd.f32 %v3066_v15, %v2853_v14  ;;  %3560 = vmatprep.mubr.bf16.mxu1 %v8313_v6  ;;  %v2855_v18 = vpop.f32.mrf.mxu0 }
 0x16d   : > { %v3068_v21 = vpop.f32.mrf.mxu1 }
 0x16e   : > { %v9885_v25 = vadd.f32 %v3068_v21, %v2855_v18  ;;  %v2857_v28 = vpop.f32.mrf.mxu0 }
 0x16f   : > { %v3070_v29 = vpop.f32.mrf.mxu1 }
 0x170   : > { %v9887_v31 = vadd.f32 %v3070_v29, %v2857_v28  ;;  %v2859_v37 = vpop.f32.mrf.mxu0  ;;  %v8329_v28 = vld [vmem:[%s9234_s13 + $0x670] ss:$48 sps:$4 sm:$0xff]   ;;  %v8332_v29 = vld [vmem:[%s9234_s13 + $0x678] ss:$48 sps:$4 sm:$0xff]  }
 0x171   : > { %v3072_v38 = vpop.f32.mrf.mxu1 }
 0x172   : > { %v9891_v39 = vadd.f32 %v3072_v38, %v2859_v37  ;;  %v2863_v43 = vpop.f32.mrf.mxu0  ;;  %3348 = vmatmul.mubr.bf16.gmra.mxu0 %v8308_v22  ;;  %v8343_v38 = vld [vmem:[%s9234_s13 + $0x24] ss:$48 sps:$4 sm:$0xff]  }
 0x173   : > { %v3076_v45 = vpop.f32.mrf.mxu1  ;;  %3561 = vmatmul.mubr.bf16.gmra.mxu1 %v8311_v23  ;;  %3357 = vmatprep.mubr.bf16.mxu0 %v8322_v33 }
 0x174   : > { %v9893_v46 = vadd.f32 %v3076_v45, %v2863_v43  ;;  %3570 = vmatprep.mubr.bf16.mxu1 %v8325_v36  ;;  %v2865_v47 = vpop.f32.mrf.mxu0  ;;  %v8346_v43 = vld [vmem:[%s9234_s13 + $0x2c] ss:$48 sps:$4 sm:$0xff]  }
 0x175   : > { %v3078_v52 = vpop.f32.mrf.mxu1 }
 0x176   : > { %v9895_v53 = vadd.f32 %v3078_v52, %v2865_v47  ;;  %v2867_v58 = vpop.f32.mrf.mxu0 }
 0x177   : > { %v3080_v61 = vpop.f32.mrf.mxu1 }
 0x178   : > { %v9899_v0 = vadd.f32 %v3080_v61, %v2867_v58  ;;  %v2869_v6 = vpop.f32.mrf.mxu0 }
 0x179   : > { %v3082_v7 = vpop.f32.mrf.mxu1 }
 0x17a   : > { %v9903_v10 = vadd.f32 %v3082_v7, %v2869_v6  ;;  %v2873_v14 = vpop.f32.mrf.mxu0  ;;  %3358 = vmatmul.mubr.bf16.gmra.mxu0 %v8320_v56  ;;  %v8344_v6 = vld [vmem:[%s9234_s13 + $0x28] ss:$48 sps:$4 sm:$0xff]  }
 0x17b   : > { %v3086_v15 = vpop.f32.mrf.mxu1  ;;  %3571 = vmatmul.mubr.bf16.gmra.mxu1 %v8323_v57  ;;  %3367 = vmatprep.mubr.bf16.mxu0 %v8331_v2 }
 0x17c   : > { %v9905_v18 = vadd.f32 %v3086_v15, %v2873_v14  ;;  %3580 = vmatprep.mubr.bf16.mxu1 %v8334_v4  ;;  %v2875_v21 = vpop.f32.mrf.mxu0  ;;  %v8341_v4 = vld [vmem:[%s9234_s13 + $0x20] ss:$48 sps:$4 sm:$0xff]  }
 0x17d   : > { %v3088_v22 = vpop.f32.mrf.mxu1 }
 0x17e   : > { %v9907_v23 = vadd.f32 %v3088_v22, %v2875_v21  ;;  %v2877_v33 = vpop.f32.mrf.mxu0  ;;  %v8347_v22 = vld [vmem:[%s11540_s3 + $0x70] ss:$8 sps:$4 sm:$0xff]  }
 0x17f   : > { %v3090_v36 = vpop.f32.mrf.mxu1 }
 0x180   : > { %v9911_v37 = vadd.f32 %v3090_v36, %v2877_v33  ;;  %v2879_v45 = vpop.f32.mrf.mxu0 }
 0x181   : > { %v3092_v47 = vpop.f32.mrf.mxu1 }
 0x182   : > { %v9915_v52 = vadd.f32 %v3092_v47, %v2879_v45  ;;  %v2883_v56 = vpop.f32.mrf.mxu0  ;;  %3368 = vmatmul.mubr.bf16.gmra.mxu0 %v8329_v28  ;;  %v8350_v28 = vld [vmem:[%s11540_s3 + $0x170] ss:$8 sps:$4 sm:$0xff]   ;;  %v8364_v45 = vld [vmem:[%s11540_s3 + $0x164] ss:$8 sps:$4 sm:$0xff]  }
 0x183   : > { %v3096_v57 = vpop.f32.mrf.mxu1  ;;  %3581 = vmatmul.mubr.bf16.gmra.mxu1 %v8332_v29  ;;  %3623 = vmatprep.mubr.bf16.mxu0 %v8343_v38  ;;  %v8355_v29 = vld [vmem:[%s9234_s13 + $0x84] ss:$48 sps:$4 sm:$0xff]   ;;  %v8358_v38 = vld [vmem:[%s9234_s13 + $0x8c] ss:$48 sps:$4 sm:$0xff]  }
 0x184   : > { %11544 = vst [vmem:[#allocation6_spill] sm:$0xff] %v9915_v52  ;;  %v9917_v58 = vadd.f32 %v3096_v57, %v2883_v56  ;;  %3836 = vmatprep.mubr.bf16.mxu1 %v8346_v43  ;;  %v2885_v61 = vpop.f32.mrf.mxu0  ;;  %v8361_v43 = vld [vmem:[%s11540_s3 + $0x64] ss:$8 sps:$4 sm:$0xff]   ;;  %v8359_v56 = vld [vmem:[%s11540_s3 + $0x60] ss:$8 sps:$4 sm:$0xff]  }
 0x185   : > { %v3098_v2 = vpop.f32.mrf.mxu1  ;;  %v8362_v57 = vld [vmem:[%s11540_s3 + $0x160] ss:$8 sps:$4 sm:$0xff]  }
 0x186   : > { %11545 = vst [vmem:[#allocation7_spill] sm:$0xff] %v9917_v58  ;;  %v9921_v7 = vadd.f32 %v3098_v2, %v2885_v61  ;;  %v2887_v14 = vpop.f32.mrf.mxu0 }
 0x187   : > { %v3100_v15 = vpop.f32.mrf.mxu1 }
 0x188   : > { %11546 = vst [vmem:[#allocation8_spill] sm:$0xff] %v9921_v7  ;;  %v9923_v21 = vadd.f32 %v3100_v15, %v2887_v14  ;;  %v2889_v33 = vpop.f32.mrf.mxu0  ;;  %v8373_v15 = vld [vmem:[%s11540_s3 + $0x54] ss:$8 sps:$4 sm:$0xff]   ;;  %v8371_v7 = vld [vmem:[%s11540_s3 + $0x50] ss:$8 sps:$4 sm:$0xff]  }
 0x189   : > { %v3102_v36 = vpop.f32.mrf.mxu1 }
 0x18a   : > { %11547 = vst [vmem:[#allocation9_spill] sm:$0xff] %v9923_v21  ;;  %v9939_v47 = vadd.f32 %v3102_v36, %v2889_v33  ;;  %v2893_v61 = vpop.f32.mrf.mxu0  ;;  %3624 = vmatmul.mubr.bf16.vlgmr.msra.gmra.mxu0 %v8341_v4  ;;  %v8382_v33 = vld [vmem:[%s11540_s3 + $0x154] ss:$8 sps:$4 sm:$0xff]   ;;  %v8353_v21 = vld [vmem:[%s9234_s13 + $0x80] ss:$48 sps:$4 sm:$0xff]  }
 0x18b   : > { %v3106_v2 = vpop.f32.mrf.mxu1  ;;  %3837 = vmatmul.mubr.bf16.vlgmr.msra.gmra.mxu1 %v8344_v6  ;;  %5314 = vmatpush1.bf16.msra.mxu0 %v8347_v22  ;;  %v8356_v4 = vld [vmem:[%s9234_s13 + $0x88] ss:$48 sps:$4 sm:$0xff]  }
 0x18c   : > { %11548 = vst [vmem:[#allocation10_spill] sm:$0xff] %v9939_v47  ;;  %v9947_v14 = vadd.f32 %v3106_v2, %v2893_v61  ;;  %5521 = vmatpush1.bf16.msra.mxu1 %v8350_v28  ;;  %v2895_v36 = vpop.f32.mrf.mxu0  ;;  %3633 = vmatprep.mubr.bf16.mxu0 %v8355_v29  ;;  %v8367_v2 = vld [vmem:[%s9234_s13 + $0xe4] ss:$48 sps:$4 sm:$0xff]  }
 0x18d   : > { %v3108_v47 = vpop.f32.mrf.mxu1  ;;  %3846 = vmatprep.mubr.bf16.mxu1 %v8358_v38  ;;  %5315 = vmatprep.subr.bf16.mxu0 %v8361_v43  ;;  %v8380_v38 = vld [vmem:[%s11540_s3 + $0x150] ss:$8 sps:$4 sm:$0xff]   ;;  %v8385_v43 = vld [vmem:[%s11540_s3 + $0x44] ss:$8 sps:$4 sm:$0xff]  }
 0x18e   : > { %11549 = vst [vmem:[#allocation11_spill] sm:$0xff] %v9947_v14  ;;  %v9957_v6 = vadd.f32 %v3108_v47, %v2895_v36  ;;  %5522 = vmatprep.subr.bf16.mxu1 %v8364_v45  ;;  %v2897_v22 = vpop.f32.mrf.mxu0  ;;  %v8370_v14 = vld [vmem:[%s9234_s13 + $0xec] ss:$48 sps:$4 sm:$0xff]   ;;  %v8392_v36 = vld [vmem:[%s11540_s3 + $0x140] ss:$8 sps:$4 sm:$0xff]  }
 0x18f   : > { %v3110_v28 = vpop.f32.mrf.mxu1  ;;  %5316 = vmatpush1.bf16.msra.mxu0 %v8359_v56  ;;  %v8394_v45 = vld [vmem:[%s11540_s3 + $0x144] ss:$8 sps:$4 sm:$0xff]  }
 0x190   : > { %11550 = vst [vmem:[#allocation12_spill] sm:$0xff] %v9957_v6  ;;  %v9959_v61 = vadd.f32 %v3110_v28, %v2897_v22  ;;  %5523 = vmatpush1.bf16.msra.mxu1 %v8362_v57  ;;  %v2899_v58 = vpop.f32.mrf.mxu0  ;;  %5317 = vmatprep.subr.bf16.mxu0 %v8373_v15  ;;  %v8365_v28 = vld [vmem:[%s9234_s13 + $0xe0] ss:$48 sps:$4 sm:$0xff]  }
 0x191   : > { %v3112_v29 = vpop.f32.mrf.mxu1  ;;  %5524 = vmatprep.subr.bf16.mxu1 %v8382_v33  ;;  %v8383_v33 = vld [vmem:[%s11540_s3 + $0x40] ss:$8 sps:$4 sm:$0xff]  }
 0x192   : > { %11551 = vst [vmem:[#allocation13_spill] sm:$0xff] %v9959_v61  ;;  %v9975_v47 = vadd.f32 %v3112_v29, %v2899_v58  ;;  %v2903_v56 = vpop.f32.mrf.mxu0  ;;  %3634 = vmatmul.mubr.bf16.gmra.mxu0 %v8353_v21  ;;  %v8368_v29 = vld [vmem:[%s9234_s13 + $0xe8] ss:$48 sps:$4 sm:$0xff]   ;;  %v8397_v21 = vld [vmem:[%s11540_s3 + $0x34] ss:$8 sps:$4 sm:$0xff]  }
 0x193   : > { %v3116_v57 = vpop.f32.mrf.mxu1  ;;  %3847 = vmatmul.mubr.bf16.gmra.mxu1 %v8356_v4  ;;  %3643 = vmatprep.mubr.bf16.mxu0 %v8367_v2  ;;  %v8379_v2 = vld [vmem:[%s9234_s13 + $0x14c] ss:$48 sps:$4 sm:$0xff]  }
 0x194   : > { %11552 = vst [vmem:[#allocation14_spill] sm:$0xff] %v9975_v47  ;;  %v9977_v15 = vadd.f32 %v3116_v57, %v2903_v56  ;;  %3856 = vmatprep.mubr.bf16.mxu1 %v8370_v14  ;;  %v2905_v58 = vpop.f32.mrf.mxu0  ;;  %5318 = vmatpush1.bf16.msra.mxu0 %v8371_v7  ;;  %v8376_v14 = vld [vmem:[%s9234_s13 + $0x144] ss:$48 sps:$4 sm:$0xff]   ;;  %v8395_v7 = vld [vmem:[%s11540_s3 + $0x30] ss:$8 sps:$4 sm:$0xff]  }
 0x195   : > { %v3118_v22 = vpop.f32.mrf.mxu1  ;;  %5525 = vmatpush1.bf16.msra.mxu1 %v8380_v38  ;;  %5319 = vmatprep.subr.bf16.mxu0 %v8385_v43  ;;  %v8406_v56 = vld [vmem:[%s11540_s3 + $0x134] ss:$8 sps:$4 sm:$0xff]   ;;  %v8404_v38 = vld [vmem:[%s11540_s3 + $0x130] ss:$8 sps:$4 sm:$0xff]   ;;  %v8409_v43 = vld [vmem:[%s11540_s3 + $0x24] ss:$8 sps:$4 sm:$0xff]  }
 0x196   : > { %11553 = vst [vmem:[#allocation15_spill] sm:$0xff] %v9977_v15  ;;  %v9990_v4 = vadd.f32 %v3118_v22, %v2905_v58  ;;  %5526 = vmatprep.subr.bf16.mxu1 %v8394_v45  ;;  %v2907_v57 = vpop.f32.mrf.mxu0  ;;  %v8418_v45 = vld [vmem:[%s11540_s3 + $0x124] ss:$8 sps:$4 sm:$0xff]   ;;  %v8451_v61 = vld [vmem:[%s11540_s3 + $0xf4] ss:$8 sps:$4 sm:$0xff]  }
 0x197   : > { %v3120_v15 = vpop.f32.mrf.mxu1 }
 0x198   : > { %11554 = vst [vmem:[#allocation16_spill] sm:$0xff] %v9990_v4  ;;  %v9997_v47 = vadd.f32 %v3120_v15, %v2907_v57  ;;  %v2909_v58 = vpop.f32.mrf.mxu0  ;;  %5320 = vmatpush1.bf16.msra.mxu0 %v8383_v33  ;;  %v8407_v33 = vld [vmem:[%s11540_s3 + $0x20] ss:$8 sps:$4 sm:$0xff]  }
 0x199   : > { %v3122_v22 = vpop.f32.mrf.mxu1  ;;  %5527 = vmatpush1.bf16.msra.mxu1 %v8392_v36  ;;  %5321 = vmatprep.subr.bf16.mxu0 %v8397_v21  ;;  %v8416_v36 = vld [vmem:[%s11540_s3 + $0x120] ss:$8 sps:$4 sm:$0xff]  }
 0x19a   : > { %11555 = vst [vmem:[#allocation17_spill] sm:$0xff] %v9997_v47  ;;  %v10011_v15 = vadd.f32 %v3122_v22, %v2909_v58  ;;  %5528 = vmatprep.subr.bf16.mxu1 %v8406_v56  ;;  %v2913_v57 = vpop.f32.mrf.mxu0  ;;  %3644 = vmatmul.mubr.bf16.gmra.mxu0 %v8365_v28  ;;  %v8374_v58 = vld [vmem:[%s9234_s13 + $0x140] ss:$48 sps:$4 sm:$0xff]   ;;  %v8377_v22 = vld [vmem:[%s9234_s13 + $0x148] ss:$48 sps:$4 sm:$0xff]  }
 0x19b   : > { %v3126_v47 = vpop.f32.mrf.mxu1  ;;  %3857 = vmatmul.mubr.bf16.gmra.mxu1 %v8368_v29  ;;  %3653 = vmatprep.mubr.bf16.mxu0 %v8376_v14  ;;  %v8421_v29 = vld [vmem:[%s11540_s3 + $0x14] ss:$8 sps:$4 sm:$0xff]  }
 0x19c   : > { %11556 = vst [vmem:[#allocation18_spill] sm:$0xff] %v10011_v15  ;;  %v10019_v4 = vadd.f32 %v3126_v47, %v2913_v57  ;;  %3866 = vmatprep.mubr.bf16.mxu1 %v8379_v2  ;;  %v2915_v21 = vpop.f32.mrf.mxu0  ;;  %5322 = vmatpush1.bf16.msra.mxu0 %v8395_v7  ;;  %v8430_v47 = vld [vmem:[%s11540_s3 + $0x114] ss:$8 sps:$4 sm:$0xff]  }
 0x19d   : > { %v3128_v56 = vpop.f32.mrf.mxu1  ;;  %5529 = vmatpush1.bf16.msra.mxu1 %v8404_v38  ;;  %5323 = vmatprep.subr.bf16.mxu0 %v8409_v43  ;;  %v8391_v15 = vld [vmem:[%s9234_s13 + $0x1ac] ss:$48 sps:$4 sm:$0xff]   ;;  %v8419_v43 = vld [vmem:[%s11540_s3 + $0x10] ss:$8 sps:$4 sm:$0xff]  }
 0x19e   : > { %11557 = vst [vmem:[#allocation19_spill] sm:$0xff] %v10019_v4  ;;  %v10023_v28 = vadd.f32 %v3128_v56, %v2915_v21  ;;  %5530 = vmatprep.subr.bf16.mxu1 %v8418_v45  ;;  %v2917_v14 = vpop.f32.mrf.mxu0  ;;  %v8388_v4 = vld [vmem:[%s9234_s13 + $0x1a4] ss:$48 sps:$4 sm:$0xff]   ;;  %v8428_v45 = vld [vmem:[%s11540_s3 + $0x110] ss:$8 sps:$4 sm:$0xff]  }
 0x19f   : > { %v3130_v2 = vpop.f32.mrf.mxu1  ;;  %v8439_v56 = vld [vmem:[%s11540_s3 + $0x4] ss:$8 sps:$4 sm:$0xff]  }
 0x1a0   : > { %11558 = vst [vmem:[#allocation20_spill] sm:$0xff] %v10023_v28  ;;  %v10031_v57 = vadd.f32 %v3130_v2, %v2917_v14  ;;  %v2919_v7 = vpop.f32.mrf.mxu0  ;;  %5324 = vmatpush1.bf16.msra.mxu0 %v8407_v33  ;;  %v8442_v33 = vld [vmem:[%s11540_s3 + $0x104] ss:$8 sps:$4 sm:$0xff]  }
 0x1a1   : > { %v3132_v38 = vpop.f32.mrf.mxu1  ;;  %5531 = vmatpush1.bf16.msra.mxu1 %v8416_v36  ;;  %5325 = vmatprep.subr.bf16.mxu0 %v8421_v29  ;;  %v8437_v29 = vld [vmem:[%s11540_s3] ss:$8 sps:$4 sm:$0xff]   ;;  %v8403_v28 = vld [vmem:[%s9234_s13 + $0x20c] ss:$48 sps:$4 sm:$0xff]  }
 0x1a2   : > { %11559 = vst [vmem:[#allocation21_spill] sm:$0xff] %v10031_v57  ;;  %v10041_v21 = vadd.f32 %v3132_v38, %v2919_v7  ;;  %5532 = vmatprep.subr.bf16.mxu1 %v8430_v47  ;;  %v2923_v36 = vpop.f32.mrf.mxu0  ;;  %3654 = vmatmul.mubr.bf16.gmra.mxu0 %v8374_v58  ;;  %v8440_v47 = vld [vmem:[%s11540_s3 + $0x100] ss:$8 sps:$4 sm:$0xff]  }
 0x1a3   : > { %v3136_v14 = vpop.f32.mrf.mxu1  ;;  %3867 = vmatmul.mubr.bf16.gmra.mxu1 %v8377_v22  ;;  %3663 = vmatprep.mubr.bf16.mxu0 %v8388_v4  ;;  %v8389_v57 = vld [vmem:[%s9234_s13 + $0x1a8] ss:$48 sps:$4 sm:$0xff]   ;;  %v8400_v22 = vld [vmem:[%s9234_s13 + $0x204] ss:$48 sps:$4 sm:$0xff]  }
 0x1a4   : > { %11560 = vst [vmem:[#allocation22_spill] sm:$0xff] %v10041_v21  ;;  %v10055_v2 = vadd.f32 %v3136_v14, %v2923_v36  ;;  %3876 = vmatprep.mubr.bf16.mxu1 %v8391_v15  ;;  %v2925_v7 = vpop.f32.mrf.mxu0  ;;  %v8386_v21 = vld [vmem:[%s9234_s13 + $0x1a0] ss:$48 sps:$4 sm:$0xff]   ;;  %5326 = vmatpush1.bf16.msra.mxu0 %v8419_v43  ;;  %v8454_v4 = vld [vmem:[%s11540_s3 + $0x1f4] ss:$8 sps:$4 sm:$0xff]  }
 0x1a5   : > { %v3138_v38 = vpop.f32.mrf.mxu1  ;;  %5533 = vmatpush1.bf16.msra.mxu1 %v8428_v45  ;;  %5327 = vmatprep.subr.bf16.mxu0 %v8439_v56  ;;  %v8449_v43 = vld [vmem:[%s11540_s3 + $0xf0] ss:$8 sps:$4 sm:$0xff]  }
 0x1a6   : > { %11561 = vst [vmem:[#allocation23_spill] sm:$0xff] %v10055_v2  ;;  %v10059_v58 = vadd.f32 %v3138_v38, %v2925_v7  ;;  %5534 = vmatprep.subr.bf16.mxu1 %v8442_v33  ;;  %v2927_v15 = vpop.f32.mrf.mxu0  ;;  %v8452_v45 = vld [vmem:[%s11540_s3 + $0x1f0] ss:$8 sps:$4 sm:$0xff]   ;;  %v8463_v7 = vld [vmem:[%s11540_s3 + $0xe4] ss:$8 sps:$4 sm:$0xff]  }
 0x1a7   : > { %v3140_v36 = vpop.f32.mrf.mxu1  ;;  %v8466_v38 = vld [vmem:[%s11540_s3 + $0x1e4] ss:$8 sps:$4 sm:$0xff]   ;;  %v8473_v2 = vld [vmem:[%s11540_s3 + $0xd0] ss:$8 sps:$4 sm:$0xff]  }
 0x1a8   : > { %11562 = vst [vmem:[#allocation24_spill] sm:$0xff] %v10059_v58  ;;  %v10069_v14 = vadd.f32 %v3140_v36, %v2927_v15  ;;  %v2929_v56 = vpop.f32.mrf.mxu0  ;;  %5328 = vmatpush1.bf16.msra.mxu0 %v8437_v29  ;;  %v8461_v29 = vld [vmem:[%s11540_s3 + $0xe0] ss:$8 sps:$4 sm:$0xff]  }
 0x1a9   : > { %v3142_v33 = vpop.f32.mrf.mxu1  ;;  %5535 = vmatpush1.bf16.msra.mxu1 %v8440_v47  ;;  %5329 = vmatprep.subr.bf16.mxu0 %v8451_v61  ;;  %v8464_v47 = vld [vmem:[%s11540_s3 + $0x1e0] ss:$8 sps:$4 sm:$0xff]   ;;  %v8475_v61 = vld [vmem:[%s11540_s3 + $0xd4] ss:$8 sps:$4 sm:$0xff]  }
 0x1aa   : > { %11563 = vst [vmem:[#allocation25_spill] sm:$0xff] %v10069_v14  ;;  %v10083_v15 = vadd.f32 %v3142_v33, %v2929_v56  ;;  %5536 = vmatprep.subr.bf16.mxu1 %v8454_v4  ;;  %v2933_v36 = vpop.f32.mrf.mxu0  ;;  %3664 = vmatmul.mubr.bf16.gmra.mxu0 %v8386_v21  ;;  %v8398_v56 = vld [vmem:[%s9234_s13 + $0x200] ss:$48 sps:$4 sm:$0xff]   ;;  %v8401_v33 = vld [vmem:[%s9234_s13 + $0x208] ss:$48 sps:$4 sm:$0xff]  }
 0x1ab   : > { %v3146_v14 = vpop.f32.mrf.mxu1  ;;  %3877 = vmatmul.mubr.bf16.gmra.mxu1 %v8389_v57  ;;  %3673 = vmatprep.mubr.bf16.mxu0 %v8400_v22  ;;  %v8484_v57 = vld [vmem:[%s11540_s3 + $0x1d4] ss:$8 sps:$4 sm:$0xff]  }
 0x1ac   : > { %11564 = vst [vmem:[#allocation26_spill] sm:$0xff] %v10083_v15  ;;  %v10091_v58 = vadd.f32 %v3146_v14, %v2933_v36  ;;  %3886 = vmatprep.mubr.bf16.mxu1 %v8403_v28  ;;  %v2935_v21 = vpop.f32.mrf.mxu0  ;;  %5330 = vmatpush2.bf16.msra.mxu0 %v8449_v43  ;;  %v8415_v15 = vld [vmem:[%s9234_s13 + $0x26c] ss:$48 sps:$4 sm:$0xff]   ;;  %v8482_v43 = vld [vmem:[%s11540_s3 + $0x1d0] ss:$8 sps:$4 sm:$0xff]  }
 0x1ad   : > { %v3148_v4 = vpop.f32.mrf.mxu1  ;;  %5537 = vmatpush2.bf16.msra.mxu1 %v8452_v45  ;;  %5331 = vmatprep.subr.bf16.mxu0 %v8463_v7  ;;  %v8487_v45 = vld [vmem:[%s11540_s3 + $0xc4] ss:$8 sps:$4 sm:$0xff]  }
 0x1ae   : > { %11565 = vst [vmem:[#allocation27_spill] sm:$0xff] %v10091_v58  ;;  %v10101_v14 = vadd.f32 %v3148_v4, %v2935_v21  ;;  %5538 = vmatprep.subr.bf16.mxu1 %v8466_v38  ;;  %v2937_v28 = vpop.f32.mrf.mxu0  ;;  %v8412_v58 = vld [vmem:[%s9234_s13 + $0x264] ss:$48 sps:$4 sm:$0xff]   ;;  %v8485_v21 = vld [vmem:[%s11540_s3 + $0xc0] ss:$8 sps:$4 sm:$0xff]  }
 0x1af   : > { %v3150_v22 = vpop.f32.mrf.mxu1  ;;  %v8496_v7 = vld [vmem:[%s11540_s3 + $0x1c4] ss:$8 sps:$4 sm:$0xff]   ;;  %v8494_v4 = vld [vmem:[%s11540_s3 + $0x1c0] ss:$8 sps:$4 sm:$0xff]  }
 0x1b0   : > { %11566 = vst [vmem:[#allocation28_spill] sm:$0xff] %v10101_v14  ;;  %v10103_v36 = vadd.f32 %v3150_v22, %v2937_v28  ;;  %v2939_v6 = vpop.f32.mrf.mxu0  ;;  %5332 = vmatpush2.bf16.msra.mxu0 %v8461_v29 }
 0x1b1   : > { %v3152_v52 = vpop.f32.mrf.mxu1  ;;  %5539 = vmatpush2.bf16.msra.mxu1 %v8464_v47  ;;  %5333 = vmatprep.subr.bf16.mxu0 %v8475_v61 }
 0x1b2   : > { %11567 = vst [vmem:[#allocation29_spill] sm:$0xff] %v10103_v36  ;;  %v10119_v38 = vadd.f32 %v3152_v52, %v2939_v6  ;;  %5540 = vmatprep.subr.bf16.mxu1 %v8484_v57  ;;  %v2943_v29 = vpop.f32.mrf.mxu0  ;;  %3674 = vmatmul.mubr.bf16.gmra.mxu0 %v8398_v56  ;;  %v8499_v52 = vld [vmem:[%s11540_s3 + $0xb4] ss:$8 sps:$4 sm:$0xff]   ;;  %v8410_v56 = vld [vmem:[%s9234_s13 + $0x260] ss:$48 sps:$4 sm:$0xff]  }
 0x1b3   : > { %v3156_v47 = vpop.f32.mrf.mxu1  ;;  %3887 = vmatmul.mubr.bf16.gmra.mxu1 %v8401_v33  ;;  %3683 = vmatprep.mubr.bf16.mxu0 %v8412_v58  ;;  %v8508_v6 = vld [vmem:[%s11540_s3 + $0x1b4] ss:$8 sps:$4 sm:$0xff]   ;;  %v8413_v33 = vld [vmem:[%s9234_s13 + $0x268] ss:$48 sps:$4 sm:$0xff]  }
 0x1b4   : > { %11568 = vst [vmem:[#allocation30_spill] sm:$0xff] %v10119_v38  ;;  %v10127_v28 = vadd.f32 %v3156_v47, %v2943_v29  ;;  %3896 = vmatprep.mubr.bf16.mxu1 %v8415_v15  ;;  %v2945_v61 = vpop.f32.mrf.mxu0  ;;  %5334 = vmatpush2.bf16.msra.mxu0 %v8473_v2  ;;  %v8424_v47 = vld [vmem:[%s9234_s13 + $0x2c4] ss:$48 sps:$4 sm:$0xff]   ;;  %v8497_v38 = vld [vmem:[%s11540_s3 + $0xb0] ss:$8 sps:$4 sm:$0xff]  }
 0x1b5   : > { %v3158_v57 = vpop.f32.mrf.mxu1  ;;  %5541 = vmatpush2.bf16.msra.mxu1 %v8482_v43  ;;  %5335 = vmatprep.subr.bf16.mxu0 %v8487_v45  ;;  %v8506_v2 = vld [vmem:[%s11540_s3 + $0x1b0] ss:$8 sps:$4 sm:$0xff]   ;;  %v8511_v43 = vld [vmem:[%s11540_s3 + $0xa4] ss:$8 sps:$4 sm:$0xff]  }
 0x1b6   : > { %11569 = vst [vmem:[#allocation31_spill] sm:$0xff] %v10127_v28  ;;  %v10137_v22 = vadd.f32 %v3158_v57, %v2945_v61  ;;  %5542 = vmatprep.subr.bf16.mxu1 %v8496_v7  ;;  %v2947_v58 = vpop.f32.mrf.mxu0  ;;  %v8427_v28 = vld [vmem:[%s9234_s13 + $0x2cc] ss:$48 sps:$4 sm:$0xff]  }
 0x1b7   : > { %v3160_v15 = vpop.f32.mrf.mxu1  ;;  %v8520_v45 = vld [vmem:[%s11540_s3 + $0x1a4] ss:$8 sps:$4 sm:$0xff]  }
 0x1b8   : > { %v10139_v29 = vadd.f32 %v3160_v15, %v2947_v58  ;;  %v2949_v36 = vpop.f32.mrf.mxu0  ;;  %5336 = vmatpush2.bf16.msra.mxu0 %v8485_v21  ;;  %v8425_v15 = vld [vmem:[%s9234_s13 + $0x2c8] ss:$48 sps:$4 sm:$0xff]  }
 0x1b9   : > { %v3162_v14 = vpop.f32.mrf.mxu1  ;;  %5543 = vmatpush2.bf16.msra.mxu1 %v8494_v4  ;;  %5337 = vmatprep.subr.bf16.mxu0 %v8499_v52 }
 0x1ba   : > { %v10155_v7 = vadd.f32 %v3162_v14, %v2949_v36  ;;  %5544 = vmatprep.subr.bf16.mxu1 %v8508_v6  ;;  %v3199_v61 = vpop.f32.mrf.mxu0  ;;  %3684 = vmatmul.mubr.bf16.gmra.mxu0 %v8410_v56  ;;  %v8509_v14 = vld [vmem:[%s11540_s3 + $0xa0] ss:$8 sps:$4 sm:$0xff]  }
 0x1bb   : > { %v3412_v57 = vpop.f32.mrf.mxu1  ;;  %3897 = vmatmul.mubr.bf16.gmra.mxu1 %v8413_v33  ;;  %v3200_v21 = vadd.f32 %v3199_v61, %v9755_v41  ;;  %3693 = vmatprep.mubr.bf16.mxu0 %v8424_v47  ;;  %v8518_v36 = vld [vmem:[%s11540_s3 + $0x1a0] ss:$8 sps:$4 sm:$0xff]   ;;  %v8433_v61 = vld [vmem:[%s9234_s13 + $0x324] ss:$48 sps:$4 sm:$0xff]  }
 0x1bc   : > { %3906 = vmatprep.mubr.bf16.mxu1 %v8427_v28  ;;  %v3201_v4 = vpop.f32.mrf.mxu0  ;;  %5338 = vmatpush2.bf16.msra.mxu0 %v8497_v38  ;;  %v8523_v38 = vld [vmem:[%s11540_s3 + $0x94] ss:$8 sps:$4 sm:$0xff]   ;;  %v8422_v33 = vld [vmem:[%s9234_s13 + $0x2c0] ss:$48 sps:$4 sm:$0xff]  }
 0x1bd   : > { %v3414_v58 = vpop.f32.mrf.mxu1  ;;  %5545 = vmatpush2.bf16.msra.mxu1 %v8506_v2  ;;  %v10164_v52 = vadd.f32 %v3412_v57, %v3200_v21  ;;  %v3202_v41 = vadd.f32 %v3201_v4, %v9765_v48  ;;  %5339 = vmatprep.subr.bf16.mxu0 %v8511_v43  ;;  %v8532_v28 = vld [vmem:[%s11540_s3 + $0x194] ss:$8 sps:$4 sm:$0xff]   ;;  %v8521_v57 = vld [vmem:[%s11540_s3 + $0x90] ss:$8 sps:$4 sm:$0xff]  }
 0x1be   : > { %5546 = vmatprep.subr.bf16.mxu1 %v8520_v45  ;;  %v3203_v6 = vpop.f32.mrf.mxu0  ;;  %v8436_v48 = vld [vmem:[%s9234_s13 + $0x32c] ss:$48 sps:$4 sm:$0xff]   ;;  %v8530_v21 = vld [vmem:[%s11540_s3 + $0x190] ss:$8 sps:$4 sm:$0xff]  }
 0x1bf   : > { %v3416_v56 = vpop.f32.mrf.mxu1  ;;  %v10175_v47 = vadd.f32 %v3414_v58, %v3202_v41  ;;  %v3204_v2 = vadd.f32 %v3203_v6, %v9767_v51  ;;  %v8541_v51 = vld [vmem:[%s11540_s3 + $0x84] ss:$8 sps:$4 sm:$0xff]  }
 0x1c0   : > { %v3205_v43 = vpop.f32.mrf.mxu0  ;;  %5340 = vmatpush2.bf16.msra.mxu0 %v8509_v14  ;;  %v8544_v14 = vld [vmem:[%s11540_s3 + $0x184] ss:$8 sps:$4 sm:$0xff]  }
 0x1c1   : > { %v3418_v45 = vpop.f32.mrf.mxu1  ;;  %5547 = vmatpush2.bf16.msra.mxu1 %v8518_v36  ;;  %v10186_v4 = vadd.f32 %v3416_v56, %v3204_v2  ;;  %v3206_v58 = vadd.f32 %v3205_v43, %v9783_v60  ;;  %5341 = vmatprep.subr.bf16.mxu0 %v8523_v38  ;;  %v8553_v2 = vld [vmem:[%s11540_s3 + $0x274] ss:$8 sps:$4 sm:$0xff]  }
 0x1c2   : > { %5548 = vmatprep.subr.bf16.mxu1 %v8532_v28  ;;  %v3209_v36 = vpop.f32.mrf.mxu0  ;;  %3694 = vmatmul.mubr.bf16.gmra.mxu0 %v8422_v33  ;;  %v8539_v28 = vld [vmem:[%s11540_s3 + $0x80] ss:$8 sps:$4 sm:$0xff]  }
 0x1c3   : > { %v3422_v41 = vpop.f32.mrf.mxu1  ;;  %3907 = vmatmul.mubr.bf16.gmra.mxu1 %v8425_v15  ;;  %v10195_v6 = vadd.f32 %v3418_v45, %v3206_v58  ;;  %v3210_v56 = vadd.f32 %v3209_v36, %v9791_v1  ;;  %3703 = vmatprep.mubr.bf16.mxu0 %v8433_v61  ;;  %v8542_v33 = vld [vmem:[%s11540_s3 + $0x180] ss:$8 sps:$4 sm:$0xff]   ;;  %v8556_v61 = vld [vmem:[%s11540_s3 + $0x74] ss:$8 sps:$4 sm:$0xff]  }
 0x1c4   : > { %3916 = vmatprep.mubr.bf16.mxu1 %v8436_v48  ;;  %v3211_v60 = vpop.f32.mrf.mxu0  ;;  %5342 = vmatpush2.bf16.msra.mxu0 %v8521_v57  ;;  %v8431_v45 = vld [vmem:[%s9234_s13 + $0x320] ss:$48 sps:$4 sm:$0xff]   ;;  %v8434_v57 = vld [vmem:[%s9234_s13 + $0x328] ss:$48 sps:$4 sm:$0xff]   ;;  %v8445_v36 = vld [vmem:[%s9234_s13 + $0x384] ss:$48 sps:$4 sm:$0xff]  }
 0x1c5   : > { %v3424_v38 = vpop.f32.mrf.mxu1  ;;  %5549 = vmatpush2.bf16.msra.mxu1 %v8530_v21  ;;  %v10204_v15 = vadd.f32 %v3422_v41, %v3210_v56  ;;  %v3212_v1 = vadd.f32 %v3211_v60, %v9801_v8  ;;  %5343 = vmatprep.subr.bf16.mxu0 %v8541_v51  ;;  %v8448_v8 = vld [vmem:[%s9234_s13 + $0x38c] ss:$48 sps:$4 sm:$0xff]  }
 0x1c6   : > { %5550 = vmatprep.subr.bf16.mxu1 %v8544_v14  ;;  %v3213_v48 = vpop.f32.mrf.mxu0 }
 0x1c7   : > { %11570 = vst [vmem:[#allocation32_spill] sm:$0xff] %v10204_v15  ;;  %v3426_v43 = vpop.f32.mrf.mxu1  ;;  %v10215_v21 = vadd.f32 %v3424_v38, %v3212_v1  ;;  %v3214_v58 = vadd.f32 %v3213_v48, %v9803_v11  ;;  %v8443_v48 = vld [vmem:[%s9234_s13 + $0x380] ss:$48 sps:$4 sm:$0xff]  }
 0x1c8   : > { %v3215_v51 = vpop.f32.mrf.mxu0  ;;  %5344 = vmatpush2.bf16.msra.mxu0 %v8539_v28 }
 0x1c9   : > { %v3428_v14 = vpop.f32.mrf.mxu1  ;;  %5551 = vmatpush2.bf16.msra.mxu1 %v8542_v33  ;;  %v10220_v41 = vadd.f32 %v3426_v43, %v3214_v58  ;;  %v3216_v56 = vadd.f32 %v3215_v51, %v9807_v16  ;;  %5727 = vmatprep.subr.bf16.mxu0 %v8553_v2  ;;  %v8446_v43 = vld [vmem:[%s9234_s13 + $0x388] ss:$48 sps:$4 sm:$0xff]   ;;  %v8457_v58 = vld [vmem:[%s9234_s13 + $0x3e4] ss:$48 sps:$4 sm:$0xff]   ;;  %v8460_v51 = vld [vmem:[%s9234_s13 + $0x3ec] ss:$48 sps:$4 sm:$0xff]  }
 0x1ca   : > { %6774 = vmatprep.subr.bf16.mxu1 %v8556_v61  ;;  %v3219_v60 = vpop.f32.mrf.mxu0  ;;  %3704 = vmatmul.mubr.bf16.gmra.mxu0 %v8431_v45 }
 0x1cb   : > { %v3432_v15 = vpop.f32.mrf.mxu1  ;;  %3917 = vmatmul.mubr.bf16.gmra.mxu1 %v8434_v57  ;;  %v10223_v11 = vadd.f32 %v3428_v14, %v3216_v56  ;;  %v3220_v38 = vadd.f32 %v3219_v60, %v9809_v19  ;;  %3713 = vmatprep.mubr.bf16.mxu0 %v8445_v36 }
 0x1cc   : > { %3926 = vmatprep.mubr.bf16.mxu1 %v8448_v8  ;;  %v3221_v28 = vpop.f32.mrf.mxu0 }
 0x1cd   : > { %v3434_v33 = vpop.f32.mrf.mxu1  ;;  %v10226_v1 = vadd.f32 %v3432_v15, %v3220_v38  ;;  %v3222_v16 = vadd.f32 %v3221_v28, %v9813_v24 }
 0x1ce   : > { %v3223_v2 = vpop.f32.mrf.mxu0 }
 0x1cf   : > { %v3436_v61 = vpop.f32.mrf.mxu1  ;;  %v10231_v45 = vadd.f32 %v3434_v33, %v3222_v16  ;;  %v3224_v57 = vadd.f32 %v3223_v2, %v9815_v27  ;;  %v8455_v2 = vld [vmem:[%s9234_s13 + $0x3e0] ss:$48 sps:$4 sm:$0xff]  }
 0x1d0   : > { %v3225_v14 = vpop.f32.mrf.mxu0 }
 0x1d1   : > { %v3438_v19 = vpop.f32.mrf.mxu1  ;;  %v10236_v36 = vadd.f32 %v3436_v61, %v3224_v57  ;;  %v3226_v15 = vadd.f32 %v3225_v14, %v9819_v32  ;;  %v8458_v61 = vld [vmem:[%s9234_s13 + $0x3e8] ss:$48 sps:$4 sm:$0xff]   ;;  %v8469_v57 = vld [vmem:[%s9234_s13 + $0x444] ss:$48 sps:$4 sm:$0xff]   ;;  %v8472_v14 = vld [vmem:[%s9234_s13 + $0x44c] ss:$48 sps:$4 sm:$0xff]  }
 0x1d2   : > { %v3229_v8 = vpop.f32.mrf.mxu0  ;;  %3714 = vmatmul.mubr.bf16.gmra.mxu0 %v8443_v48 }
 0x1d3   : > { %v3442_v24 = vpop.f32.mrf.mxu1  ;;  %3927 = vmatmul.mubr.bf16.gmra.mxu1 %v8446_v43  ;;  %v10239_v56 = vadd.f32 %v3438_v19, %v3226_v15  ;;  %v3230_v27 = vadd.f32 %v3229_v8, %v9821_v35  ;;  %3723 = vmatprep.mubr.bf16.mxu0 %v8457_v58 }
 0x1d4   : > { %3936 = vmatprep.mubr.bf16.mxu1 %v8460_v51  ;;  %v3231_v60 = vpop.f32.mrf.mxu0 }
 0x1d5   : > { %v3444_v38 = vpop.f32.mrf.mxu1  ;;  %v10242_v28 = vadd.f32 %v3442_v24, %v3230_v27  ;;  %v3232_v33 = vadd.f32 %v3231_v60, %v9825_v40 }
 0x1d6   : > { %v3233_v32 = vpop.f32.mrf.mxu0 }
 0x1d7   : > { %v3446_v16 = vpop.f32.mrf.mxu1  ;;  %v10247_v48 = vadd.f32 %v3444_v38, %v3232_v33  ;;  %v3234_v43 = vadd.f32 %v3233_v32, %v9827_v44  ;;  %v8467_v32 = vld [vmem:[%s9234_s13 + $0x440] ss:$48 sps:$4 sm:$0xff]  }
 0x1d8   : > { %v3235_v19 = vpop.f32.mrf.mxu0 }
 0x1d9   : > { %v3448_v35 = vpop.f32.mrf.mxu1  ;;  %v10252_v58 = vadd.f32 %v3446_v16, %v3234_v43  ;;  %v3236_v51 = vadd.f32 %v3235_v19, %v9831_v50  ;;  %v8470_v16 = vld [vmem:[%s9234_s13 + $0x448] ss:$48 sps:$4 sm:$0xff]   ;;  %v8478_v43 = vld [vmem:[%s9234_s13 + $0x4a4] ss:$48 sps:$4 sm:$0xff]   ;;  %v8481_v19 = vld [vmem:[%s9234_s13 + $0x4ac] ss:$48 sps:$4 sm:$0xff]  }
 0x1da   : > { %v3239_v15 = vpop.f32.mrf.mxu0  ;;  %3724 = vmatmul.mubr.bf16.gmra.mxu0 %v8455_v2 }
 0x1db   : > { %v3452_v40 = vpop.f32.mrf.mxu1  ;;  %3937 = vmatmul.mubr.bf16.gmra.mxu1 %v8458_v61  ;;  %v10255_v8 = vadd.f32 %v3448_v35, %v3236_v51  ;;  %v3240_v44 = vadd.f32 %v3239_v15, %v9833_v54  ;;  %3733 = vmatprep.mubr.bf16.mxu0 %v8469_v57 }
 0x1dc   : > { %3946 = vmatprep.mubr.bf16.mxu1 %v8472_v14  ;;  %v3241_v24 = vpop.f32.mrf.mxu0 }
 0x1dd   : > { %v3454_v27 = vpop.f32.mrf.mxu1  ;;  %v10258_v60 = vadd.f32 %v3452_v40, %v3240_v44  ;;  %v3242_v38 = vadd.f32 %v3241_v24, %v9837_v59 }
 0x1de   : > { %v3243_v50 = vpop.f32.mrf.mxu0 }
 0x1df   : > { %v3456_v33 = vpop.f32.mrf.mxu1  ;;  %v10263_v2 = vadd.f32 %v3454_v27, %v3242_v38  ;;  %v3244_v61 = vadd.f32 %v3243_v50, %v9839_v63  ;;  %v8476_v50 = vld [vmem:[%s9234_s13 + $0x4a0] ss:$48 sps:$4 sm:$0xff]  }
 0x1e0   : > { %v3245_v35 = vpop.f32.mrf.mxu0 }
 0x1e1   : > { %v3458_v54 = vpop.f32.mrf.mxu1  ;;  %v10268_v57 = vadd.f32 %v3456_v33, %v3244_v61  ;;  %v3246_v14 = vadd.f32 %v3245_v35, %v9843_v5  ;;  %v8479_v33 = vld [vmem:[%s9234_s13 + $0x4a8] ss:$48 sps:$4 sm:$0xff]   ;;  %v8490_v61 = vld [vmem:[%s9234_s13 + $0x504] ss:$48 sps:$4 sm:$0xff]   ;;  %v8493_v35 = vld [vmem:[%s9234_s13 + $0x50c] ss:$48 sps:$4 sm:$0xff]  }
 0x1e2   : > { %v3249_v51 = vpop.f32.mrf.mxu0  ;;  %3734 = vmatmul.mubr.bf16.gmra.mxu0 %v8467_v32 }
 0x1e3   : > { %v3462_v59 = vpop.f32.mrf.mxu1  ;;  %3947 = vmatmul.mubr.bf16.gmra.mxu1 %v8470_v16  ;;  %v10271_v15 = vadd.f32 %v3458_v54, %v3246_v14  ;;  %v3250_v63 = vadd.f32 %v3249_v51, %v9845_v9  ;;  %3743 = vmatprep.mubr.bf16.mxu0 %v8478_v43 }
 0x1e4   : > { %3956 = vmatprep.mubr.bf16.mxu1 %v8481_v19  ;;  %v3251_v40 = vpop.f32.mrf.mxu0 }
 0x1e5   : > { %v3464_v44 = vpop.f32.mrf.mxu1  ;;  %v10274_v24 = vadd.f32 %v3462_v59, %v3250_v63  ;;  %v3252_v27 = vadd.f32 %v3251_v40, %v9847_v13 }
 0x1e6   : > { %v3253_v5 = vpop.f32.mrf.mxu0 }
 0x1e7   : > { %v3466_v38 = vpop.f32.mrf.mxu1  ;;  %v10279_v32 = vadd.f32 %v3464_v44, %v3252_v27  ;;  %v3254_v16 = vadd.f32 %v3253_v5, %v9851_v20  ;;  %v8488_v5 = vld [vmem:[%s9234_s13 + $0x500] ss:$48 sps:$4 sm:$0xff]  }
 0x1e8   : > { %v3255_v54 = vpop.f32.mrf.mxu0 }
 0x1e9   : > { %v3468_v9 = vpop.f32.mrf.mxu1  ;;  %v10284_v43 = vadd.f32 %v3466_v38, %v3254_v16  ;;  %v3256_v19 = vadd.f32 %v3255_v54, %v9855_v26  ;;  %v8491_v38 = vld [vmem:[%s9234_s13 + $0x508] ss:$48 sps:$4 sm:$0xff]   ;;  %v8502_v16 = vld [vmem:[%s9234_s13 + $0x564] ss:$48 sps:$4 sm:$0xff]   ;;  %v8505_v54 = vld [vmem:[%s9234_s13 + $0x56c] ss:$48 sps:$4 sm:$0xff]  }
 0x1ea   : > { %v3259_v14 = vpop.f32.mrf.mxu0  ;;  %3744 = vmatmul.mubr.bf16.gmra.mxu0 %v8476_v50 }
 0x1eb   : > { %v3472_v13 = vpop.f32.mrf.mxu1  ;;  %3957 = vmatmul.mubr.bf16.gmra.mxu1 %v8479_v33  ;;  %v10287_v51 = vadd.f32 %v3468_v9, %v3256_v19  ;;  %v3260_v20 = vadd.f32 %v3259_v14, %v9857_v30  ;;  %3753 = vmatprep.mubr.bf16.mxu0 %v8490_v61 }
 0x1ec   : > { %3966 = vmatprep.mubr.bf16.mxu1 %v8493_v35  ;;  %v3261_v59 = vpop.f32.mrf.mxu0 }
 0x1ed   : > { %v3474_v63 = vpop.f32.mrf.mxu1  ;;  %v10290_v40 = vadd.f32 %v3472_v13, %v3260_v20  ;;  %v3262_v44 = vadd.f32 %v3261_v59, %v9859_v34 }
 0x1ee   : > { %v3263_v26 = vpop.f32.mrf.mxu0 }
 0x1ef   : > { %v3476_v27 = vpop.f32.mrf.mxu1  ;;  %v10295_v50 = vadd.f32 %v3474_v63, %v3262_v44  ;;  %v3264_v33 = vadd.f32 %v3263_v26, %v9863_v42  ;;  %v8500_v26 = vld [vmem:[%s9234_s13 + $0x560] ss:$48 sps:$4 sm:$0xff]  }
 0x1f0   : > { %v3265_v9 = vpop.f32.mrf.mxu0 }
 0x1f1   : > { %v3478_v30 = vpop.f32.mrf.mxu1  ;;  %v10300_v61 = vadd.f32 %v3476_v27, %v3264_v33  ;;  %v3266_v35 = vadd.f32 %v3265_v9, %v9867_v49  ;;  %v8503_v27 = vld [vmem:[%s9234_s13 + $0x568] ss:$48 sps:$4 sm:$0xff]   ;;  %v8514_v33 = vld [vmem:[%s9234_s13 + $0x5c4] ss:$48 sps:$4 sm:$0xff]   ;;  %v8517_v9 = vld [vmem:[%s9234_s13 + $0x5cc] ss:$48 sps:$4 sm:$0xff]  }
 0x1f2   : > { %v3269_v19 = vpop.f32.mrf.mxu0  ;;  %3754 = vmatmul.mubr.bf16.gmra.mxu0 %v8488_v5 }
 0x1f3   : > { %v3482_v34 = vpop.f32.mrf.mxu1  ;;  %3967 = vmatmul.mubr.bf16.gmra.mxu1 %v8491_v38  ;;  %v10303_v14 = vadd.f32 %v3478_v30, %v3266_v35  ;;  %v3270_v42 = vadd.f32 %v3269_v19, %v9869_v55  ;;  %3763 = vmatprep.mubr.bf16.mxu0 %v8502_v16 }
 0x1f4   : > { %3976 = vmatprep.mubr.bf16.mxu1 %v8505_v54  ;;  %v3271_v13 = vpop.f32.mrf.mxu0 }
 0x1f5   : > { %v3484_v20 = vpop.f32.mrf.mxu1  ;;  %v10306_v59 = vadd.f32 %v3482_v34, %v3270_v42  ;;  %v3272_v63 = vadd.f32 %v3271_v13, %v9873_v62 }
 0x1f6   : > { %v3273_v49 = vpop.f32.mrf.mxu0 }
 0x1f7   : > { %v3486_v44 = vpop.f32.mrf.mxu1  ;;  %v10311_v5 = vadd.f32 %v3484_v20, %v3272_v63  ;;  %v3274_v38 = vadd.f32 %v3273_v49, %v9875_v3  ;;  %v8512_v49 = vld [vmem:[%s9234_s13 + $0x5c0] ss:$48 sps:$4 sm:$0xff]  }
 0x1f8   : > { %v3275_v30 = vpop.f32.mrf.mxu0 }
 0x1f9   : > { %v3488_v55 = vpop.f32.mrf.mxu1  ;;  %v10316_v16 = vadd.f32 %v3486_v44, %v3274_v38  ;;  %v3276_v54 = vadd.f32 %v3275_v30, %v9879_v12  ;;  %v8515_v44 = vld [vmem:[%s9234_s13 + $0x5c8] ss:$48 sps:$4 sm:$0xff]   ;;  %v8526_v38 = vld [vmem:[%s9234_s13 + $0x624] ss:$48 sps:$4 sm:$0xff]   ;;  %v8529_v30 = vld [vmem:[%s9234_s13 + $0x62c] ss:$48 sps:$4 sm:$0xff]  }
 0x1fa   : > { %v3279_v35 = vpop.f32.mrf.mxu0  ;;  %3764 = vmatmul.mubr.bf16.gmra.mxu0 %v8500_v26 }
 0x1fb   : > { %v3492_v62 = vpop.f32.mrf.mxu1  ;;  %3977 = vmatmul.mubr.bf16.gmra.mxu1 %v8503_v27  ;;  %v10319_v19 = vadd.f32 %v3488_v55, %v3276_v54  ;;  %v3280_v3 = vadd.f32 %v3279_v35, %v9881_v17  ;;  %3773 = vmatprep.mubr.bf16.mxu0 %v8514_v33 }
 0x1fc   : > { %3986 = vmatprep.mubr.bf16.mxu1 %v8517_v9  ;;  %v3281_v34 = vpop.f32.mrf.mxu0 }
 0x1fd   : > { %v3494_v42 = vpop.f32.mrf.mxu1  ;;  %v10322_v13 = vadd.f32 %v3492_v62, %v3280_v3  ;;  %v3282_v20 = vadd.f32 %v3281_v34, %v9885_v25 }
 0x1fe   : > { %v3283_v12 = vpop.f32.mrf.mxu0 }
 0x1ff   : > { %v3496_v63 = vpop.f32.mrf.mxu1  ;;  %v10327_v26 = vadd.f32 %v3494_v42, %v3282_v20  ;;  %v3284_v27 = vadd.f32 %v3283_v12, %v9887_v31  ;;  %v8524_v12 = vld [vmem:[%s9234_s13 + $0x620] ss:$48 sps:$4 sm:$0xff]  }
 0x200   : > { %v3285_v55 = vpop.f32.mrf.mxu0 }
 0x201   : > { %v3498_v17 = vpop.f32.mrf.mxu1  ;;  %v10332_v33 = vadd.f32 %v3496_v63, %v3284_v27  ;;  %v3286_v9 = vadd.f32 %v3285_v55, %v9891_v39  ;;  %v8527_v63 = vld [vmem:[%s9234_s13 + $0x628] ss:$48 sps:$4 sm:$0xff]   ;;  %v8535_v27 = vld [vmem:[%s9234_s13 + $0x684] ss:$48 sps:$4 sm:$0xff]   ;;  %v8538_v55 = vld [vmem:[%s9234_s13 + $0x68c] ss:$48 sps:$4 sm:$0xff]  }
 0x202   : > { %v3289_v54 = vpop.f32.mrf.mxu0  ;;  %3774 = vmatmul.mubr.bf16.gmra.mxu0 %v8512_v49 }
 0x203   : > { %v3502_v25 = vpop.f32.mrf.mxu1  ;;  %3987 = vmatmul.mubr.bf16.gmra.mxu1 %v8515_v44  ;;  %v10335_v35 = vadd.f32 %v3498_v17, %v3286_v9  ;;  %v3290_v31 = vadd.f32 %v3289_v54, %v9893_v46  ;;  %3783 = vmatprep.mubr.bf16.mxu0 %v8526_v38 }
 0x204   : > { %3996 = vmatprep.mubr.bf16.mxu1 %v8529_v30  ;;  %v3291_v62 = vpop.f32.mrf.mxu0 }
 0x205   : > { %v3504_v3 = vpop.f32.mrf.mxu1  ;;  %v10338_v34 = vadd.f32 %v3502_v25, %v3290_v31  ;;  %v3292_v42 = vadd.f32 %v3291_v62, %v9895_v53 }
 0x206   : > { %v3293_v39 = vpop.f32.mrf.mxu0 }
 0x207   : > { %v3506_v20 = vpop.f32.mrf.mxu1  ;;  %v10343_v49 = vadd.f32 %v3504_v3, %v3292_v42  ;;  %v3294_v44 = vadd.f32 %v3293_v39, %v9899_v0  ;;  %v8533_v39 = vld [vmem:[%s9234_s13 + $0x680] ss:$48 sps:$4 sm:$0xff]  }
 0x208   : > { %v3295_v17 = vpop.f32.mrf.mxu0 }
 0x209   : > { %v3508_v46 = vpop.f32.mrf.mxu1  ;;  %v10348_v38 = vadd.f32 %v3506_v20, %v3294_v44  ;;  %v3296_v30 = vadd.f32 %v3295_v17, %v9903_v10  ;;  %v8536_v20 = vld [vmem:[%s9234_s13 + $0x688] ss:$48 sps:$4 sm:$0xff]   ;;  %v8547_v44 = vld [vmem:[%s9234_s13 + $0x4] ss:$48 sps:$4 sm:$0xff]   ;;  %v8550_v17 = vld [vmem:[%s9234_s13 + $0xc] ss:$48 sps:$4 sm:$0xff]  }
 0x20a   : > { %v3299_v9 = vpop.f32.mrf.mxu0  ;;  %3784 = vmatmul.mubr.bf16.gmra.mxu0 %v8524_v12 }
 0x20b   : > { %11571 = vst [vmem:[#allocation33_spill] sm:$0xff] %v10348_v38  ;;  %v3512_v53 = vpop.f32.mrf.mxu1  ;;  %3997 = vmatmul.mubr.bf16.gmra.mxu1 %v8527_v63  ;;  %v10351_v54 = vadd.f32 %v3508_v46, %v3296_v30  ;;  %v3300_v0 = vadd.f32 %v3299_v9, %v9905_v18  ;;  %3793 = vmatprep.mubr.bf16.mxu0 %v8535_v27 }
 0x20c   : > { %4006 = vmatprep.mubr.bf16.mxu1 %v8538_v55  ;;  %v3301_v25 = vpop.f32.mrf.mxu0  ;;  %v11576_v55 = vld [vmem:[#allocation6_spill] sm:$0xff] }
 0x20d   : > { %11572 = vst [vmem:[#allocation34_spill] sm:$0xff] %v10351_v54  ;;  %v3514_v31 = vpop.f32.mrf.mxu1  ;;  %v10354_v62 = vadd.f32 %v3512_v53, %v3300_v0  ;;  %v3302_v3 = vadd.f32 %v3301_v25, %v9907_v23  ;;  %v11578_v0 = vld [vmem:[#allocation7_spill] sm:$0xff] }
 0x20e   : > { %v3303_v10 = vpop.f32.mrf.mxu0 }
 0x20f   : > { %11573 = vst [vmem:[#allocation35_spill] sm:$0xff] %v10354_v62  ;;  %v3516_v42 = vpop.f32.mrf.mxu1  ;;  %v10359_v12 = vadd.f32 %v3514_v31, %v3302_v3  ;;  %v3304_v63 = vadd.f32 %v3303_v10, %v9911_v37  ;;  %v11580_v10 = vld [vmem:[#allocation8_spill] sm:$0xff]  ;;  %v8574_v62 = vld [vmem:[%s9234_s13 + $0xcc] ss:$48 sps:$4 sm:$0xff]  }
 0x210   : > { %v3305_v46 = vpop.f32.mrf.mxu0 }
 0x211   : > { %11574 = vst [vmem:[#allocation36_spill] sm:$0xff] %v10359_v12  ;;  %v3518_v18 = vpop.f32.mrf.mxu1  ;;  %v10364_v27 = vadd.f32 %v3516_v42, %v3304_v63  ;;  %v3306_v30 = vadd.f32 %v3305_v46, %v11576_v55  ;;  %v8545_v55 = vld [vmem:[%s9234_s13] ss:$48 sps:$4 sm:$0xff]   ;;  %v8571_v12 = vld [vmem:[%s9234_s13 + $0xc4] ss:$48 sps:$4 sm:$0xff]  }
 0x212   : > { %v3309_v9 = vpop.f32.mrf.mxu0  ;;  %3794 = vmatmul.mubr.bf16.gmra.mxu0 %v8533_v39 }
 0x213   : > { %11575 = vst [vmem:[#allocation37_spill] sm:$0xff] %v10364_v27  ;;  %v3522_v23 = vpop.f32.mrf.mxu1  ;;  %4007 = vmatmul.mubr.bf16.gmra.mxu1 %v8536_v20  ;;  %v10367_v53 = vadd.f32 %v3518_v18, %v3306_v30  ;;  %v3310_v25 = vadd.f32 %v3309_v9, %v11578_v0  ;;  %5345 = vmatprep.mubr.bf16.mxu0 %v8547_v44  ;;  %v8548_v27 = vld [vmem:[%s9234_s13 + $0x8] ss:$48 sps:$4 sm:$0xff]   ;;  %v8562_v0 = vld [vmem:[%s9234_s13 + $0x6c] ss:$48 sps:$4 sm:$0xff]  }
 0x214   : > { %5552 = vmatprep.mubr.bf16.mxu1 %v8550_v17  ;;  %v3311_v37 = vpop.f32.mrf.mxu0  ;;  %v11582_v20 = vld [vmem:[#allocation9_spill] sm:$0xff]  ;;  %v8551_v44 = vld [vmem:[%s11540_s3 + $0x270] ss:$8 sps:$4 sm:$0xff]  }
 0x215   : > { %11577 = vst [vmem:[#allocation6_spill] sm:$0xff] %v10367_v53  ;;  %v3524_v31 = vpop.f32.mrf.mxu1  ;;  %v10370_v3 = vadd.f32 %v3522_v23, %v3310_v25  ;;  %v3312_v42 = vadd.f32 %v3311_v37, %v11580_v10  ;;  %v8554_v17 = vld [vmem:[%s11540_s3 + $0x70] ss:$8 sps:$4 sm:$0xff]   ;;  %v8559_v23 = vld [vmem:[%s9234_s13 + $0x64] ss:$48 sps:$4 sm:$0xff]  }
 0x216   : > { %v3313_v63 = vpop.f32.mrf.mxu0  ;;  %v11584_v37 = vld [vmem:[#allocation10_spill] sm:$0xff] }
 0x217   : > { %11579 = vst [vmem:[#allocation7_spill] sm:$0xff] %v10370_v3  ;;  %v3526_v46 = vpop.f32.mrf.mxu1  ;;  %v10375_v39 = vadd.f32 %v3524_v31, %v3312_v42  ;;  %v3314_v18 = vadd.f32 %v3313_v63, %v11582_v20  ;;  %v8565_v31 = vld [vmem:[%s11540_s3 + $0x264] ss:$8 sps:$4 sm:$0xff]   ;;  %v11586_v3 = vld [vmem:[#allocation11_spill] sm:$0xff] }
 0x218   : > { %v3315_v30 = vpop.f32.mrf.mxu0  ;;  %v8568_v42 = vld [vmem:[%s11540_s3 + $0x64] ss:$8 sps:$4 sm:$0xff]  }
 0x219   : > { %11581 = vst [vmem:[#allocation8_spill] sm:$0xff] %v10375_v39  ;;  %v3528_v9 = vpop.f32.mrf.mxu1  ;;  %v10386_v25 = vadd.f32 %v3526_v46, %v3314_v18  ;;  %v3316_v10 = vadd.f32 %v3315_v30, %v11584_v37  ;;  %v8563_v46 = vld [vmem:[%s11540_s3 + $0x260] ss:$8 sps:$4 sm:$0xff]  }
 0x21a   : > { %v3319_v63 = vpop.f32.mrf.mxu0  ;;  %5346 = vmatmul.mubr.bf16.vlgmr.msra.gmra.mxu0 %v8545_v55  ;;  %v8566_v18 = vld [vmem:[%s11540_s3 + $0x60] ss:$8 sps:$4 sm:$0xff]  }
 0x21b   : > { %11583 = vst [vmem:[#allocation9_spill] sm:$0xff] %v10386_v25  ;;  %v3532_v20 = vpop.f32.mrf.mxu1  ;;  %5553 = vmatmul.mubr.bf16.vlgmr.msra.gmra.mxu1 %v8548_v27  ;;  %v10395_v39 = vadd.f32 %v3528_v9, %v3316_v10  ;;  %v3320_v53 = vadd.f32 %v3319_v63, %v11586_v3  ;;  %5728 = vmatpush1.bf16.msra.mxu0 %v8551_v44  ;;  %v8577_v27 = vld [vmem:[%s11540_s3 + $0x254] ss:$8 sps:$4 sm:$0xff]   ;;  %v11587_v44 = vld [vmem:[#allocation12_spill] sm:$0xff] }
 0x21c   : > { %6775 = vmatpush1.bf16.msra.mxu1 %v8554_v17  ;;  %v3321_v30 = vpop.f32.mrf.mxu0  ;;  %5351 = vmatprep.mubr.bf16.mxu0 %v8559_v23  ;;  %v8586_v3 = vld [vmem:[%s11540_s3 + $0x54] ss:$8 sps:$4 sm:$0xff]   ;;  %v8557_v63 = vld [vmem:[%s9234_s13 + $0x60] ss:$48 sps:$4 sm:$0xff]   ;;  %v8560_v23 = vld [vmem:[%s9234_s13 + $0x68] ss:$48 sps:$4 sm:$0xff]  }
 0x21d   : > { %11585 = vst [vmem:[#allocation10_spill] sm:$0xff] %v10395_v39  ;;  %v3534_v37 = vpop.f32.mrf.mxu1  ;;  %5558 = vmatprep.mubr.bf16.mxu1 %v8562_v0  ;;  %v10410_v55 = vadd.f32 %v3532_v20, %v3320_v53  ;;  %v3322_v17 = vadd.f32 %v3321_v30, %v11587_v44  ;;  %5729 = vmatprep.subr.bf16.mxu0 %v8565_v31  ;;  %v11588_v0 = vld [vmem:[#allocation13_spill] sm:$0xff]  ;;  %v8575_v53 = vld [vmem:[%s11540_s3 + $0x250] ss:$8 sps:$4 sm:$0xff]  }
 0x21e   : > { %6776 = vmatprep.subr.bf16.mxu1 %v8568_v42  ;;  %v3323_v9 = vpop.f32.mrf.mxu0  ;;  %v8584_v31 = vld [vmem:[%s11540_s3 + $0x50] ss:$8 sps:$4 sm:$0xff]   ;;  %v8598_v30 = vld [vmem:[%s11540_s3 + $0x44] ss:$8 sps:$4 sm:$0xff]  }
 0x21f   : > { %v3536_v10 = vpop.f32.mrf.mxu1  ;;  %v10415_v39 = vadd.f32 %v3534_v37, %v3322_v17  ;;  %v3324_v25 = vadd.f32 %v3323_v9, %v11588_v0  ;;  %5730 = vmatpush1.bf16.msra.mxu0 %v8563_v46  ;;  %v11589_v20 = vld [vmem:[#allocation14_spill] sm:$0xff]  ;;  %v8587_v9 = vld [vmem:[%s11540_s3 + $0x240] ss:$8 sps:$4 sm:$0xff]  }
 0x220   : > { %6777 = vmatpush1.bf16.msra.mxu1 %v8566_v18  ;;  %v3325_v54 = vpop.f32.mrf.mxu0  ;;  %5731 = vmatprep.subr.bf16.mxu0 %v8577_v27  ;;  %v8589_v18 = vld [vmem:[%s11540_s3 + $0x244] ss:$8 sps:$4 sm:$0xff]   ;;  %v8610_v0 = vld [vmem:[%s11540_s3 + $0x34] ss:$8 sps:$4 sm:$0xff]  }
 0x221   : > { %v3538_v38 = vpop.f32.mrf.mxu1  ;;  %6778 = vmatprep.subr.bf16.mxu1 %v8586_v3  ;;  %v10426_v42 = vadd.f32 %v3536_v10, %v3324_v25  ;;  %v3326_v46 = vadd.f32 %v3325_v54, %v11589_v20  ;;  %v11590_v3 = vld [vmem:[#allocation15_spill] sm:$0xff] }
 0x222   : > { %v3329_v37 = vpop.f32.mrf.mxu0  ;;  %5352 = vmatmul.mubr.bf16.gmra.mxu0 %v8557_v63  ;;  %v8569_v63 = vld [vmem:[%s9234_s13 + $0xc0] ss:$48 sps:$4 sm:$0xff]   ;;  %v8572_v20 = vld [vmem:[%s9234_s13 + $0xc8] ss:$48 sps:$4 sm:$0xff]  }
 0x223   : > { %v3542_v44 = vpop.f32.mrf.mxu1  ;;  %5559 = vmatmul.mubr.bf16.gmra.mxu1 %v8560_v23  ;;  %v10435_v27 = vadd.f32 %v3538_v38, %v3326_v46  ;;  %v3330_v25 = vadd.f32 %v3329_v37, %v11590_v3  ;;  %5359 = vmatprep.mubr.bf16.mxu0 %v8571_v12  ;;  %v8596_v38 = vld [vmem:[%s11540_s3 + $0x40] ss:$8 sps:$4 sm:$0xff]   ;;  %v8601_v23 = vld [vmem:[%s11540_s3 + $0x234] ss:$8 sps:$4 sm:$0xff]  }
 0x224   : > { %5566 = vmatprep.mubr.bf16.mxu1 %v8574_v62  ;;  %v3331_v54 = vpop.f32.mrf.mxu0  ;;  %5732 = vmatpush1.bf16.msra.mxu0 %v8575_v53  ;;  %v11592_v62 = vld [vmem:[#allocation16_spill] sm:$0xff] }
 0x225   : > { %v3544_v17 = vpop.f32.mrf.mxu1  ;;  %6779 = vmatpush1.bf16.msra.mxu1 %v8584_v31  ;;  %v10445_v10 = vadd.f32 %v3542_v44, %v3330_v25  ;;  %v3332_v12 = vadd.f32 %v3331_v54, %v11592_v62  ;;  %5733 = vmatprep.subr.bf16.mxu0 %v8589_v18  ;;  %v8580_v46 = vld [vmem:[%s9234_s13 + $0x124] ss:$48 sps:$4 sm:$0xff]   ;;  %v11594_v44 = vld [vmem:[#allocation17_spill] sm:$0xff]  ;;  %v8599_v54 = vld [vmem:[%s11540_s3 + $0x230] ss:$8 sps:$4 sm:$0xff]  }
 0x226   : > { %6780 = vmatprep.subr.bf16.mxu1 %v8598_v30  ;;  %v3333_v53 = vpop.f32.mrf.mxu0  ;;  %v8583_v25 = vld [vmem:[%s9234_s13 + $0x12c] ss:$48 sps:$4 sm:$0xff]   ;;  %v8608_v62 = vld [vmem:[%s11540_s3 + $0x30] ss:$8 sps:$4 sm:$0xff]  }
 0x227   : > { %11591 = vst [vmem:[#allocation11_spill] sm:$0xff] %v10445_v10  ;;  %v3546_v31 = vpop.f32.mrf.mxu1  ;;  %v10457_v37 = vadd.f32 %v3544_v17, %v3332_v12  ;;  %v3334_v3 = vadd.f32 %v3333_v53, %v11594_v44  ;;  %v11596_v17 = vld [vmem:[#allocation18_spill] sm:$0xff]  ;;  %v8613_v53 = vld [vmem:[%s11540_s3 + $0x224] ss:$8 sps:$4 sm:$0xff]  }
 0x228   : > { %v3335_v18 = vpop.f32.mrf.mxu0  ;;  %5734 = vmatpush1.bf16.msra.mxu0 %v8587_v9  ;;  %v8622_v9 = vld [vmem:[%s11540_s3 + $0x24] ss:$8 sps:$4 sm:$0xff]  }
 0x229   : > { %11593 = vst [vmem:[#allocation12_spill] sm:$0xff] %v10457_v37  ;;  %v3548_v30 = vpop.f32.mrf.mxu1  ;;  %6781 = vmatpush1.bf16.msra.mxu1 %v8596_v38  ;;  %v10469_v10 = vadd.f32 %v3546_v31, %v3334_v3  ;;  %v3336_v12 = vadd.f32 %v3335_v18, %v11596_v17  ;;  %5735 = vmatprep.subr.bf16.mxu0 %v8601_v23  ;;  %v11598_v31 = vld [vmem:[#allocation19_spill] sm:$0xff]  ;;  %v8611_v18 = vld [vmem:[%s11540_s3 + $0x220] ss:$8 sps:$4 sm:$0xff]  }
 0x22a   : > { %6782 = vmatprep.subr.bf16.mxu1 %v8610_v0  ;;  %v3339_v38 = vpop.f32.mrf.mxu0  ;;  %5360 = vmatmul.mubr.bf16.gmra.mxu0 %v8569_v63  ;;  %v8620_v63 = vld [vmem:[%s11540_s3 + $0x20] ss:$8 sps:$4 sm:$0xff]  }
 0x22b   : > { %11595 = vst [vmem:[#allocation13_spill] sm:$0xff] %v10469_v10  ;;  %v3552_v44 = vpop.f32.mrf.mxu1  ;;  %5567 = vmatmul.mubr.bf16.gmra.mxu1 %v8572_v20  ;;  %v10478_v37 = vadd.f32 %v3548_v30, %v3336_v12  ;;  %v3340_v3 = vadd.f32 %v3339_v38, %v11598_v31  ;;  %5369 = vmatprep.mubr.bf16.mxu0 %v8580_v46  ;;  %v11600_v46 = vld [vmem:[#allocation20_spill] sm:$0xff]  ;;  %v8581_v38 = vld [vmem:[%s9234_s13 + $0x128] ss:$48 sps:$4 sm:$0xff]  }
 0x22c   : > { %5576 = vmatprep.mubr.bf16.mxu1 %v8583_v25  ;;  %v3341_v23 = vpop.f32.mrf.mxu0  ;;  %5736 = vmatpush1.bf16.msra.mxu0 %v8599_v54  ;;  %v8625_v25 = vld [vmem:[%s11540_s3 + $0x214] ss:$8 sps:$4 sm:$0xff]   ;;  %v8578_v12 = vld [vmem:[%s9234_s13 + $0x120] ss:$48 sps:$4 sm:$0xff]  }
 0x22d   : > { %11597 = vst [vmem:[#allocation14_spill] sm:$0xff] %v10478_v37  ;;  %v3554_v0 = vpop.f32.mrf.mxu1  ;;  %6783 = vmatpush1.bf16.msra.mxu1 %v8608_v62  ;;  %v10487_v20 = vadd.f32 %v3552_v44, %v3340_v3  ;;  %v3342_v30 = vadd.f32 %v3341_v23, %v11600_v46  ;;  %5737 = vmatprep.subr.bf16.mxu0 %v8613_v53  ;;  %v8634_v54 = vld [vmem:[%s11540_s3 + $0x14] ss:$8 sps:$4 sm:$0xff]   ;;  %v11602_v44 = vld [vmem:[#allocation21_spill] sm:$0xff]  ;;  %v8623_v46 = vld [vmem:[%s11540_s3 + $0x210] ss:$8 sps:$4 sm:$0xff]  }
 0x22e   : > { %6784 = vmatprep.subr.bf16.mxu1 %v8622_v9  ;;  %v3343_v62 = vpop.f32.mrf.mxu0  ;;  %v8595_v23 = vld [vmem:[%s9234_s13 + $0x18c] ss:$48 sps:$4 sm:$0xff]   ;;  %v8632_v37 = vld [vmem:[%s11540_s3 + $0x10] ss:$8 sps:$4 sm:$0xff]  }
 0x22f   : > { %11599 = vst [vmem:[#allocation15_spill] sm:$0xff] %v10487_v20  ;;  %v3556_v17 = vpop.f32.mrf.mxu1  ;;  %v10498_v31 = vadd.f32 %v3554_v0, %v3342_v30  ;;  %v3344_v3 = vadd.f32 %v3343_v62, %v11602_v44  ;;  %v8592_v20 = vld [vmem:[%s9234_s13 + $0x184] ss:$48 sps:$4 sm:$0xff]  }
 0x230   : > { %v3345_v53 = vpop.f32.mrf.mxu0  ;;  %5738 = vmatpush1.bf16.msra.mxu0 %v8611_v18  ;;  %v11604_v0 = vld [vmem:[#allocation22_spill] sm:$0xff]  ;;  %v8643_v62 = vld [vmem:[%s11540_s3 + $0x204] ss:$8 sps:$4 sm:$0xff]  }
 0x231   : > { %11601 = vst [vmem:[#allocation16_spill] sm:$0xff] %v10498_v31  ;;  %v3558_v9 = vpop.f32.mrf.mxu1  ;;  %6785 = vmatpush1.bf16.msra.mxu1 %v8620_v63  ;;  %v10509_v10 = vadd.f32 %v3556_v17, %v3344_v3  ;;  %v3346_v30 = vadd.f32 %v3345_v53, %v11604_v0  ;;  %5739 = vmatprep.subr.bf16.mxu0 %v8625_v25  ;;  %v8646_v18 = vld [vmem:[%s11540_s3 + $0x4] ss:$8 sps:$4 sm:$0xff]   ;;  %v11606_v17 = vld [vmem:[#allocation23_spill] sm:$0xff]  ;;  %v8641_v53 = vld [vmem:[%s11540_s3 + $0x200] ss:$8 sps:$4 sm:$0xff]  }
 0x232   : > { %6786 = vmatprep.subr.bf16.mxu1 %v8634_v54  ;;  %v3349_v63 = vpop.f32.mrf.mxu0  ;;  %5370 = vmatmul.mubr.bf16.gmra.mxu0 %v8578_v12  ;;  %v8644_v12 = vld [vmem:[%s11540_s3] ss:$8 sps:$4 sm:$0xff]  }
 0x233   : > { %11603 = vst [vmem:[#allocation17_spill] sm:$0xff] %v10509_v10  ;;  %v3562_v44 = vpop.f32.mrf.mxu1  ;;  %5577 = vmatmul.mubr.bf16.gmra.mxu1 %v8581_v38  ;;  %v10518_v31 = vadd.f32 %v3558_v9, %v3346_v30  ;;  %v3350_v3 = vadd.f32 %v3349_v63, %v11606_v17  ;;  %5379 = vmatprep.mubr.bf16.mxu0 %v8592_v20  ;;  %v11608_v20 = vld [vmem:[#allocation24_spill] sm:$0xff]  ;;  %v8593_v63 = vld [vmem:[%s9234_s13 + $0x188] ss:$48 sps:$4 sm:$0xff]  }
 0x234   : > { %5586 = vmatprep.mubr.bf16.mxu1 %v8595_v23  ;;  %v3351_v25 = vpop.f32.mrf.mxu0  ;;  %5740 = vmatpush1.bf16.msra.mxu0 %v8623_v46  ;;  %v8655_v23 = vld [vmem:[%s11540_s3 + $0x2f4] ss:$8 sps:$4 sm:$0xff]   ;;  %v8590_v30 = vld [vmem:[%s9234_s13 + $0x180] ss:$48 sps:$4 sm:$0xff]  }
 0x235   : > { %11605 = vst [vmem:[#allocation18_spill] sm:$0xff] %v10518_v31  ;;  %v3564_v54 = vpop.f32.mrf.mxu1  ;;  %6787 = vmatpush1.bf16.msra.mxu1 %v8632_v37  ;;  %v10527_v38 = vadd.f32 %v3562_v44, %v3350_v3  ;;  %v3352_v9 = vadd.f32 %v3351_v25, %v11608_v20  ;;  %5741 = vmatprep.subr.bf16.mxu0 %v8643_v62  ;;  %v8658_v37 = vld [vmem:[%s11540_s3 + $0xf4] ss:$8 sps:$4 sm:$0xff]   ;;  %v11610_v44 = vld [vmem:[#allocation25_spill] sm:$0xff]  ;;  %v8653_v20 = vld [vmem:[%s11540_s3 + $0x2f0] ss:$8 sps:$4 sm:$0xff]  }
 0x236   : > { %6788 = vmatprep.subr.bf16.mxu1 %v8646_v18  ;;  %v3353_v46 = vpop.f32.mrf.mxu0  ;;  %v8607_v25 = vld [vmem:[%s9234_s13 + $0x1ec] ss:$48 sps:$4 sm:$0xff]   ;;  %v8656_v31 = vld [vmem:[%s11540_s3 + $0xf0] ss:$8 sps:$4 sm:$0xff]  }
 0x237   : > { %11607 = vst [vmem:[#allocation19_spill] sm:$0xff] %v10527_v38  ;;  %v3566_v0 = vpop.f32.mrf.mxu1  ;;  %v10538_v17 = vadd.f32 %v3564_v54, %v3352_v9  ;;  %v3354_v3 = vadd.f32 %v3353_v46, %v11610_v44  ;;  %v8604_v38 = vld [vmem:[%s9234_s13 + $0x1e4] ss:$48 sps:$4 sm:$0xff]  }
 0x238   : > { %v3355_v62 = vpop.f32.mrf.mxu0  ;;  %5742 = vmatpush1.bf16.msra.mxu0 %v8641_v53  ;;  %v11612_v54 = vld [vmem:[#allocation26_spill] sm:$0xff]  ;;  %v8667_v46 = vld [vmem:[%s11540_s3 + $0x2e4] ss:$8 sps:$4 sm:$0xff]  }
 0x239   : > { %11609 = vst [vmem:[#allocation20_spill] sm:$0xff] %v10538_v17  ;;  %v3568_v18 = vpop.f32.mrf.mxu1  ;;  %6789 = vmatpush1.bf16.msra.mxu1 %v8644_v12  ;;  %v10549_v10 = vadd.f32 %v3566_v0, %v3354_v3  ;;  %v3356_v9 = vadd.f32 %v3355_v62, %v11612_v54  ;;  %5743 = vmatprep.subr.bf16.mxu0 %v8655_v23  ;;  %v8670_v53 = vld [vmem:[%s11540_s3 + $0xe4] ss:$8 sps:$4 sm:$0xff]   ;;  %v11614_v0 = vld [vmem:[#allocation27_spill] sm:$0xff]  ;;  %v8665_v62 = vld [vmem:[%s11540_s3 + $0x2e0] ss:$8 sps:$4 sm:$0xff]  }
 0x23a   : > { %6790 = vmatprep.subr.bf16.mxu1 %v8658_v37  ;;  %v3359_v12 = vpop.f32.mrf.mxu0  ;;  %5380 = vmatmul.mubr.bf16.gmra.mxu0 %v8590_v30  ;;  %v8668_v30 = vld [vmem:[%s11540_s3 + $0xe0] ss:$8 sps:$4 sm:$0xff]  }
 0x23b   : > { %11611 = vst [vmem:[#allocation21_spill] sm:$0xff] %v10549_v10  ;;  %v3572_v44 = vpop.f32.mrf.mxu1  ;;  %5587 = vmatmul.mubr.bf16.gmra.mxu1 %v8593_v63  ;;  %v10558_v17 = vadd.f32 %v3568_v18, %v3356_v9  ;;  %v3360_v3 = vadd.f32 %v3359_v12, %v11614_v0  ;;  %5389 = vmatprep.mubr.bf16.mxu0 %v8604_v38  ;;  %v11616_v38 = vld [vmem:[#allocation28_spill] sm:$0xff]  ;;  %v8605_v12 = vld [vmem:[%s9234_s13 + $0x1e8] ss:$48 sps:$4 sm:$0xff]  }
 0x23c   : > { %5596 = vmatprep.mubr.bf16.mxu1 %v8607_v25  ;;  %v3361_v23 = vpop.f32.mrf.mxu0  ;;  %5744 = vmatpush2.bf16.msra.mxu0 %v8653_v20  ;;  %v8679_v25 = vld [vmem:[%s11540_s3 + $0x2d4] ss:$8 sps:$4 sm:$0xff]   ;;  %v8602_v9 = vld [vmem:[%s9234_s13 + $0x1e0] ss:$48 sps:$4 sm:$0xff]  }
 0x23d   : > { %11613 = vst [vmem:[#allocation22_spill] sm:$0xff] %v10558_v17  ;;  %v3574_v37 = vpop.f32.mrf.mxu1  ;;  %6791 = vmatpush2.bf16.msra.mxu1 %v8656_v31  ;;  %v10567_v63 = vadd.f32 %v3572_v44, %v3360_v3  ;;  %v3362_v18 = vadd.f32 %v3361_v23, %v11616_v38  ;;  %5745 = vmatprep.subr.bf16.mxu0 %v8667_v46  ;;  %v8688_v31 = vld [vmem:[%s11540_s3 + $0xd4] ss:$8 sps:$4 sm:$0xff]   ;;  %v11618_v44 = vld [vmem:[#allocation29_spill] sm:$0xff]  ;;  %v8677_v38 = vld [vmem:[%s11540_s3 + $0x2d0] ss:$8 sps:$4 sm:$0xff]  }
 0x23e   : > { %6792 = vmatprep.subr.bf16.mxu1 %v8670_v53  ;;  %v3363_v20 = vpop.f32.mrf.mxu0  ;;  %v8619_v23 = vld [vmem:[%s9234_s13 + $0x24c] ss:$48 sps:$4 sm:$0xff]   ;;  %v8686_v17 = vld [vmem:[%s11540_s3 + $0xd0] ss:$8 sps:$4 sm:$0xff]  }
 0x23f   : > { %11615 = vst [vmem:[#allocation23_spill] sm:$0xff] %v10567_v63  ;;  %v3576_v54 = vpop.f32.mrf.mxu1  ;;  %v10578_v0 = vadd.f32 %v3574_v37, %v3362_v18  ;;  %v3364_v3 = vadd.f32 %v3363_v20, %v11618_v44  ;;  %v8616_v63 = vld [vmem:[%s9234_s13 + $0x244] ss:$48 sps:$4 sm:$0xff]  }
 0x240   : > { %v3365_v46 = vpop.f32.mrf.mxu0  ;;  %5746 = vmatpush2.bf16.msra.mxu0 %v8665_v62  ;;  %v11619_v37 = vld [vmem:[#allocation30_spill] sm:$0xff]  ;;  %v8691_v20 = vld [vmem:[%s11540_s3 + $0x2c4] ss:$8 sps:$4 sm:$0xff]  }
 0x241   : > { %11617 = vst [vmem:[#allocation24_spill] sm:$0xff] %v10578_v0  ;;  %v3578_v53 = vpop.f32.mrf.mxu1  ;;  %6793 = vmatpush2.bf16.msra.mxu1 %v8668_v30  ;;  %v10589_v10 = vadd.f32 %v3576_v54, %v3364_v3  ;;  %v3366_v18 = vadd.f32 %v3365_v46, %v11619_v37  ;;  %5747 = vmatprep.subr.bf16.mxu0 %v8679_v25  ;;  %v8700_v62 = vld [vmem:[%s11540_s3 + $0xc4] ss:$8 sps:$4 sm:$0xff]   ;;  %v11620_v54 = vld [vmem:[#allocation31_spill] sm:$0xff]  ;;  %v8689_v46 = vld [vmem:[%s11540_s3 + $0x2c0] ss:$8 sps:$4 sm:$0xff]  }
 0x242   : > { %6794 = vmatprep.subr.bf16.mxu1 %v8688_v31  ;;  %v3369_v30 = vpop.f32.mrf.mxu0  ;;  %5390 = vmatmul.mubr.bf16.gmra.mxu0 %v8602_v9  ;;  %v8698_v9 = vld [vmem:[%s11540_s3 + $0xc0] ss:$8 sps:$4 sm:$0xff]  }
 0x243   : > { %v3582_v44 = vpop.f32.mrf.mxu1  ;;  %5597 = vmatmul.mubr.bf16.gmra.mxu1 %v8605_v12  ;;  %v10598_v0 = vadd.f32 %v3578_v53, %v3366_v18  ;;  %v3370_v3 = vadd.f32 %v3369_v30, %v11620_v54  ;;  %5399 = vmatprep.mubr.bf16.mxu0 %v8616_v63  ;;  %v8614_v37 = vld [vmem:[%s9234_s13 + $0x240] ss:$48 sps:$4 sm:$0xff]   ;;  %v8617_v18 = vld [vmem:[%s9234_s13 + $0x248] ss:$48 sps:$4 sm:$0xff]   ;;  %v8631_v54 = vld [vmem:[%s9234_s13 + $0x2ac] ss:$48 sps:$4 sm:$0xff]  }
 0x244   : > { %5606 = vmatprep.mubr.bf16.mxu1 %v8619_v23  ;;  %v3371_v25 = vpop.f32.mrf.mxu0  ;;  %5748 = vmatpush2.bf16.msra.mxu0 %v8677_v38  ;;  %v8712_v23 = vld [vmem:[%s11540_s3 + $0xb4] ss:$8 sps:$4 sm:$0xff]  }
 0x245   : > { %v3584_v31 = vpop.f32.mrf.mxu1  ;;  %6795 = vmatpush2.bf16.msra.mxu1 %v8686_v17  ;;  %v10607_v12 = vadd.f32 %v3582_v44, %v3370_v3  ;;  %v3372_v63 = vadd.f32 %v3371_v25, %v10137_v22  ;;  %5749 = vmatprep.subr.bf16.mxu0 %v8691_v20  ;;  %v8703_v17 = vld [vmem:[%s11540_s3 + $0x2b4] ss:$8 sps:$4 sm:$0xff]   ;;  %v8701_v3 = vld [vmem:[%s11540_s3 + $0x2b0] ss:$8 sps:$4 sm:$0xff]  }
 0x246   : > { %6796 = vmatprep.subr.bf16.mxu1 %v8700_v62  ;;  %v3373_v53 = vpop.f32.mrf.mxu0  ;;  %v8628_v44 = vld [vmem:[%s9234_s13 + $0x2a4] ss:$48 sps:$4 sm:$0xff]   ;;  %v8710_v25 = vld [vmem:[%s11540_s3 + $0xb0] ss:$8 sps:$4 sm:$0xff]  }
 0x247   : > { %v3586_v38 = vpop.f32.mrf.mxu1  ;;  %v10619_v30 = vadd.f32 %v3584_v31, %v3372_v63  ;;  %v3374_v22 = vadd.f32 %v3373_v53, %v10139_v29  ;;  %v8715_v63 = vld [vmem:[%s11540_s3 + $0x2a4] ss:$8 sps:$4 sm:$0xff]  }
 0x248   : > { %v3375_v20 = vpop.f32.mrf.mxu0  ;;  %5750 = vmatpush2.bf16.msra.mxu0 %v8689_v46  ;;  %v8724_v46 = vld [vmem:[%s11540_s3 + $0xa4] ss:$8 sps:$4 sm:$0xff]  }
 0x249   : > { %11621 = vst [vmem:[#allocation25_spill] sm:$0xff] %v10619_v30  ;;  %v3588_v62 = vpop.f32.mrf.mxu1  ;;  %6797 = vmatpush2.bf16.msra.mxu1 %v8698_v9  ;;  %v10634_v31 = vadd.f32 %v3586_v38, %v3374_v22  ;;  %v3376_v29 = vadd.f32 %v3375_v20, %v10155_v7  ;;  %5751 = vmatprep.subr.bf16.mxu0 %v8703_v17  ;;  %v8727_v22 = vld [vmem:[%s11540_s3 + $0x294] ss:$8 sps:$4 sm:$0xff]  }
 0x24a   : > { %6798 = vmatprep.subr.bf16.mxu1 %v8712_v23  ;;  %v3625_v9 = vpop.f32.mrf.mxu0  ;;  %5400 = vmatmul.mubr.bf16.gmra.mxu0 %v8614_v37  ;;  %v8713_v23 = vld [vmem:[%s11540_s3 + $0x2a0] ss:$8 sps:$4 sm:$0xff]  }
 0x24b   : > { %v3838_v53 = vpop.f32.mrf.mxu1  ;;  %5607 = vmatmul.mubr.bf16.gmra.mxu1 %v8617_v18  ;;  %v10643_v30 = vadd.f32 %v3588_v62, %v3376_v29  ;;  %v3626_v38 = vadd.f32 %v3625_v9, %v10164_v52  ;;  %5409 = vmatprep.mubr.bf16.mxu0 %v8628_v44  ;;  %v8722_v37 = vld [vmem:[%s11540_s3 + $0xa0] ss:$8 sps:$4 sm:$0xff]   ;;  %v8736_v44 = vld [vmem:[%s11540_s3 + $0x94] ss:$8 sps:$4 sm:$0xff]  }
 0x24c   : > { %5616 = vmatprep.mubr.bf16.mxu1 %v8631_v54  ;;  %v3627_v7 = vpop.f32.mrf.mxu0  ;;  %5752 = vmatpush2.bf16.msra.mxu0 %v8701_v3  ;;  %v8626_v62 = vld [vmem:[%s9234_s13 + $0x2a0] ss:$48 sps:$4 sm:$0xff]   ;;  %v8629_v3 = vld [vmem:[%s9234_s13 + $0x2a8] ss:$48 sps:$4 sm:$0xff]   ;;  %v8637_v29 = vld [vmem:[%s9234_s13 + $0x304] ss:$48 sps:$4 sm:$0xff]  }
 0x24d   : > { %v3840_v17 = vpop.f32.mrf.mxu1  ;;  %6799 = vmatpush2.bf16.msra.mxu1 %v8710_v25  ;;  %v3839_v52 = vadd.f32 %v3838_v53, %v3626_v38  ;;  %v3628_v18 = vadd.f32 %v3627_v7, %v10175_v47  ;;  %5753 = vmatprep.subr.bf16.mxu0 %v8715_v63  ;;  %v8640_v63 = vld [vmem:[%s9234_s13 + $0x30c] ss:$48 sps:$4 sm:$0xff]   ;;  %v8725_v53 = vld [vmem:[%s11540_s3 + $0x290] ss:$8 sps:$4 sm:$0xff]  }
 0x24e   : > { %6800 = vmatprep.subr.bf16.mxu1 %v8724_v46  ;;  %v3629_v54 = vpop.f32.mrf.mxu0  ;;  %v8734_v38 = vld [vmem:[%s11540_s3 + $0x90] ss:$8 sps:$4 sm:$0xff]  }
 0x24f   : > { %v3842_v20 = vpop.f32.mrf.mxu1  ;;  %4017 = vst [vmem:[%s10662_s26] sm:$0xff] %v3839_v52  ;;  %v3841_v47 = vadd.f32 %v3840_v17, %v3628_v18  ;;  %v3630_v25 = vadd.f32 %v3629_v54, %v10186_v4  ;;  %v8745_v4 = vld [vmem:[%s11540_s3 + $0x284] ss:$8 sps:$4 sm:$0xff]  }
 0x250   : > { %v3631_v46 = vpop.f32.mrf.mxu0  ;;  %5754 = vmatpush2.bf16.msra.mxu0 %v8713_v23  ;;  %v8748_v23 = vld [vmem:[%s11540_s3 + $0x84] ss:$8 sps:$4 sm:$0xff]  }
 0x251   : > { %v3844_v9 = vpop.f32.mrf.mxu1  ;;  %6801 = vmatpush2.bf16.msra.mxu1 %v8722_v37  ;;  %4018 = vst [vmem:[%s10662_s26 + $0x8] sm:$0xff] %v3841_v47  ;;  %v3843_v7 = vadd.f32 %v3842_v20, %v3630_v25  ;;  %v3632_v17 = vadd.f32 %v3631_v46, %v10195_v6  ;;  %5755 = vmatprep.subr.bf16.mxu0 %v8727_v22  ;;  %v11622_v54 = vld [vmem:[#allocation32_spill] sm:$0xff]  ;;  %v8757_v25 = vld [vmem:[%s11540_s3 + $0x174] ss:$8 sps:$4 sm:$0xff]  }
 0x252   : > { %6802 = vmatprep.subr.bf16.mxu1 %v8736_v44  ;;  %v3635_v37 = vpop.f32.mrf.mxu0  ;;  %5410 = vmatmul.mubr.bf16.gmra.mxu0 %v8626_v62  ;;  %v8743_v44 = vld [vmem:[%s11540_s3 + $0x280] ss:$8 sps:$4 sm:$0xff]  }
 0x253   : > { %v3848_v52 = vpop.f32.mrf.mxu1  ;;  %5617 = vmatmul.mubr.bf16.gmra.mxu1 %v8629_v3  ;;  %4019 = vst [vmem:[%s10662_s26 + $0x10] sm:$0xff] %v3843_v7  ;;  %v3845_v18 = vadd.f32 %v3844_v9, %v3632_v17  ;;  %v3636_v20 = vadd.f32 %v3635_v37, %v11622_v54  ;;  %5419 = vmatprep.mubr.bf16.mxu0 %v8637_v29  ;;  %v8746_v62 = vld [vmem:[%s11540_s3 + $0x80] ss:$8 sps:$4 sm:$0xff]   ;;  %v8649_v7 = vld [vmem:[%s9234_s13 + $0x364] ss:$48 sps:$4 sm:$0xff]  }
 0x254   : > { %5626 = vmatprep.mubr.bf16.mxu1 %v8640_v63  ;;  %v3637_v6 = vpop.f32.mrf.mxu0  ;;  %5756 = vmatpush2.bf16.msra.mxu0 %v8725_v53  ;;  %v8635_v46 = vld [vmem:[%s9234_s13 + $0x300] ss:$48 sps:$4 sm:$0xff]   ;;  %v8638_v9 = vld [vmem:[%s9234_s13 + $0x308] ss:$48 sps:$4 sm:$0xff]   ;;  %v8652_v17 = vld [vmem:[%s9234_s13 + $0x36c] ss:$48 sps:$4 sm:$0xff]  }
 0x255   : > { %v3850_v22 = vpop.f32.mrf.mxu1  ;;  %6803 = vmatpush2.bf16.msra.mxu1 %v8734_v38  ;;  %4020 = vst [vmem:[%s10662_s26 + $0x18] sm:$0xff] %v3845_v18  ;;  %v3849_v3 = vadd.f32 %v3848_v52, %v3636_v20  ;;  %v3638_v47 = vadd.f32 %v3637_v6, %v10215_v21  ;;  %5757 = vmatprep.subr.bf16.mxu0 %v8745_v4 }
 0x256   : > { %6804 = vmatprep.subr.bf16.mxu1 %v8748_v23  ;;  %v3639_v29 = vpop.f32.mrf.mxu0 }
 0x257   : > { %v3852_v63 = vpop.f32.mrf.mxu1  ;;  %4021 = vst [vmem:[%s10662_s26 + $0x20] sm:$0xff] %v3849_v3  ;;  %v3851_v53 = vadd.f32 %v3850_v22, %v3638_v47  ;;  %v3640_v38 = vadd.f32 %v3639_v29, %v10220_v41  ;;  %v8647_v3 = vld [vmem:[%s9234_s13 + $0x360] ss:$48 sps:$4 sm:$0xff]   ;;  %v8650_v47 = vld [vmem:[%s9234_s13 + $0x368] ss:$48 sps:$4 sm:$0xff]  }
 0x258   : > { %v3641_v37 = vpop.f32.mrf.mxu0  ;;  %5758 = vmatpush2.bf16.msra.mxu0 %v8743_v44 }
 0x259   : > { %v3854_v21 = vpop.f32.mrf.mxu1  ;;  %6805 = vmatpush2.bf16.msra.mxu1 %v8746_v62  ;;  %4022 = vst [vmem:[%s10662_s26 + $0x28] sm:$0xff] %v3851_v53  ;;  %v3853_v4 = vadd.f32 %v3852_v63, %v3640_v38  ;;  %v3642_v23 = vadd.f32 %v3641_v37, %v10223_v11  ;;  %v8664_v63 = vld [vmem:[%s9234_s13 + $0x3cc] ss:$48 sps:$4 sm:$0xff]  }
 0x25a   : > { %6825 = vmatprep.subr.bf16.mxu1 %v8757_v25  ;;  %v3645_v52 = vpop.f32.mrf.mxu0  ;;  %5420 = vmatmul.mubr.bf16.gmra.mxu0 %v8635_v46 }
 0x25b   : > { %v3858_v18 = vpop.f32.mrf.mxu1  ;;  %5627 = vmatmul.mubr.bf16.gmra.mxu1 %v8638_v9  ;;  %4023 = vst [vmem:[%s10662_s26 + $0x30] sm:$0xff] %v3853_v4  ;;  %v3855_v41 = vadd.f32 %v3854_v21, %v3642_v23  ;;  %v3646_v54 = vadd.f32 %v3645_v52, %v10226_v1  ;;  %5429 = vmatprep.mubr.bf16.mxu0 %v8649_v7  ;;  %v8661_v1 = vld [vmem:[%s9234_s13 + $0x3c4] ss:$48 sps:$4 sm:$0xff]  }
 0x25c   : > { %5636 = vmatprep.mubr.bf16.mxu1 %v8652_v17  ;;  %v3647_v20 = vpop.f32.mrf.mxu0 }
 0x25d   : > { %v3860_v6 = vpop.f32.mrf.mxu1  ;;  %4024 = vst [vmem:[%s10662_s26 + $0x38] sm:$0xff] %v3855_v41  ;;  %v3859_v11 = vadd.f32 %v3858_v18, %v3646_v54  ;;  %v3648_v22 = vadd.f32 %v3647_v20, %v10231_v45  ;;  %v8659_v18 = vld [vmem:[%s9234_s13 + $0x3c0] ss:$48 sps:$4 sm:$0xff]   ;;  %v8662_v41 = vld [vmem:[%s9234_s13 + $0x3c8] ss:$48 sps:$4 sm:$0xff]  }
 0x25e   : > { %v3649_v44 = vpop.f32.mrf.mxu0 }
 0x25f   : > { %v3862_v62 = vpop.f32.mrf.mxu1  ;;  %4025 = vst [vmem:[%s10662_s26 + $0x40] sm:$0xff] %v3859_v11  ;;  %v3861_v25 = vadd.f32 %v3860_v6, %v3648_v22  ;;  %v3650_v29 = vadd.f32 %v3649_v44, %v10236_v36  ;;  %v8676_v6 = vld [vmem:[%s9234_s13 + $0x42c] ss:$48 sps:$4 sm:$0xff]  }
 0x260   : > { %v3651_v46 = vpop.f32.mrf.mxu0 }
 0x261   : > { %v3864_v9 = vpop.f32.mrf.mxu1  ;;  %4026 = vst [vmem:[%s10662_s26 + $0x48] sm:$0xff] %v3861_v25  ;;  %v3863_v53 = vadd.f32 %v3862_v62, %v3650_v29  ;;  %v3652_v38 = vadd.f32 %v3651_v46, %v10239_v56 }
 0x262   : > { %v3655_v7 = vpop.f32.mrf.mxu0  ;;  %5430 = vmatmul.mubr.bf16.gmra.mxu0 %v8647_v3 }
 0x263   : > { %v3868_v45 = vpop.f32.mrf.mxu1  ;;  %5637 = vmatmul.mubr.bf16.gmra.mxu1 %v8650_v47  ;;  %4027 = vst [vmem:[%s10662_s26 + $0x50] sm:$0xff] %v3863_v53  ;;  %v3865_v17 = vadd.f32 %v3864_v9, %v3652_v38  ;;  %v3656_v36 = vadd.f32 %v3655_v7, %v10242_v28  ;;  %5439 = vmatprep.mubr.bf16.mxu0 %v8661_v1  ;;  %v8673_v28 = vld [vmem:[%s9234_s13 + $0x424] ss:$48 sps:$4 sm:$0xff]   ;;  %v8671_v9 = vld [vmem:[%s9234_s13 + $0x420] ss:$48 sps:$4 sm:$0xff]  }
 0x264   : > { %5646 = vmatprep.mubr.bf16.mxu1 %v8664_v63  ;;  %v3657_v37 = vpop.f32.mrf.mxu0  ;;  %v8674_v53 = vld [vmem:[%s9234_s13 + $0x428] ss:$48 sps:$4 sm:$0xff]  }
 0x265   : > { %v3870_v21 = vpop.f32.mrf.mxu1  ;;  %4028 = vst [vmem:[%s10662_s26 + $0x58] sm:$0xff] %v3865_v17  ;;  %v3869_v56 = vadd.f32 %v3868_v45, %v3656_v36  ;;  %v3658_v4 = vadd.f32 %v3657_v37, %v10247_v48  ;;  %v8685_v45 = vld [vmem:[%s9234_s13 + $0x48c] ss:$48 sps:$4 sm:$0xff]  }
 0x266   : > { %v3659_v23 = vpop.f32.mrf.mxu0 }
 0x267   : > { %v3872_v52 = vpop.f32.mrf.mxu1  ;;  %4029 = vst [vmem:[%s10662_s26 + $0x60] sm:$0xff] %v3869_v56  ;;  %v3871_v54 = vadd.f32 %v3870_v21, %v3658_v4  ;;  %v3660_v20 = vadd.f32 %v3659_v23, %v10252_v58 }
 0x268   : > { %v3661_v11 = vpop.f32.mrf.mxu0 }
 0x269   : > { %v3874_v22 = vpop.f32.mrf.mxu1  ;;  %4030 = vst [vmem:[%s10662_s26 + $0x68] sm:$0xff] %v3871_v54  ;;  %v3873_v44 = vadd.f32 %v3872_v52, %v3660_v20  ;;  %v3662_v62 = vadd.f32 %v3661_v11, %v10255_v8  ;;  %v8680_v20 = vld [vmem:[%s9234_s13 + $0x480] ss:$48 sps:$4 sm:$0xff]  }
 0x26a   : > { %v3665_v3 = vpop.f32.mrf.mxu0  ;;  %5440 = vmatmul.mubr.bf16.gmra.mxu0 %v8659_v18 }
 0x26b   : > { %v3878_v48 = vpop.f32.mrf.mxu1  ;;  %5647 = vmatmul.mubr.bf16.gmra.mxu1 %v8662_v41  ;;  %4031 = vst [vmem:[%s10662_s26 + $0x70] sm:$0xff] %v3873_v44  ;;  %v3875_v47 = vadd.f32 %v3874_v22, %v3662_v62  ;;  %v3666_v58 = vadd.f32 %v3665_v3, %v10258_v60  ;;  %5449 = vmatprep.mubr.bf16.mxu0 %v8673_v28  ;;  %v8682_v60 = vld [vmem:[%s9234_s13 + $0x484] ss:$48 sps:$4 sm:$0xff]   ;;  %v8683_v28 = vld [vmem:[%s9234_s13 + $0x488] ss:$48 sps:$4 sm:$0xff]  }
 0x26c   : > { %5656 = vmatprep.mubr.bf16.mxu1 %v8676_v6  ;;  %v3667_v25 = vpop.f32.mrf.mxu0  ;;  %v8697_v22 = vld [vmem:[%s9234_s13 + $0x4ec] ss:$48 sps:$4 sm:$0xff]  }
 0x26d   : > { %v3880_v29 = vpop.f32.mrf.mxu1  ;;  %4032 = vst [vmem:[%s10662_s26 + $0x78] sm:$0xff] %v3875_v47  ;;  %v3879_v8 = vadd.f32 %v3878_v48, %v3666_v58  ;;  %v3668_v1 = vadd.f32 %v3667_v25, %v10263_v2 }
 0x26e   : > { %v3669_v63 = vpop.f32.mrf.mxu0 }
 0x26f   : > { %v3882_v46 = vpop.f32.mrf.mxu1  ;;  %4033 = vst [vmem:[%s10662_s26 + $0x80] sm:$0xff] %v3879_v8  ;;  %v3881_v38 = vadd.f32 %v3880_v29, %v3668_v1  ;;  %v3670_v7 = vadd.f32 %v3669_v63, %v10268_v57 }
 0x270   : > { %v3671_v17 = vpop.f32.mrf.mxu0 }
 0x271   : > { %v3884_v36 = vpop.f32.mrf.mxu1  ;;  %4034 = vst [vmem:[%s10662_s26 + $0x88] sm:$0xff] %v3881_v38  ;;  %v3883_v37 = vadd.f32 %v3882_v46, %v3670_v7  ;;  %v3672_v21 = vadd.f32 %v3671_v17, %v10271_v15  ;;  %v8692_v46 = vld [vmem:[%s9234_s13 + $0x4e0] ss:$48 sps:$4 sm:$0xff]   ;;  %v8709_v7 = vld [vmem:[%s9234_s13 + $0x54c] ss:$48 sps:$4 sm:$0xff]  }
 0x272   : > { %v3675_v56 = vpop.f32.mrf.mxu0  ;;  %5450 = vmatmul.mubr.bf16.gmra.mxu0 %v8671_v9  ;;  %v8695_v9 = vld [vmem:[%s9234_s13 + $0x4e8] ss:$48 sps:$4 sm:$0xff]  }
 0x273   : > { %v3888_v2 = vpop.f32.mrf.mxu1  ;;  %5657 = vmatmul.mubr.bf16.gmra.mxu1 %v8674_v53  ;;  %4035 = vst [vmem:[%s10662_s26 + $0x90] sm:$0xff] %v3883_v37  ;;  %v3885_v4 = vadd.f32 %v3884_v36, %v3672_v21  ;;  %v3676_v57 = vadd.f32 %v3675_v56, %v10274_v24  ;;  %5459 = vmatprep.mubr.bf16.mxu0 %v8682_v60  ;;  %v8694_v24 = vld [vmem:[%s9234_s13 + $0x4e4] ss:$48 sps:$4 sm:$0xff]  }
 0x274   : > { %5666 = vmatprep.mubr.bf16.mxu1 %v8685_v45  ;;  %v3677_v23 = vpop.f32.mrf.mxu0 }
 0x275   : > { %v3890_v52 = vpop.f32.mrf.mxu1  ;;  %4036 = vst [vmem:[%s10662_s26 + $0x98] sm:$0xff] %v3885_v4  ;;  %v3889_v15 = vadd.f32 %v3888_v2, %v3676_v57  ;;  %v3678_v18 = vadd.f32 %v3677_v23, %v10279_v32 }
 0x276   : > { %v3679_v41 = vpop.f32.mrf.mxu0 }
 0x277   : > { %v3892_v54 = vpop.f32.mrf.mxu1  ;;  %4037 = vst [vmem:[%s10662_s26 + $0xa0] sm:$0xff] %v3889_v15  ;;  %v3891_v6 = vadd.f32 %v3890_v52, %v3678_v18  ;;  %v3680_v11 = vadd.f32 %v3679_v41, %v10284_v43  ;;  %v8704_v52 = vld [vmem:[%s9234_s13 + $0x540] ss:$48 sps:$4 sm:$0xff]   ;;  %v8707_v15 = vld [vmem:[%s9234_s13 + $0x548] ss:$48 sps:$4 sm:$0xff]  }
 0x278   : > { %v3681_v44 = vpop.f32.mrf.mxu0 }
 0x279   : > { %v3894_v62 = vpop.f32.mrf.mxu1  ;;  %4038 = vst [vmem:[%s10662_s26 + $0xa8] sm:$0xff] %v3891_v6  ;;  %v3893_v3 = vadd.f32 %v3892_v54, %v3680_v11  ;;  %v3682_v48 = vadd.f32 %v3681_v44, %v10287_v51  ;;  %v8721_v54 = vld [vmem:[%s9234_s13 + $0x5ac] ss:$48 sps:$4 sm:$0xff]  }
 0x27a   : > { %v3685_v47 = vpop.f32.mrf.mxu0  ;;  %5460 = vmatmul.mubr.bf16.gmra.mxu0 %v8680_v20 }
 0x27b   : > { %v3898_v32 = vpop.f32.mrf.mxu1  ;;  %5667 = vmatmul.mubr.bf16.gmra.mxu1 %v8683_v28  ;;  %4039 = vst [vmem:[%s10662_s26 + $0xb0] sm:$0xff] %v3893_v3  ;;  %v3895_v58 = vadd.f32 %v3894_v62, %v3682_v48  ;;  %v3686_v43 = vadd.f32 %v3685_v47, %v10290_v40  ;;  %5469 = vmatprep.mubr.bf16.mxu0 %v8694_v24  ;;  %v8706_v40 = vld [vmem:[%s9234_s13 + $0x544] ss:$48 sps:$4 sm:$0xff]  }
 0x27c   : > { %5676 = vmatprep.mubr.bf16.mxu1 %v8697_v22  ;;  %v3687_v25 = vpop.f32.mrf.mxu0 }
 0x27d   : > { %v3900_v29 = vpop.f32.mrf.mxu1  ;;  %4040 = vst [vmem:[%s10662_s26 + $0xb8] sm:$0xff] %v3895_v58  ;;  %v3899_v51 = vadd.f32 %v3898_v32, %v3686_v43  ;;  %v3688_v8 = vadd.f32 %v3687_v25, %v10295_v50  ;;  %v8716_v32 = vld [vmem:[%s9234_s13 + $0x5a0] ss:$48 sps:$4 sm:$0xff]   ;;  %v8719_v58 = vld [vmem:[%s9234_s13 + $0x5a8] ss:$48 sps:$4 sm:$0xff]  }
 0x27e   : > { %v3689_v1 = vpop.f32.mrf.mxu0 }
 0x27f   : > { %v3902_v63 = vpop.f32.mrf.mxu1  ;;  %4041 = vst [vmem:[%s10662_s26 + $0xc0] sm:$0xff] %v3899_v51  ;;  %v3901_v53 = vadd.f32 %v3900_v29, %v3688_v8  ;;  %v3690_v38 = vadd.f32 %v3689_v1, %v10300_v61  ;;  %v8733_v29 = vld [vmem:[%s9234_s13 + $0x60c] ss:$48 sps:$4 sm:$0xff]  }
 0x280   : > { %v3691_v60 = vpop.f32.mrf.mxu0 }
 0x281   : > { %v3904_v45 = vpop.f32.mrf.mxu1  ;;  %4042 = vst [vmem:[%s10662_s26 + $0xc8] sm:$0xff] %v3901_v53  ;;  %v3903_v17 = vadd.f32 %v3902_v63, %v3690_v38  ;;  %v3692_v36 = vadd.f32 %v3691_v60, %v10303_v14 }
 0x282   : > { %v3695_v37 = vpop.f32.mrf.mxu0  ;;  %5470 = vmatmul.mubr.bf16.gmra.mxu0 %v8692_v46 }
 0x283   : > { %v3908_v50 = vpop.f32.mrf.mxu1  ;;  %5677 = vmatmul.mubr.bf16.gmra.mxu1 %v8695_v9  ;;  %4043 = vst [vmem:[%s10662_s26 + $0xd0] sm:$0xff] %v3903_v17  ;;  %v3905_v21 = vadd.f32 %v3904_v45, %v3692_v36  ;;  %v3696_v61 = vadd.f32 %v3695_v37, %v10306_v59  ;;  %5479 = vmatprep.mubr.bf16.mxu0 %v8706_v40  ;;  %v8718_v59 = vld [vmem:[%s9234_s13 + $0x5a4] ss:$48 sps:$4 sm:$0xff]   ;;  %v8728_v45 = vld [vmem:[%s9234_s13 + $0x600] ss:$48 sps:$4 sm:$0xff]   ;;  %v11623_v37 = vld [vmem:[#allocation33_spill] sm:$0xff] }
 0x284   : > { %5686 = vmatprep.mubr.bf16.mxu1 %v8709_v7  ;;  %v3697_v56 = vpop.f32.mrf.mxu0  ;;  %v8731_v17 = vld [vmem:[%s9234_s13 + $0x608] ss:$48 sps:$4 sm:$0xff]  }
 0x285   : > { %v3910_v2 = vpop.f32.mrf.mxu1  ;;  %4044 = vst [vmem:[%s10662_s26 + $0xd8] sm:$0xff] %v3905_v21  ;;  %v3909_v14 = vadd.f32 %v3908_v50, %v3696_v61  ;;  %v3698_v4 = vadd.f32 %v3697_v56, %v10311_v5  ;;  %v8742_v21 = vld [vmem:[%s9234_s13 + $0x66c] ss:$48 sps:$4 sm:$0xff]  }
 0x286   : > { %v3699_v57 = vpop.f32.mrf.mxu0 }
 0x287   : > { %v3912_v23 = vpop.f32.mrf.mxu1  ;;  %4045 = vst [vmem:[%s10662_s26 + $0xe0] sm:$0xff] %v3909_v14  ;;  %v3911_v18 = vadd.f32 %v3910_v2, %v3698_v4  ;;  %v3700_v41 = vadd.f32 %v3699_v57, %v10316_v16  ;;  %v11624_v14 = vld [vmem:[#allocation34_spill] sm:$0xff] }
 0x288   : > { %v3701_v20 = vpop.f32.mrf.mxu0 }
 0x289   : > { %v3914_v28 = vpop.f32.mrf.mxu1  ;;  %4046 = vst [vmem:[%s10662_s26 + $0xe8] sm:$0xff] %v3911_v18  ;;  %v3913_v6 = vadd.f32 %v3912_v23, %v3700_v41  ;;  %v3702_v11 = vadd.f32 %v3701_v20, %v10319_v19 }
 0x28a   : > { %v3705_v24 = vpop.f32.mrf.mxu0  ;;  %5480 = vmatmul.mubr.bf16.gmra.mxu0 %v8704_v52  ;;  %v11625_v52 = vld [vmem:[#allocation35_spill] sm:$0xff] }
 0x28b   : > { %v3918_v5 = vpop.f32.mrf.mxu1  ;;  %5687 = vmatmul.mubr.bf16.gmra.mxu1 %v8707_v15  ;;  %4047 = vst [vmem:[%s10662_s26 + $0xf0] sm:$0xff] %v3913_v6  ;;  %v3915_v22 = vadd.f32 %v3914_v28, %v3702_v11  ;;  %v3706_v16 = vadd.f32 %v3705_v24, %v10322_v13  ;;  %5489 = vmatprep.mubr.bf16.mxu0 %v8718_v59  ;;  %v8730_v13 = vld [vmem:[%s9234_s13 + $0x604] ss:$48 sps:$4 sm:$0xff]   ;;  %v8737_v11 = vld [vmem:[%s9234_s13 + $0x660] ss:$48 sps:$4 sm:$0xff]  }
 0x28c   : > { %5696 = vmatprep.mubr.bf16.mxu1 %v8721_v54  ;;  %v3707_v44 = vpop.f32.mrf.mxu0  ;;  %v11626_v54 = vld [vmem:[#allocation36_spill] sm:$0xff]  ;;  %v8740_v24 = vld [vmem:[%s9234_s13 + $0x668] ss:$48 sps:$4 sm:$0xff]  }
 0x28d   : > { %v3920_v62 = vpop.f32.mrf.mxu1  ;;  %4048 = vst [vmem:[%s10662_s26 + $0xf8] sm:$0xff] %v3915_v22  ;;  %v3919_v19 = vadd.f32 %v3918_v5, %v3706_v16  ;;  %v3708_v3 = vadd.f32 %v3707_v44, %v10327_v26  ;;  %v11627_v22 = vld [vmem:[#allocation37_spill] sm:$0xff]  ;;  %v8751_v44 = vld [vmem:[%s9234_s13 + $0x14] ss:$48 sps:$4 sm:$0xff]  }
 0x28e   : > { %v3709_v48 = vpop.f32.mrf.mxu0 }
 0x28f   : > { %v3922_v47 = vpop.f32.mrf.mxu1  ;;  %4049 = vst [vmem:[%s10662_s26 + $0x100] sm:$0xff] %v3919_v19  ;;  %v3921_v43 = vadd.f32 %v3920_v62, %v3708_v3  ;;  %v3710_v25 = vadd.f32 %v3709_v48, %v10332_v33  ;;  %v8754_v62 = vld [vmem:[%s10461_s28 + $0x4] ss:$24 sps:$4 sm:$0xff]  }
 0x290   : > { %v3711_v51 = vpop.f32.mrf.mxu0 }
 0x291   : > { %v3924_v8 = vpop.f32.mrf.mxu1  ;;  %4050 = vst [vmem:[%s10662_s26 + $0x108] sm:$0xff] %v3921_v43  ;;  %v3923_v1 = vadd.f32 %v3922_v47, %v3710_v25  ;;  %v3712_v63 = vadd.f32 %v3711_v51, %v10335_v35  ;;  %v11628_v47 = vld [vmem:[#allocation6_spill] sm:$0xff] }
 0x292   : > { %v3715_v46 = vpop.f32.mrf.mxu0  ;;  %5490 = vmatmul.mubr.bf16.gmra.mxu0 %v8716_v32 }
 0x293   : > { %v3928_v26 = vpop.f32.mrf.mxu1  ;;  %5697 = vmatmul.mubr.bf16.gmra.mxu1 %v8719_v58  ;;  %4051 = vst [vmem:[%s10662_s26 + $0x110] sm:$0xff] %v3923_v1  ;;  %v3925_v9 = vadd.f32 %v3924_v8, %v3712_v63  ;;  %v3716_v33 = vadd.f32 %v3715_v46, %v10338_v34  ;;  %5499 = vmatprep.mubr.bf16.mxu0 %v8730_v13  ;;  %v8739_v34 = vld [vmem:[%s9234_s13 + $0x664] ss:$48 sps:$4 sm:$0xff]   ;;  %v11629_v13 = vld [vmem:[#allocation7_spill] sm:$0xff] }
 0x294   : > { %5706 = vmatprep.mubr.bf16.mxu1 %v8733_v29  ;;  %v3717_v53 = vpop.f32.mrf.mxu0  ;;  %v11630_v63 = vld [vmem:[#allocation8_spill] sm:$0xff] }
 0x295   : > { %v3930_v38 = vpop.f32.mrf.mxu1  ;;  %4052 = vst [vmem:[%s10662_s26 + $0x118] sm:$0xff] %v3925_v9  ;;  %v3929_v35 = vadd.f32 %v3928_v26, %v3716_v33  ;;  %v3718_v40 = vadd.f32 %v3717_v53, %v10343_v49  ;;  %v6144_v26 = vld [vmem:[%s10461_s28 + $0x30] sm:$0xff] }
 0x296   : > { %v3719_v7 = vpop.f32.mrf.mxu0  ;;  %v8749_v53 = vld [vmem:[%s9234_s13 + $0x10] ss:$48 sps:$4 sm:$0xff]  }
 0x297   : > { %v3932_v60 = vpop.f32.mrf.mxu1  ;;  %4053 = vst [vmem:[%s10662_s26 + $0x120] sm:$0xff] %v3929_v35  ;;  %v3931_v36 = vadd.f32 %v3930_v38, %v3718_v40  ;;  %v3720_v50 = vadd.f32 %v3719_v7, %v11623_v37  ;;  %v8752_v38 = vld [vmem:[%s10461_s28] ss:$24 sps:$4 sm:$0xff]   ;;  %v8760_v37 = vld [vmem:[%s11540_s3 + $0x164] ss:$8 sps:$4 sm:$0xff]  }
 0x298   : > { %v3721_v61 = vpop.f32.mrf.mxu0  ;;  %v11631_v40 = vld [vmem:[#allocation9_spill] sm:$0xff] }
 0x299   : > { %v3934_v56 = vpop.f32.mrf.mxu1  ;;  %4054 = vst [vmem:[%s10662_s26 + $0x128] sm:$0xff] %v3931_v36  ;;  %v3933_v2 = vadd.f32 %v3932_v60, %v3720_v50  ;;  %v3722_v4 = vadd.f32 %v3721_v61, %v11624_v14  ;;  %v8755_v60 = vld [vmem:[%s11540_s3 + $0x170] ss:$8 sps:$4 sm:$0xff]   ;;  %v7668_v50 = vcombine.high %v6144_v26, %v6144_v26 }
 0x29a   : > { %v3725_v57 = vpop.f32.mrf.mxu0  ;;  %5500 = vmatmul.mubr.bf16.gmra.mxu0 %v8728_v45  ;;  %v8763_v45 = vld [vmem:[%s9234_s13 + $0x74] ss:$48 sps:$4 sm:$0xff]  }
 0x29b   : > { %v3938_v49 = vpop.f32.mrf.mxu1  ;;  %5707 = vmatmul.mubr.bf16.gmra.mxu1 %v8731_v17  ;;  %4055 = vst [vmem:[%s10662_s26 + $0x130] sm:$0xff] %v3933_v2  ;;  %v3935_v23 = vadd.f32 %v3934_v56, %v3722_v4  ;;  %v3726_v15 = vadd.f32 %v3725_v57, %v11625_v52  ;;  %5509 = vmatprep.mubr.bf16.mxu0 %v8739_v34  ;;  %v8758_v57 = vld [vmem:[%s11540_s3 + $0x160] ss:$8 sps:$4 sm:$0xff]   ;;  %v8766_v52 = vld [vmem:[%s11540_s3 + $0x154] ss:$8 sps:$4 sm:$0xff]  }
 0x29c   : > { %5716 = vmatprep.mubr.bf16.mxu1 %v8742_v21  ;;  %v3727_v18 = vpop.f32.mrf.mxu0  ;;  %v11632_v21 = vld [vmem:[#allocation10_spill] sm:$0xff] }
 0x29d   : > { %v3940_v41 = vpop.f32.mrf.mxu1  ;;  %4056 = vst [vmem:[%s10662_s26 + $0x138] sm:$0xff] %v3935_v23  ;;  %v3939_v59 = vadd.f32 %v3938_v49, %v3726_v15  ;;  %v3728_v20 = vadd.f32 %v3727_v18, %v11626_v54  ;;  %v7667_v54 = vcombine.low %v6144_v26, %v6144_v26  ;;  %v8773_v26 = vld [vmem:[%s11540_s3 + $0x130] ss:$8 sps:$4 sm:$0xff]  }
 0x29e   : > { %v3729_v28 = vpop.f32.mrf.mxu0 }
 0x29f   : > { %v3942_v6 = vpop.f32.mrf.mxu1  ;;  %4057 = vst [vmem:[%s10662_s26 + $0x140] sm:$0xff] %v3939_v59  ;;  %v3941_v5 = vadd.f32 %v3940_v41, %v3728_v20  ;;  %v3730_v16 = vadd.f32 %v3729_v28, %v11627_v22  ;;  %v8761_v59 = vld [vmem:[%s9234_s13 + $0x70] ss:$48 sps:$4 sm:$0xff]   ;;  %v8828_v22 = vld [vmem:[%s10461_s28 + $0xc] ss:$24 sps:$4 sm:$0xff]  }
 0x2a0   : > { %v3731_v19 = vpop.f32.mrf.mxu0 }
 0x2a1   : > { %v3944_v3 = vpop.f32.mrf.mxu1  ;;  %4058 = vst [vmem:[%s10662_s26 + $0x148] sm:$0xff] %v3941_v5  ;;  %v3943_v48 = vadd.f32 %v3942_v6, %v3730_v16  ;;  %v3732_v32 = vadd.f32 %v3731_v19, %v11628_v47  ;;  %v8764_v6 = vld [vmem:[%s11540_s3 + $0x150] ss:$8 sps:$4 sm:$0xff]   ;;  %v8767_v47 = vld [vmem:[%s11540_s3 + $0x140] ss:$8 sps:$4 sm:$0xff]  }
 0x2a2   : > { %v3735_v58 = vpop.f32.mrf.mxu0  ;;  %5510 = vmatmul.mubr.bf16.gmra.mxu0 %v8737_v11  ;;  %v8772_v11 = vld [vmem:[%s9234_s13 + $0xd4] ss:$48 sps:$4 sm:$0xff]  }
 0x2a3   : > { %v3948_v43 = vpop.f32.mrf.mxu1  ;;  %5717 = vmatmul.mubr.bf16.gmra.mxu1 %v8740_v24  ;;  %4059 = vst [vmem:[%s10662_s26 + $0x150] sm:$0xff] %v3943_v48  ;;  %v3945_v25 = vadd.f32 %v3944_v3, %v3732_v32  ;;  %v3736_v29 = vadd.f32 %v3735_v58, %v11629_v13  ;;  %5759 = vmatprep.mubr.bf16.mxu0 %v8751_v44  ;;  %v11633_v3 = vld [vmem:[#allocation11_spill] sm:$0xff] }
 0x2a4   : > { %6806 = vmatprep.mubr.bf16.mxu1 %v8754_v62  ;;  %v3737_v51 = vpop.f32.mrf.mxu0  ;;  %v8775_v58 = vld [vmem:[%s11540_s3 + $0x134] ss:$8 sps:$4 sm:$0xff]  }
 0x2a5   : > { %v3950_v8 = vpop.f32.mrf.mxu1  ;;  %4060 = vst [vmem:[%s10662_s26 + $0x158] sm:$0xff] %v3945_v25  ;;  %v3949_v1 = vadd.f32 %v3948_v43, %v3736_v29  ;;  %v3738_v46 = vadd.f32 %v3737_v51, %v11630_v63  ;;  %v11634_v25 = vld [vmem:[#allocation12_spill] sm:$0xff]  ;;  %v11635_v63 = vld [vmem:[#allocation13_spill] sm:$0xff] }
 0x2a6   : > { %v3739_v9 = vpop.f32.mrf.mxu0 }
 0x2a7   : > { %v3952_v33 = vpop.f32.mrf.mxu1  ;;  %4061 = vst [vmem:[%s10662_s26 + $0x160] sm:$0xff] %v3949_v1  ;;  %v3951_v35 = vadd.f32 %v3950_v8, %v3738_v46  ;;  %v3740_v7 = vadd.f32 %v3739_v9, %v11631_v40  ;;  %v8770_v8 = vld [vmem:[%s9234_s13 + $0xd0] ss:$48 sps:$4 sm:$0xff]   ;;  %v8781_v9 = vld [vmem:[%s9234_s13 + $0x134] ss:$48 sps:$4 sm:$0xff]  }
 0x2a8   : > { %v3741_v17 = vpop.f32.mrf.mxu0  ;;  %v11636_v40 = vld [vmem:[#allocation14_spill] sm:$0xff] }
 0x2a9   : > { %v3954_v36 = vpop.f32.mrf.mxu1  ;;  %4062 = vst [vmem:[%s10662_s26 + $0x168] sm:$0xff] %v3951_v35  ;;  %v3953_v34 = vadd.f32 %v3952_v33, %v3740_v7  ;;  %v3742_v61 = vadd.f32 %v3741_v17, %v11632_v21 }
 0x2aa   : > { %v3745_v56 = vpop.f32.mrf.mxu0  ;;  %5760 = vmatmul.mubr.bf16.vlgmr.msra.gmra.mxu0 %v8749_v53 }
 0x2ab   : > { %v3958_v2 = vpop.f32.mrf.mxu1  ;;  %6807 = vmatmul.mubr.bf16.vlgmr.msra.gmra.mxu1 %v8752_v38  ;;  %4063 = vst [vmem:[%s10662_s26 + $0x170] sm:$0xff] %v3953_v34  ;;  %v3955_v14 = vadd.f32 %v3954_v36, %v3742_v61  ;;  %v3746_v4 = vadd.f32 %v3745_v56, %v10410_v55  ;;  %5765 = vmatprep.mubr.bf16.mxu0 %v8763_v45  ;;  %v8778_v38 = vld [vmem:[%s11540_s3 + $0x124] ss:$8 sps:$4 sm:$0xff]   ;;  %v11637_v36 = vld [vmem:[#allocation15_spill] sm:$0xff] }
 0x2ac   : > { %6826 = vmatpush1.bf16.msra.mxu1 %v8755_v60  ;;  %v3747_v49 = vpop.f32.mrf.mxu0  ;;  %6816 = vmatprep.mubr.bf16.mxu1 %v7668_v50  ;;  %v8776_v50 = vld [vmem:[%s11540_s3 + $0x120] ss:$8 sps:$4 sm:$0xff]   ;;  %v8784_v61 = vld [vmem:[%s11540_s3 + $0x114] ss:$8 sps:$4 sm:$0xff]  }
 0x2ad   : > { %v3960_v23 = vpop.f32.mrf.mxu1  ;;  %6827 = vmatprep.subr.bf16.mxu1 %v8760_v37  ;;  %4064 = vst [vmem:[%s10662_s26 + $0x178] sm:$0xff] %v3955_v14  ;;  %v3959_v15 = vadd.f32 %v3958_v2, %v3746_v4  ;;  %v3748_v55 = vadd.f32 %v3747_v49, %v10415_v39  ;;  %v8769_v39 = vld [vmem:[%s11540_s3 + $0x144] ss:$8 sps:$4 sm:$0xff]   ;;  %v8779_v49 = vld [vmem:[%s9234_s13 + $0x130] ss:$48 sps:$4 sm:$0xff]  }
 0x2ae   : > { %v3749_v18 = vpop.f32.mrf.mxu0  ;;  %v11638_v2 = vld [vmem:[#allocation16_spill] sm:$0xff] }
 0x2af   : > { %v3962_v41 = vpop.f32.mrf.mxu1  ;;  %4065 = vst [vmem:[%s10662_s26 + $0x180] sm:$0xff] %v3959_v15  ;;  %v3961_v20 = vadd.f32 %v3960_v23, %v3748_v55  ;;  %v3750_v28 = vadd.f32 %v3749_v18, %v10426_v42  ;;  %v8782_v55 = vld [vmem:[%s11540_s3 + $0x110] ss:$8 sps:$4 sm:$0xff]   ;;  %v8790_v18 = vld [vmem:[%s9234_s13 + $0x194] ss:$48 sps:$4 sm:$0xff]  }
 0x2b0   : > { %6828 = vmatpush1.bf16.msra.mxu1 %v8758_v57  ;;  %v3751_v24 = vpop.f32.mrf.mxu0 }
 0x2b1   : > { %v3964_v5 = vpop.f32.mrf.mxu1  ;;  %6829 = vmatprep.subr.bf16.mxu1 %v8766_v52  ;;  %4066 = vst [vmem:[%s10662_s26 + $0x188] sm:$0xff] %v3961_v20  ;;  %v3963_v16 = vadd.f32 %v3962_v41, %v3750_v28  ;;  %v3752_v44 = vadd.f32 %v3751_v24, %v10435_v27  ;;  %v11639_v52 = vld [vmem:[#allocation17_spill] sm:$0xff]  ;;  %v11640_v28 = vld [vmem:[#allocation18_spill] sm:$0xff] }
 0x2b2   : > { %v3755_v42 = vpop.f32.mrf.mxu0  ;;  %5766 = vmatmul.mubr.bf16.gmra.mxu0 %v8761_v59 }
 0x2b3   : > { %v3968_v62 = vpop.f32.mrf.mxu1  ;;  %6817 = vmatmul.mubr.bf16.gmra.mxu1 %v7667_v54  ;;  %4067 = vst [vmem:[%s10662_s26 + $0x190] sm:$0xff] %v3963_v16  ;;  %v3965_v19 = vadd.f32 %v3964_v5, %v3752_v44  ;;  %v3756_v48 = vadd.f32 %v3755_v42, %v11633_v3  ;;  %5773 = vmatprep.mubr.bf16.mxu0 %v8772_v11  ;;  %v8787_v54 = vld [vmem:[%s11540_s3 + $0x104] ss:$8 sps:$4 sm:$0xff]   ;;  %v8785_v16 = vld [vmem:[%s11540_s3 + $0x100] ss:$8 sps:$4 sm:$0xff]  }
 0x2b4   : > { %6830 = vmatpush1.bf16.msra.mxu1 %v8764_v6  ;;  %v3757_v32 = vpop.f32.mrf.mxu0  ;;  %6857 = vmatprep.mubr.bf16.mxu1 %v8828_v22  ;;  %v11642_v3 = vld [vmem:[#allocation20_spill] sm:$0xff] }
 0x2b5   : > { %v3970_v27 = vpop.f32.mrf.mxu1  ;;  %6831 = vmatprep.subr.bf16.mxu1 %v8769_v39  ;;  %4068 = vst [vmem:[%s10662_s26 + $0x198] sm:$0xff] %v3965_v19  ;;  %v3969_v43 = vadd.f32 %v3968_v62, %v3756_v48  ;;  %v3758_v13 = vadd.f32 %v3757_v32, %v11634_v25  ;;  %v11641_v39 = vld [vmem:[#allocation19_spill] sm:$0xff] }
 0x2b6   : > { %v3759_v29 = vpop.f32.mrf.mxu0  ;;  %v8793_v62 = vld [vmem:[%s11540_s3 + $0x1f4] ss:$8 sps:$4 sm:$0xff]  }
 0x2b7   : > { %v3972_v51 = vpop.f32.mrf.mxu1  ;;  %4069 = vst [vmem:[%s10662_s26 + $0x1a0] sm:$0xff] %v3969_v43  ;;  %v3971_v1 = vadd.f32 %v3970_v27, %v3758_v13  ;;  %v3760_v46 = vadd.f32 %v3759_v29, %v11635_v63  ;;  %v8788_v27 = vld [vmem:[%s9234_s13 + $0x190] ss:$48 sps:$4 sm:$0xff]   ;;  %v11643_v43 = vld [vmem:[#allocation21_spill] sm:$0xff]  ;;  %v8799_v29 = vld [vmem:[%s9234_s13 + $0x1f4] ss:$48 sps:$4 sm:$0xff]  }
 0x2b8   : > { %6832 = vmatpush1.bf16.msra.mxu1 %v8767_v47  ;;  %v3761_v33 = vpop.f32.mrf.mxu0  ;;  %v8791_v13 = vld [vmem:[%s11540_s3 + $0x1f0] ss:$8 sps:$4 sm:$0xff]  }
 0x2b9   : > { %v3974_v53 = vpop.f32.mrf.mxu1  ;;  %6833 = vmatprep.subr.bf16.mxu1 %v8775_v58  ;;  %4070 = vst [vmem:[%s10662_s26 + $0x1a8] sm:$0xff] %v3971_v1  ;;  %v3973_v35 = vadd.f32 %v3972_v51, %v3760_v46  ;;  %v3762_v7 = vadd.f32 %v3761_v33, %v11636_v40  ;;  %v8796_v1 = vld [vmem:[%s11540_s3 + $0x1e4] ss:$8 sps:$4 sm:$0xff]   ;;  %v11644_v46 = vld [vmem:[#allocation22_spill] sm:$0xff]  ;;  %v8794_v40 = vld [vmem:[%s11540_s3 + $0x1e0] ss:$8 sps:$4 sm:$0xff]  }
 0x2ba   : > { %v3765_v60 = vpop.f32.mrf.mxu0  ;;  %5774 = vmatmul.mubr.bf16.gmra.mxu0 %v8770_v8 }
 0x2bb   : > { %v3978_v45 = vpop.f32.mrf.mxu1  ;;  %4071 = vst [vmem:[%s10662_s26 + $0x1b0] sm:$0xff] %v3973_v35  ;;  %v3975_v17 = vadd.f32 %v3974_v53, %v3762_v7  ;;  %v3766_v37 = vadd.f32 %v3765_v60, %v11637_v36  ;;  %5783 = vmatprep.mubr.bf16.mxu0 %v8781_v9  ;;  %v11646_v36 = vld [vmem:[#allocation24_spill] sm:$0xff] }
 0x2bc   : > { %6834 = vmatpush1.bf16.msra.mxu1 %v8773_v26  ;;  %v3767_v34 = vpop.f32.mrf.mxu0 }
 0x2bd   : > { %v3980_v21 = vpop.f32.mrf.mxu1  ;;  %6835 = vmatprep.subr.bf16.mxu1 %v8778_v38  ;;  %4072 = vst [vmem:[%s10662_s26 + $0x1b8] sm:$0xff] %v3975_v17  ;;  %v3979_v56 = vadd.f32 %v3978_v45, %v3766_v37  ;;  %v3768_v14 = vadd.f32 %v3767_v34, %v11638_v2  ;;  %v11645_v38 = vld [vmem:[#allocation23_spill] sm:$0xff] }
 0x2be   : > { %v3769_v4 = vpop.f32.mrf.mxu0  ;;  %v8802_v45 = vld [vmem:[%s11540_s3 + $0x1d4] ss:$8 sps:$4 sm:$0xff]   ;;  %v8800_v2 = vld [vmem:[%s11540_s3 + $0x1d0] ss:$8 sps:$4 sm:$0xff]  }
 0x2bf   : > { %v3982_v57 = vpop.f32.mrf.mxu1  ;;  %4073 = vst [vmem:[%s10662_s26 + $0x1c0] sm:$0xff] %v3979_v56  ;;  %v3981_v23 = vadd.f32 %v3980_v21, %v3768_v14  ;;  %v3770_v15 = vadd.f32 %v3769_v4, %v11639_v52  ;;  %v8797_v21 = vld [vmem:[%s9234_s13 + $0x1f0] ss:$48 sps:$4 sm:$0xff]   ;;  %v8808_v14 = vld [vmem:[%s9234_s13 + $0x254] ss:$48 sps:$4 sm:$0xff]  }
 0x2c0   : > { %6836 = vmatpush1.bf16.msra.mxu1 %v8776_v50  ;;  %v3771_v41 = vpop.f32.mrf.mxu0 }
 0x2c1   : > { %v3984_v59 = vpop.f32.mrf.mxu1  ;;  %6837 = vmatprep.subr.bf16.mxu1 %v8784_v61  ;;  %4074 = vst [vmem:[%s10662_s26 + $0x1c8] sm:$0xff] %v3981_v23  ;;  %v3983_v20 = vadd.f32 %v3982_v57, %v3770_v15  ;;  %v3772_v6 = vadd.f32 %v3771_v41, %v11640_v28  ;;  %v8803_v41 = vld [vmem:[%s11540_s3 + $0x1c0] ss:$8 sps:$4 sm:$0xff]  }
 0x2c2   : > { %v3775_v11 = vpop.f32.mrf.mxu0  ;;  %5784 = vmatmul.mubr.bf16.gmra.mxu0 %v8779_v49  ;;  %v8805_v49 = vld [vmem:[%s11540_s3 + $0x1c4] ss:$8 sps:$4 sm:$0xff]  }
 0x2c3   : > { %v3988_v24 = vpop.f32.mrf.mxu1  ;;  %4075 = vst [vmem:[%s10662_s26 + $0x1d0] sm:$0xff] %v3983_v20  ;;  %v3985_v5 = vadd.f32 %v3984_v59, %v3772_v6  ;;  %v3776_v22 = vadd.f32 %v3775_v11, %v11641_v39  ;;  %5793 = vmatprep.mubr.bf16.mxu0 %v8790_v18  ;;  %v11647_v28 = vld [vmem:[#allocation25_spill] sm:$0xff] }
 0x2c4   : > { %6838 = vmatpush1.bf16.msra.mxu1 %v8782_v55  ;;  %v3777_v44 = vpop.f32.mrf.mxu0 }
 0x2c5   : > { %v3990_v42 = vpop.f32.mrf.mxu1  ;;  %6839 = vmatprep.subr.bf16.mxu1 %v8787_v54  ;;  %4076 = vst [vmem:[%s10662_s26 + $0x1d8] sm:$0xff] %v3985_v5  ;;  %v3989_v19 = vadd.f32 %v3988_v24, %v3776_v22  ;;  %v3778_v48 = vadd.f32 %v3777_v44, %v11642_v3  ;;  %v8806_v24 = vld [vmem:[%s9234_s13 + $0x250] ss:$48 sps:$4 sm:$0xff]  }
 0x2c6   : > { %v3779_v47 = vpop.f32.mrf.mxu0  ;;  %v8809_v22 = vld [vmem:[%s11540_s3 + $0x1b0] ss:$8 sps:$4 sm:$0xff]  }
 0x2c7   : > { %v3992_v32 = vpop.f32.mrf.mxu1  ;;  %4077 = vst [vmem:[%s10662_s26 + $0x1e0] sm:$0xff] %v3989_v19  ;;  %v3991_v58 = vadd.f32 %v3990_v42, %v3778_v48  ;;  %v3780_v25 = vadd.f32 %v3779_v47, %v11643_v43 }
 0x2c8   : > { %6840 = vmatpush1.bf16.msra.mxu1 %v8785_v16  ;;  %v3781_v51 = vpop.f32.mrf.mxu0  ;;  %v8819_v16 = vld [vmem:[%s9234_s13 + $0x2b4] ss:$48 sps:$4 sm:$0xff]  }
 0x2c9   : > { %v3994_v8 = vpop.f32.mrf.mxu1  ;;  %6841 = vmatprep.subr.bf16.mxu1 %v8793_v62  ;;  %4078 = vst [vmem:[%s10662_s26 + $0x1e8] sm:$0xff] %v3991_v58  ;;  %v3993_v63 = vadd.f32 %v3992_v32, %v3780_v25  ;;  %v3782_v26 = vadd.f32 %v3781_v51, %v11644_v46  ;;  %v8814_v62 = vld [vmem:[%s11540_s3 + $0x1a4] ss:$8 sps:$4 sm:$0xff]   ;;  %v8812_v32 = vld [vmem:[%s11540_s3 + $0x1a0] ss:$8 sps:$4 sm:$0xff]  }
 0x2ca   : > { %v3785_v9 = vpop.f32.mrf.mxu0  ;;  %5794 = vmatmul.mubr.bf16.gmra.mxu0 %v8788_v27  ;;  %v8831_v51 = vld [vmem:[%s9234_s13 + $0x314] ss:$48 sps:$4 sm:$0xff]  }
 0x2cb   : > { %v3998_v33 = vpop.f32.mrf.mxu1  ;;  %4079 = vst [vmem:[%s10662_s26 + $0x1f0] sm:$0xff] %v3993_v63  ;;  %v3995_v53 = vadd.f32 %v3994_v8, %v3782_v26  ;;  %v3786_v35 = vadd.f32 %v3785_v9, %v11645_v38  ;;  %5803 = vmatprep.mubr.bf16.mxu0 %v8799_v29  ;;  %v8820_v29 = vld [vmem:[%s11540_s3 + $0x190] ss:$8 sps:$4 sm:$0xff]   ;;  %v8825_v63 = vld [vmem:[%s11540_s3 + $0x184] ss:$8 sps:$4 sm:$0xff]  }
 0x2cc   : > { %6842 = vmatpush2.bf16.msra.mxu1 %v8791_v13  ;;  %v3787_v7 = vpop.f32.mrf.mxu0  ;;  %v8817_v13 = vld [vmem:[%s9234_s13 + $0x2b0] ss:$48 sps:$4 sm:$0xff]   ;;  %v8834_v38 = vld [vmem:[%s11540_s3 + $0x274] ss:$8 sps:$4 sm:$0xff]  }
 0x2cd   : > { %v4000_v60 = vpop.f32.mrf.mxu1  ;;  %6843 = vmatprep.subr.bf16.mxu1 %v8796_v1  ;;  %4080 = vst [vmem:[%s10662_s26 + $0x1f8] sm:$0xff] %v3995_v53  ;;  %v3999_v17 = vadd.f32 %v3998_v33, %v3786_v35  ;;  %v3788_v37 = vadd.f32 %v3787_v7, %v11646_v36  ;;  %v8823_v9 = vld [vmem:[%s11540_s3 + $0x180] ss:$8 sps:$4 sm:$0xff]   ;;  %v8832_v36 = vld [vmem:[%s11540_s3 + $0x270] ss:$8 sps:$4 sm:$0xff]  }
 0x2ce   : > { %v3789_v50 = vpop.f32.mrf.mxu0  ;;  %v6145_v35 = vld [vmem:[%s10461_s28 + $0x38] sm:$0xff] }
 0x2cf   : > { %v4002_v34 = vpop.f32.mrf.mxu1  ;;  %4081 = vst [vmem:[%s10662_s26 + $0x200] sm:$0xff] %v3999_v17  ;;  %v4001_v61 = vadd.f32 %v4000_v60, %v3788_v37  ;;  %v3790_v56 = vadd.f32 %v3789_v50, %v10589_v10  ;;  %v8826_v60 = vld [vmem:[%s10461_s28 + $0x8] ss:$24 sps:$4 sm:$0xff]   ;;  %v7670_v37 = vcombine.high %v6145_v35, %v6145_v35 }
 0x2d0   : > { %6844 = vmatpush2.bf16.msra.mxu1 %v8794_v40  ;;  %v3791_v4 = vpop.f32.mrf.mxu0 }
 0x2d1   : > { %v4004_v57 = vpop.f32.mrf.mxu1  ;;  %6845 = vmatprep.subr.bf16.mxu1 %v8802_v45  ;;  %4082 = vst [vmem:[%s10662_s26 + $0x208] sm:$0xff] %v4001_v61  ;;  %v4003_v23 = vadd.f32 %v4002_v34, %v3790_v56  ;;  %v3792_v52 = vadd.f32 %v3791_v4, %v10598_v0  ;;  %v8811_v0 = vld [vmem:[%s11540_s3 + $0x1b4] ss:$8 sps:$4 sm:$0xff]   ;;  %v8829_v45 = vld [vmem:[%s9234_s13 + $0x310] ss:$48 sps:$4 sm:$0xff]  }
 0x2d2   : > { %v3795_v15 = vpop.f32.mrf.mxu0  ;;  %5804 = vmatmul.mubr.bf16.gmra.mxu0 %v8797_v21  ;;  %v8837_v21 = vld [vmem:[%s11540_s3 + $0x264] ss:$8 sps:$4 sm:$0xff]  }
 0x2d3   : > { %v4008_v10 = vpop.f32.mrf.mxu1  ;;  %4083 = vst [vmem:[%s10662_s26 + $0x210] sm:$0xff] %v4003_v23  ;;  %v4005_v55 = vadd.f32 %v4004_v57, %v3792_v52  ;;  %v3796_v18 = vadd.f32 %v3795_v15, %v10607_v12  ;;  %5813 = vmatprep.mubr.bf16.mxu0 %v8808_v14  ;;  %v8842_v61 = vld [vmem:[%s9234_s13 + $0x374] ss:$48 sps:$4 sm:$0xff]   ;;  %v8835_v57 = vld [vmem:[%s11540_s3 + $0x260] ss:$8 sps:$4 sm:$0xff]  }
 0x2d4   : > { %6846 = vmatpush2.bf16.msra.mxu1 %v8800_v2  ;;  %v3797_v59 = vpop.f32.mrf.mxu0  ;;  %v8845_v52 = vld [vmem:[%s11540_s3 + $0x254] ss:$8 sps:$4 sm:$0xff]  }
 0x2d5   : > { %v4010_v54 = vpop.f32.mrf.mxu1  ;;  %6847 = vmatprep.subr.bf16.mxu1 %v8805_v49  ;;  %4084 = vst [vmem:[%s10662_s26 + $0x218] sm:$0xff] %v4005_v55  ;;  %v4009_v20 = vadd.f32 %v4008_v10, %v3796_v18  ;;  %v3798_v6 = vadd.f32 %v3797_v59, %v11647_v28  ;;  %v7669_v18 = vcombine.low %v6145_v35, %v6145_v35  ;;  %v8869_v35 = vld [vmem:[%s9234_s13 + $0x494] ss:$48 sps:$4 sm:$0xff]  }
 0x2d6   : > { %v3799_v12 = vpop.f32.mrf.mxu0 }
 0x2d7   : > { %v4012_v11 = vpop.f32.mrf.mxu1  ;;  %4085 = vst [vmem:[%s10662_s26 + $0x220] sm:$0xff] %v4009_v20  ;;  %v4011_v5 = vadd.f32 %v4010_v54, %v3798_v6  ;;  %v3800_v39 = vadd.f32 %v3799_v12, %v10634_v31  ;;  %v8843_v54 = vld [vmem:[%s11540_s3 + $0x250] ss:$8 sps:$4 sm:$0xff]   ;;  %v8848_v6 = vld [vmem:[%s11540_s3 + $0x244] ss:$8 sps:$4 sm:$0xff]  }
 0x2d8   : > { %6848 = vmatpush2.bf16.msra.mxu1 %v8803_v41  ;;  %v3801_v44 = vpop.f32.mrf.mxu0  ;;  %v8840_v41 = vld [vmem:[%s9234_s13 + $0x370] ss:$48 sps:$4 sm:$0xff]   ;;  %v8905_v12 = vld [vmem:[%s10461_s28 + $0x14] ss:$24 sps:$4 sm:$0xff]  }
 0x2d9   : > { %v4014_v42 = vpop.f32.mrf.mxu1  ;;  %6849 = vmatprep.subr.bf16.mxu1 %v8811_v0  ;;  %4086 = vst [vmem:[%s10662_s26 + $0x228] sm:$0xff] %v4011_v5  ;;  %v4013_v19 = vadd.f32 %v4012_v11, %v3800_v39  ;;  %v3802_v3 = vadd.f32 %v3801_v44, %v10643_v30  ;;  %v8822_v30 = vld [vmem:[%s11540_s3 + $0x194] ss:$8 sps:$4 sm:$0xff]  }
 0x2da   : > { %v5347_v31 = vpop.f32.mrf.mxu0  ;;  %5814 = vmatmul.mubr.bf16.gmra.mxu0 %v8806_v24  ;;  %v8851_v0 = vld [vmem:[%s9234_s13 + $0x3d4] ss:$48 sps:$4 sm:$0xff]  }
 0x2db   : > { %v5554_v48 = vpop.f32.mrf.mxu1  ;;  %4087 = vst [vmem:[%s10662_s26 + $0x230] sm:$0xff] %v4013_v19  ;;  %v4015_v47 = vadd.f32 %v4014_v42, %v3802_v3  ;;  %5823 = vmatprep.mubr.bf16.mxu0 %v8819_v16  ;;  %v8854_v42 = vld [vmem:[%s11540_s3 + $0x234] ss:$8 sps:$4 sm:$0xff]   ;;  %v8849_v31 = vld [vmem:[%s9234_s13 + $0x3d0] ss:$48 sps:$4 sm:$0xff]  }
 0x2dc   : > { %6850 = vmatpush2.bf16.msra.mxu1 %v8809_v22  ;;  %v5348_v27 = vpop.f32.mrf.mxu0  ;;  %v8846_v22 = vld [vmem:[%s11540_s3 + $0x240] ss:$8 sps:$4 sm:$0xff]  }
 0x2dd   : > { %v5555_v58 = vpop.f32.mrf.mxu1  ;;  %6851 = vmatprep.subr.bf16.mxu1 %v8814_v62  ;;  %4088 = vst [vmem:[%s10662_s26 + $0x238] sm:$0xff] %v4015_v47  ;;  %v8852_v47 = vld [vmem:[%s11540_s3 + $0x230] ss:$8 sps:$4 sm:$0xff]  }
 0x2de   : > { %v5349_v43 = vpop.f32.mrf.mxu0 }
 0x2df   : > { %v5556_v25 = vpop.f32.mrf.mxu1 }
 0x2e0   : > { %6852 = vmatpush2.bf16.msra.mxu1 %v8812_v32  ;;  %v5350_v8 = vpop.f32.mrf.mxu0  ;;  %v8860_v32 = vld [vmem:[%s9234_s13 + $0x434] ss:$48 sps:$4 sm:$0xff]  }
 0x2e1   : > { %v5557_v1 = vpop.f32.mrf.mxu1  ;;  %6853 = vmatprep.subr.bf16.mxu1 %v8822_v30  ;;  %v8857_v30 = vld [vmem:[%s11540_s3 + $0x224] ss:$8 sps:$4 sm:$0xff]  }
 0x2e2   : > { %v5353_v46 = vpop.f32.mrf.mxu0  ;;  %5824 = vmatmul.mubr.bf16.gmra.mxu0 %v8817_v13 }
 0x2e3   : > { %v5560_v26 = vpop.f32.mrf.mxu1  ;;  %5833 = vmatprep.mubr.bf16.mxu0 %v8831_v51  ;;  %v8855_v51 = vld [vmem:[%s11540_s3 + $0x220] ss:$8 sps:$4 sm:$0xff]  }
 0x2e4   : > { %6854 = vmatpush2.bf16.msra.mxu1 %v8820_v29  ;;  %v5354_v33 = vpop.f32.mrf.mxu0 }
 0x2e5   : > { %v5561_v53 = vpop.f32.mrf.mxu1  ;;  %6855 = vmatprep.subr.bf16.mxu1 %v8825_v63  ;;  %v8863_v63 = vld [vmem:[%s11540_s3 + $0x214] ss:$8 sps:$4 sm:$0xff]   ;;  %v8858_v33 = vld [vmem:[%s9234_s13 + $0x430] ss:$48 sps:$4 sm:$0xff]  }
 0x2e6   : > { %v5355_v40 = vpop.f32.mrf.mxu0 }
 0x2e7   : > { %v5562_v7 = vpop.f32.mrf.mxu1 }
 0x2e8   : > { %v10987_v17 = vadd.f32 %v5562_v7, %v5355_v40  ;;  %6856 = vmatpush2.bf16.msra.mxu1 %v8823_v9  ;;  %v5357_v50 = vpop.f32.mrf.mxu0 }
 0x2e9   : > { %v5564_v34 = vpop.f32.mrf.mxu1  ;;  %6876 = vmatprep.subr.bf16.mxu1 %v8834_v38  ;;  %v8861_v38 = vld [vmem:[%s11540_s3 + $0x210] ss:$8 sps:$4 sm:$0xff]  }
 0x2ea   : > { %v10996_v56 = vadd.f32 %v5564_v34, %v5357_v50  ;;  %v5361_v2 = vpop.f32.mrf.mxu0  ;;  %5834 = vmatmul.mubr.bf16.gmra.mxu0 %v8829_v45  ;;  %v8864_v34 = vld [vmem:[%s11540_s3 + $0x200] ss:$8 sps:$4 sm:$0xff]  }
 0x2eb   : > { %6858 = vmatmul.mubr.bf16.vlgmr.msra.gmra.mxu1 %v8826_v60  ;;  %v5568_v14 = vpop.f32.mrf.mxu1  ;;  %5843 = vmatprep.mubr.bf16.mxu0 %v8842_v61  ;;  %v8866_v60 = vld [vmem:[%s11540_s3 + $0x204] ss:$8 sps:$4 sm:$0xff]  }
 0x2ec   : > { %v10998_v4 = vadd.f32 %v5568_v14, %v5361_v2  ;;  %6877 = vmatpush1.bf16.msra.mxu1 %v8832_v36  ;;  %6867 = vmatprep.mubr.bf16.mxu1 %v7670_v37  ;;  %v5363_v49 = vpop.f32.mrf.mxu0  ;;  %v8872_v2 = vld [vmem:[%s11540_s3 + $0x2f4] ss:$8 sps:$4 sm:$0xff]  }
 0x2ed   : > { %v5570_v23 = vpop.f32.mrf.mxu1  ;;  %6878 = vmatprep.subr.bf16.mxu1 %v8837_v21 }
 0x2ee   : > { %v11006_v15 = vadd.f32 %v5570_v23, %v5363_v49  ;;  %v5365_v10 = vpop.f32.mrf.mxu0  ;;  %v8867_v23 = vld [vmem:[%s9234_s13 + $0x490] ss:$48 sps:$4 sm:$0xff]  }
 0x2ef   : > { %v5572_v55 = vpop.f32.mrf.mxu1 }
 0x2f0   : > { %v11009_v59 = vadd.f32 %v5572_v55, %v5365_v10  ;;  %6879 = vmatpush1.bf16.msra.mxu1 %v8835_v57  ;;  %v5367_v20 = vpop.f32.mrf.mxu0  ;;  %v8870_v10 = vld [vmem:[%s11540_s3 + $0x2f0] ss:$8 sps:$4 sm:$0xff]   ;;  %v8878_v55 = vld [vmem:[%s9234_s13 + $0x4f4] ss:$48 sps:$4 sm:$0xff]  }
 0x2f1   : > { %v5574_v28 = vpop.f32.mrf.mxu1  ;;  %6880 = vmatprep.subr.bf16.mxu1 %v8845_v52 }
 0x2f2   : > { %v11019_v11 = vadd.f32 %v5574_v28, %v5367_v20  ;;  %v5371_v24 = vpop.f32.mrf.mxu0  ;;  %5844 = vmatmul.mubr.bf16.gmra.mxu0 %v8840_v41 }
 0x2f3   : > { %6868 = vmatmul.mubr.bf16.gmra.mxu1 %v7669_v18  ;;  %v5578_v5 = vpop.f32.mrf.mxu1  ;;  %5853 = vmatprep.mubr.bf16.mxu0 %v8851_v0 }
 0x2f4   : > { %v11021_v39 = vadd.f32 %v5578_v5, %v5371_v24  ;;  %6881 = vmatpush1.bf16.msra.mxu1 %v8843_v54  ;;  %v5373_v16 = vpop.f32.mrf.mxu0  ;;  %6908 = vmatprep.mubr.bf16.mxu1 %v8905_v12  ;;  %v8875_v54 = vld [vmem:[%s11540_s3 + $0x2e4] ss:$8 sps:$4 sm:$0xff]   ;;  %v8873_v12 = vld [vmem:[%s11540_s3 + $0x2e0] ss:$8 sps:$4 sm:$0xff]  }
 0x2f5   : > { %v5580_v44 = vpop.f32.mrf.mxu1  ;;  %6882 = vmatprep.subr.bf16.mxu1 %v8848_v6 }
 0x2f6   : > { %v11029_v62 = vadd.f32 %v5580_v44, %v5373_v16  ;;  %v5375_v19 = vpop.f32.mrf.mxu0 }
 0x2f7   : > { %v5582_v3 = vpop.f32.mrf.mxu1 }
 0x2f8   : > { %v11032_v48 = vadd.f32 %v5582_v3, %v5375_v19  ;;  %6883 = vmatpush1.bf16.msra.mxu1 %v8846_v22  ;;  %v5377_v27 = vpop.f32.mrf.mxu0  ;;  %v8881_v22 = vld [vmem:[%s11540_s3 + $0x2d4] ss:$8 sps:$4 sm:$0xff]   ;;  %v8876_v19 = vld [vmem:[%s9234_s13 + $0x4f0] ss:$48 sps:$4 sm:$0xff]  }
 0x2f9   : > { %v5584_v58 = vpop.f32.mrf.mxu1  ;;  %6884 = vmatprep.subr.bf16.mxu1 %v8854_v42 }
 0x2fa   : > { %v11041_v43 = vadd.f32 %v5584_v58, %v5377_v27  ;;  %v5381_v25 = vpop.f32.mrf.mxu0  ;;  %5854 = vmatmul.mubr.bf16.gmra.mxu0 %v8849_v31  ;;  %v8879_v31 = vld [vmem:[%s11540_s3 + $0x2d0] ss:$8 sps:$4 sm:$0xff]   ;;  %v8884_v58 = vld [vmem:[%s11540_s3 + $0x2c4] ss:$8 sps:$4 sm:$0xff]  }
 0x2fb   : > { %v5588_v13 = vpop.f32.mrf.mxu1  ;;  %5863 = vmatprep.mubr.bf16.mxu0 %v8860_v32 }
 0x2fc   : > { %v11043_v29 = vadd.f32 %v5588_v13, %v5381_v25  ;;  %6885 = vmatpush1.bf16.msra.mxu1 %v8852_v47  ;;  %v5383_v8 = vpop.f32.mrf.mxu0  ;;  %v8887_v47 = vld [vmem:[%s9234_s13 + $0x554] ss:$48 sps:$4 sm:$0xff]  }
 0x2fd   : > { %v5590_v1 = vpop.f32.mrf.mxu1  ;;  %6886 = vmatprep.subr.bf16.mxu1 %v8857_v30 }
 0x2fe   : > { %v11051_v46 = vadd.f32 %v5590_v1, %v5383_v8  ;;  %v5385_v26 = vpop.f32.mrf.mxu0  ;;  %v8882_v8 = vld [vmem:[%s11540_s3 + $0x2c0] ss:$8 sps:$4 sm:$0xff]  }
 0x2ff   : > { %v5592_v9 = vpop.f32.mrf.mxu1 }
 0x300   : > { %v11054_v53 = vadd.f32 %v5592_v9, %v5385_v26  ;;  %6887 = vmatpush1.bf16.msra.mxu1 %v8855_v51  ;;  %v5387_v40 = vpop.f32.mrf.mxu0  ;;  %v8890_v26 = vld [vmem:[%s11540_s3 + $0x2b4] ss:$8 sps:$4 sm:$0xff]  }
 0x301   : > { %v5594_v7 = vpop.f32.mrf.mxu1  ;;  %6888 = vmatprep.subr.bf16.mxu1 %v8863_v63 }
 0x302   : > { %v11063_v45 = vadd.f32 %v5594_v7, %v5387_v40  ;;  %v5391_v36 = vpop.f32.mrf.mxu0  ;;  %5864 = vmatmul.mubr.bf16.gmra.mxu0 %v8858_v33  ;;  %v8888_v7 = vld [vmem:[%s11540_s3 + $0x2b0] ss:$8 sps:$4 sm:$0xff]  }
 0x303   : > { %v5598_v37 = vpop.f32.mrf.mxu1  ;;  %5873 = vmatprep.mubr.bf16.mxu0 %v8869_v35  ;;  %v8885_v35 = vld [vmem:[%s9234_s13 + $0x550] ss:$48 sps:$4 sm:$0xff]  }
 0x304   : > { %v11065_v50 = vadd.f32 %v5598_v37, %v5391_v36  ;;  %6889 = vmatpush1.bf16.msra.mxu1 %v8861_v38  ;;  %v5393_v21 = vpop.f32.mrf.mxu0 }
 0x305   : > { %v5600_v61 = vpop.f32.mrf.mxu1  ;;  %6890 = vmatprep.subr.bf16.mxu1 %v8866_v60  ;;  %v8896_v60 = vld [vmem:[%s9234_s13 + $0x5b4] ss:$48 sps:$4 sm:$0xff]  }
 0x306   : > { %v11073_v14 = vadd.f32 %v5600_v61, %v5393_v21  ;;  %v5395_v57 = vpop.f32.mrf.mxu0 }
 0x307   : > { %v5602_v49 = vpop.f32.mrf.mxu1 }
 0x308   : > { %v11076_v52 = vadd.f32 %v5602_v49, %v5395_v57  ;;  %6891 = vmatpush1.bf16.msra.mxu1 %v8864_v34  ;;  %v5397_v18 = vpop.f32.mrf.mxu0  ;;  %v8893_v34 = vld [vmem:[%s11540_s3 + $0x2a4] ss:$8 sps:$4 sm:$0xff]   ;;  %v8891_v49 = vld [vmem:[%s11540_s3 + $0x2a0] ss:$8 sps:$4 sm:$0xff]  }
 0x309   : > { %v5604_v41 = vpop.f32.mrf.mxu1  ;;  %6892 = vmatprep.subr.bf16.mxu1 %v8872_v2 }
 0x30a   : > { %v11085_v0 = vadd.f32 %v5604_v41, %v5397_v18  ;;  %v5401_v20 = vpop.f32.mrf.mxu0  ;;  %5874 = vmatmul.mubr.bf16.gmra.mxu0 %v8867_v23 }
 0x30b   : > { %v5608_v28 = vpop.f32.mrf.mxu1  ;;  %5883 = vmatprep.mubr.bf16.mxu0 %v8878_v55  ;;  %v8899_v55 = vld [vmem:[%s11540_s3 + $0x294] ss:$8 sps:$4 sm:$0xff]  }
 0x30c   : > { %v11087_v6 = vadd.f32 %v5608_v28, %v5401_v20  ;;  %6893 = vmatpush2.bf16.msra.mxu1 %v8870_v10  ;;  %v5403_v24 = vpop.f32.mrf.mxu0  ;;  %v8894_v20 = vld [vmem:[%s9234_s13 + $0x5b0] ss:$48 sps:$4 sm:$0xff]  }
 0x30d   : > { %v5610_v5 = vpop.f32.mrf.mxu1  ;;  %6894 = vmatprep.subr.bf16.mxu1 %v8875_v54 }
 0x30e   : > { %v11095_v16 = vadd.f32 %v5610_v5, %v5403_v24  ;;  %v5405_v44 = vpop.f32.mrf.mxu0  ;;  %v8908_v24 = vld [vmem:[%s9234_s13 + $0x614] ss:$48 sps:$4 sm:$0xff]  }
 0x30f   : > { %v5612_v42 = vpop.f32.mrf.mxu1 }
 0x310   : > { %v11098_v3 = vadd.f32 %v5612_v42, %v5405_v44  ;;  %6895 = vmatpush2.bf16.msra.mxu1 %v8873_v12  ;;  %v5407_v32 = vpop.f32.mrf.mxu0  ;;  %v8897_v12 = vld [vmem:[%s11540_s3 + $0x290] ss:$8 sps:$4 sm:$0xff]   ;;  %v8902_v44 = vld [vmem:[%s11540_s3 + $0x284] ss:$8 sps:$4 sm:$0xff]  }
 0x311   : > { %v5614_v27 = vpop.f32.mrf.mxu1  ;;  %6896 = vmatprep.subr.bf16.mxu1 %v8881_v22 }
 0x312   : > { %v11107_v30 = vadd.f32 %v5614_v27, %v5407_v32  ;;  %v5411_v25 = vpop.f32.mrf.mxu0  ;;  %5884 = vmatmul.mubr.bf16.gmra.mxu0 %v8876_v19  ;;  %v8900_v32 = vld [vmem:[%s11540_s3 + $0x280] ss:$8 sps:$4 sm:$0xff]  }
 0x313   : > { %v5618_v13 = vpop.f32.mrf.mxu1  ;;  %5893 = vmatprep.mubr.bf16.mxu0 %v8887_v47 }
 0x314   : > { %v11109_v51 = vadd.f32 %v5618_v13, %v5411_v25  ;;  %6897 = vmatpush2.bf16.msra.mxu1 %v8879_v31  ;;  %v5413_v1 = vpop.f32.mrf.mxu0  ;;  %v6146_v25 = vld [vmem:[%s10461_s28 + $0x40] sm:$0xff] }
 0x315   : > { %v5620_v63 = vpop.f32.mrf.mxu1  ;;  %6898 = vmatprep.subr.bf16.mxu1 %v8884_v58 }
 0x316   : > { %v11117_v9 = vadd.f32 %v5620_v63, %v5413_v1  ;;  %v5415_v33 = vpop.f32.mrf.mxu0  ;;  %v8903_v63 = vld [vmem:[%s10461_s28 + $0x10] ss:$24 sps:$4 sm:$0xff]   ;;  %s6954_s28 = sshll.u32 %s10662_s26, 4  ;;  %s11484_s28 = int_to_ptr.vmem [resolvable:$true] %s6954_s28 }
 0x317   : > { %v5622_v38 = vpop.f32.mrf.mxu1  ;;  %s8914_s12 = scalar_lea.vmem %s11484_s28, 9216  ;;  %p8921_p5 = scmp.lt.s32.totalorder %s11484_s28, %s8919_s22 }
 0x318   : > { %v11120_v40 = vadd.f32 %v5622_v38, %v5415_v33  ;;  %6899 = vmatpush2.bf16.msra.mxu1 %v8882_v8  ;;  %v5417_v36 = vpop.f32.mrf.mxu0  ;;  %v7672_v38 = vcombine.high %v6146_v25, %v6146_v25  ;;  %p8915_p2 = scmp.ne.s32.totalorder %s11484_s28, %s8914_s12  ;;  %p8922_p6 = scmp.lt.s32.totalorder %s8920_s29, %s8914_s12 }
 0x319   : > { %v5624_v37 = vpop.f32.mrf.mxu1  ;;  %6900 = vmatprep.subr.bf16.mxu1 %v8890_v26  ;;  %v8906_v26 = vld [vmem:[%s9234_s13 + $0x610] ss:$48 sps:$4 sm:$0xff]  }
 0x31a   : > { %v11129_v21 = vadd.f32 %v5624_v37, %v5417_v36  ;;  %v5421_v61 = vpop.f32.mrf.mxu0  ;;  %5894 = vmatmul.mubr.bf16.gmra.mxu0 %v8885_v35  ;;  %v8913_v35 = vld [vmem:[%s9234_s13 + $0x674] ss:$48 sps:$4 sm:$0xff]   ;;  %p8916_p3 = pnand %p8915_p2, %p9077_p9  ;;  %p8923_p7 = por %p8922_p6, %p8921_p5 }
 0x31b   : > { %v5628_v2 = vpop.f32.mrf.mxu1  ;;  %5903 = vmatprep.mubr.bf16.mxu0 %v8896_v60 }
 0x31c   : > { %v11131_v57 = vadd.f32 %v5628_v2, %v5421_v61  ;;  %6901 = vmatpush2.bf16.msra.mxu1 %v8888_v7  ;;  %v5423_v23 = vpop.f32.mrf.mxu0  ;;  %p8917_p4 = pneg %p8916_p3 }
 0x31d   : > { %v5630_v10 = vpop.f32.mrf.mxu1  ;;  %6902 = vmatprep.subr.bf16.mxu1 %v8893_v34 }
 0x31e   : > { %v11139_v18 = vadd.f32 %v5630_v10, %v5423_v23  ;;  %v5425_v41 = vpop.f32.mrf.mxu0  ;;  %p8924_p8 = pnand %p8923_p7, %p8917_p4 }
 0x31f   : > { %v5632_v54 = vpop.f32.mrf.mxu1 }
 0x320   : > { %v11142_v28 = vadd.f32 %v5632_v54, %v5425_v41  ;;  %6903 = vmatpush2.bf16.msra.mxu1 %v8891_v49  ;;  %v5427_v5 = vpop.f32.mrf.mxu0  ;;  %v7671_v41 = vcombine.low %v6146_v25, %v6146_v25  ;;  %v8911_v54 = vld [vmem:[%s9234_s13 + $0x670] ss:$48 sps:$4 sm:$0xff]   ;;  %s7775_s13 = smul.u32 9216, %s9051_s21 }
 0x321   : > { %v5634_v22 = vpop.f32.mrf.mxu1  ;;  %6904 = vmatprep.subr.bf16.mxu1 %v8899_v55 }
 0x322   : > { %v11151_v42 = vadd.f32 %v5634_v22, %v5427_v5  ;;  %v5431_v19 = vpop.f32.mrf.mxu0  ;;  %5904 = vmatmul.mubr.bf16.gmra.mxu0 %v8894_v20  ;;  %s11482_s10 = scalar_lea.hbm %s11541_s4, %s7775_s13 }
 0x323   : > { %v5638_v31 = vpop.f32.mrf.mxu1  ;;  %5913 = vmatprep.mubr.bf16.mxu0 %v8908_v24 }
 0x324   : > { %v11153_v47 = vadd.f32 %v5638_v31, %v5431_v19  ;;  %6905 = vmatpush2.bf16.msra.mxu1 %v8897_v12  ;;  %v5433_v27 = vpop.f32.mrf.mxu0 }
 0x325   : > { %v5640_v58 = vpop.f32.mrf.mxu1  ;;  %6906 = vmatprep.subr.bf16.mxu1 %v8902_v44 }
 0x326   : > { %v11159_v13 = vadd.f32 %v5640_v58, %v5433_v27  ;;  %v5435_v8 = vpop.f32.mrf.mxu0 }
 0x327   : > { %v5642_v1 = vpop.f32.mrf.mxu1 }
 0x328   : > { %v11163_v33 = vadd.f32 %v5642_v1, %v5435_v8  ;;  %6907 = vmatpush2.bf16.msra.mxu1 %v8900_v32  ;;  %v5437_v7 = vpop.f32.mrf.mxu0 }
 0x329   : > { %v5644_v60 = vpop.f32.mrf.mxu1 }
 0x32a   : > { %v11166_v36 = vadd.f32 %v5644_v60, %v5437_v7  ;;  %v5441_v37 = vpop.f32.mrf.mxu0  ;;  %5914 = vmatmul.mubr.bf16.gmra.mxu0 %v8906_v26 }
 0x32b   : > { %6909 = vmatmul.mubr.bf16.vlgmr.msra.gmra.mxu1 %v8903_v63  ;;  %v5648_v34 = vpop.f32.mrf.mxu1  ;;  %5923 = vmatprep.mubr.bf16.mxu0 %v8913_v35 }
 0x32c   : > { %v11168_v61 = vadd.f32 %v5648_v34, %v5441_v37  ;;  %6918 = vmatprep.mubr.bf16.mxu1 %v7672_v38  ;;  %v5443_v2 = vpop.f32.mrf.mxu0 }
 0x32d   : > { %v5650_v49 = vpop.f32.mrf.mxu1 }
 0x32e   : > { %v11170_v23 = vadd.f32 %v5650_v49, %v5443_v2  ;;  %v5445_v10 = vpop.f32.mrf.mxu0 }
 0x32f   : > { %v5652_v55 = vpop.f32.mrf.mxu1 }
 0x330   : > { %v11173_v20 = vadd.f32 %v5652_v55, %v5445_v10  ;;  %v5447_v12 = vpop.f32.mrf.mxu0 }
 0x331   : > { %v5654_v24 = vpop.f32.mrf.mxu1 }
 0x332   : > { %v11175_v5 = vadd.f32 %v5654_v24, %v5447_v12  ;;  %v5451_v22 = vpop.f32.mrf.mxu0  ;;  %5924 = vmatmul.mubr.bf16.gmra.mxu0 %v8911_v54 }
 0x333   : > { %6919 = vmatmul.mubr.bf16.gmra.mxu1 %v7671_v41  ;;  %v5658_v44 = vpop.f32.mrf.mxu1 }
 0x334   : > { %v11177_v19 = vadd.f32 %v5658_v44, %v5451_v22  ;;  %v5453_v31 = vpop.f32.mrf.mxu0 }
 0x335   : > { %v5660_v32 = vpop.f32.mrf.mxu1 }
 0x336   : > { %v11179_v27 = vadd.f32 %v5660_v32, %v5453_v31  ;;  %v5455_v58 = vpop.f32.mrf.mxu0 }
 0x337   : > { %v5662_v8 = vpop.f32.mrf.mxu1 }
 0x338   : > { %v11181_v25 = vadd.f32 %v5662_v8, %v5455_v58  ;;  %v5457_v1 = vpop.f32.mrf.mxu0 }
 0x339   : > { %v5664_v63 = vpop.f32.mrf.mxu1 }
 0x33a   : > { %v11183_v26 = vadd.f32 %v5664_v63, %v5457_v1  ;;  %v5461_v38 = vpop.f32.mrf.mxu0 }
 0x33b   : > { %v5668_v35 = vpop.f32.mrf.mxu1 }
 0x33c   : > { %v11185_v7 = vadd.f32 %v5668_v35, %v5461_v38  ;;  %v5463_v60 = vpop.f32.mrf.mxu0 }
 0x33d   : > { %v5670_v37 = vpop.f32.mrf.mxu1 }
 0x33e   : > { %v11187_v34 = vadd.f32 %v5670_v37, %v5463_v60  ;;  %v5465_v2 = vpop.f32.mrf.mxu0 }
 0x33f   : > { %v5672_v49 = vpop.f32.mrf.mxu1 }
 0x340   : > { %v11189_v10 = vadd.f32 %v5672_v49, %v5465_v2  ;;  %v5467_v55 = vpop.f32.mrf.mxu0 }
 0x341   : > { %v5674_v41 = vpop.f32.mrf.mxu1 }
 0x342   : > { %v11191_v54 = vadd.f32 %v5674_v41, %v5467_v55  ;;  %v5471_v12 = vpop.f32.mrf.mxu0 }
 0x343   : > { %v5678_v24 = vpop.f32.mrf.mxu1 }
 0x344   : > { %v11193_v22 = vadd.f32 %v5678_v24, %v5471_v12  ;;  %v5473_v44 = vpop.f32.mrf.mxu0 }
 0x345   : > { %v5680_v31 = vpop.f32.mrf.mxu1 }
 0x346   : > { %v11195_v32 = vadd.f32 %v5680_v31, %v5473_v44  ;;  %v5475_v58 = vpop.f32.mrf.mxu0 }
 0x347   : > { %v5682_v8 = vpop.f32.mrf.mxu1 }
 0x348   : > { %11648 = vst [vmem:[#allocation26_spill] sm:$0xff] %v11195_v32  ;;  %v11197_v1 = vadd.f32 %v5682_v8, %v5475_v58  ;;  %v5477_v63 = vpop.f32.mrf.mxu0 }
 0x349   : > { %v5684_v38 = vpop.f32.mrf.mxu1 }
 0x34a   : > { %11649 = vst [vmem:[#allocation27_spill] sm:$0xff] %v11197_v1  ;;  %v11199_v35 = vadd.f32 %v5684_v38, %v5477_v63  ;;  %v5481_v60 = vpop.f32.mrf.mxu0 }
 0x34b   : > { %v5688_v37 = vpop.f32.mrf.mxu1 }
 0x34c   : > { %11650 = vst [vmem:[#allocation28_spill] sm:$0xff] %v11199_v35  ;;  %v11201_v2 = vadd.f32 %v5688_v37, %v5481_v60  ;;  %v5483_v49 = vpop.f32.mrf.mxu0 }
 0x34d   : > { %v5690_v55 = vpop.f32.mrf.mxu1 }
 0x34e   : > { %11651 = vst [vmem:[#allocation29_spill] sm:$0xff] %v11201_v2  ;;  %v11203_v41 = vadd.f32 %v5690_v55, %v5483_v49  ;;  %v5485_v12 = vpop.f32.mrf.mxu0 }
 0x34f   : > { %v5692_v24 = vpop.f32.mrf.mxu1 }
 0x350   : > { %11652 = vst [vmem:[#allocation30_spill] sm:$0xff] %v11203_v41  ;;  %v11205_v44 = vadd.f32 %v5692_v24, %v5485_v12  ;;  %v5487_v31 = vpop.f32.mrf.mxu0 }
 0x351   : > { %v5694_v32 = vpop.f32.mrf.mxu1 }
 0x352   : > { %11653 = vst [vmem:[#allocation31_spill] sm:$0xff] %v11205_v44  ;;  %v11207_v58 = vadd.f32 %v5694_v32, %v5487_v31  ;;  %v5491_v8 = vpop.f32.mrf.mxu0 }
 0x353   : > { %v5698_v1 = vpop.f32.mrf.mxu1 }
 0x354   : > { %11654 = vst [vmem:[#allocation32_spill] sm:$0xff] %v11207_v58  ;;  %v11209_v63 = vadd.f32 %v5698_v1, %v5491_v8  ;;  %v5493_v38 = vpop.f32.mrf.mxu0 }
 0x355   : > { %v5700_v35 = vpop.f32.mrf.mxu1 }
 0x356   : > { %11655 = vst [vmem:[#allocation33_spill] sm:$0xff] %v11209_v63  ;;  %v11211_v60 = vadd.f32 %v5700_v35, %v5493_v38  ;;  %v5495_v37 = vpop.f32.mrf.mxu0 }
 0x357   : > { %v5702_v2 = vpop.f32.mrf.mxu1 }
 0x358   : > { %11656 = vst [vmem:[#allocation34_spill] sm:$0xff] %v11211_v60  ;;  %v11213_v49 = vadd.f32 %v5702_v2, %v5495_v37  ;;  %v5497_v55 = vpop.f32.mrf.mxu0 }
 0x359   : > { %v5704_v41 = vpop.f32.mrf.mxu1 }
 0x35a   : > { %11657 = vst [vmem:[#allocation35_spill] sm:$0xff] %v11213_v49  ;;  %v11215_v12 = vadd.f32 %v5704_v41, %v5497_v55  ;;  %v5501_v24 = vpop.f32.mrf.mxu0 }
 0x35b   : > { %v5708_v44 = vpop.f32.mrf.mxu1 }
 0x35c   : > { %11658 = vst [vmem:[#allocation36_spill] sm:$0xff] %v11215_v12  ;;  %v11217_v32 = vadd.f32 %v5708_v44, %v5501_v24  ;;  %v5503_v31 = vpop.f32.mrf.mxu0 }
 0x35d   : > { %v5710_v58 = vpop.f32.mrf.mxu1 }
 0x35e   : > { %11659 = vst [vmem:[#allocation37_spill] sm:$0xff] %v11217_v32  ;;  %v11219_v1 = vadd.f32 %v5710_v58, %v5503_v31  ;;  %v5505_v8 = vpop.f32.mrf.mxu0 }
 0x35f   : > { %v5712_v63 = vpop.f32.mrf.mxu1 }
 0x360   : > { %11660 = vst [vmem:[#allocation6_spill] sm:$0xff] %v11219_v1  ;;  %v11221_v35 = vadd.f32 %v5712_v63, %v5505_v8  ;;  %v5507_v38 = vpop.f32.mrf.mxu0 }
 0x361   : > { %v5714_v60 = vpop.f32.mrf.mxu1 }
 0x362   : > { %11661 = vst [vmem:[#allocation7_spill] sm:$0xff] %v11221_v35  ;;  %v11223_v2 = vadd.f32 %v5714_v60, %v5507_v38  ;;  %v5511_v37 = vpop.f32.mrf.mxu0 }
 0x363   : > { %v5718_v49 = vpop.f32.mrf.mxu1 }
 0x364   : > { %11662 = vst [vmem:[#allocation8_spill] sm:$0xff] %v11223_v2  ;;  %v11225_v41 = vadd.f32 %v5718_v49, %v5511_v37  ;;  %v5513_v55 = vpop.f32.mrf.mxu0 }
 0x365   : > { %v5720_v12 = vpop.f32.mrf.mxu1 }
 0x366   : > { %11663 = vst [vmem:[#allocation9_spill] sm:$0xff] %v11225_v41  ;;  %v11227_v44 = vadd.f32 %v5720_v12, %v5513_v55  ;;  %v5515_v24 = vpop.f32.mrf.mxu0 }
 0x367   : > { %v5722_v32 = vpop.f32.mrf.mxu1 }
 0x368   : > { %11664 = vst [vmem:[#allocation10_spill] sm:$0xff] %v11227_v44  ;;  %v11229_v58 = vadd.f32 %v5722_v32, %v5515_v24  ;;  %v5517_v31 = vpop.f32.mrf.mxu0 }
 0x369   : > { %v5724_v1 = vpop.f32.mrf.mxu1 }
 0x36a   : > { %11665 = vst [vmem:[#allocation11_spill] sm:$0xff] %v11229_v58  ;;  %v11231_v63 = vadd.f32 %v5724_v1, %v5517_v31  ;;  %v5761_v8 = vpop.f32.mrf.mxu0 }
 0x36b   : > { %v11233_v60 = vpop.f32.mrf.mxu1 }
 0x36c   : > { %11666 = vst [vmem:[#allocation12_spill] sm:$0xff] %v11231_v63  ;;  %v5762_v38 = vpop.f32.mrf.mxu0 }
 0x36d   : > { %v11235_v2 = vpop.f32.mrf.mxu1 }
 0x36e   : > { %v5763_v49 = vpop.f32.mrf.mxu0 }
 0x36f   : > { %v11237_v37 = vpop.f32.mrf.mxu1  ;;  %v5934_v49 = vld [vmem:[%s10662_s26] sm:$0xff] }
 0x370   : > { %v5764_v12 = vpop.f32.mrf.mxu0 }
 0x371   : > { %v11239_v55 = vpop.f32.mrf.mxu1 }
 0x372   : > { %v5767_v32 = vpop.f32.mrf.mxu0 }
 0x373   : > { %v11241_v24 = vpop.f32.mrf.mxu1  ;;  %v5935_v32 = vld [vmem:[%s10662_s26 + $0x8] sm:$0xff] }
 0x374   : > { %11667 = vst [vmem:[#allocation13_spill] sm:$0xff] %v11241_v24  ;;  %v5768_v1 = vpop.f32.mrf.mxu0 }
 0x375   : > { %v11243_v31 = vpop.f32.mrf.mxu1 }
 0x376   : > { %11668 = vst [vmem:[#allocation14_spill] sm:$0xff] %v11243_v31  ;;  %v5769_v8 = vpop.f32.mrf.mxu0 }
 0x377   : > { %v6822_v38 = vpop.f32.mrf.mxu1  ;;  %v5770_v63 = vadd.f32 %v5769_v8, %v10987_v17 }
 0x378   : > { %v5771_v58 = vpop.f32.mrf.mxu0  ;;  %v5936_v38 = vld [vmem:[%s10662_s26 + $0x10] sm:$0xff] }
 0x379   : > { %v6823_v12 = vpop.f32.mrf.mxu1  ;;  %v6000_v44 = vadd.f32 %v5934_v49, %v5770_v63  ;;  %v5772_v41 = vadd.f32 %v5771_v58, %v10996_v56  ;;  %v5937_v63 = vld [vmem:[%s10662_s26 + $0x18] sm:$0xff] }
 0x37a   : > { %v5775_v24 = vpop.f32.mrf.mxu0 }
 0x37b   : > { %6066 = vst [vmem:[%s10662_s26] sm:$0xff] %v6000_v44  ;;  %v6001_v1 = vadd.f32 %v5935_v32, %v5772_v41  ;;  %v5776_v31 = vadd.f32 %v5775_v24, %v10998_v4  ;;  %v5938_v41 = vld [vmem:[%s10662_s26 + $0x20] sm:$0xff]  ;;  %v5940_v32 = vld [vmem:[%s10662_s26 + $0x30] sm:$0xff] }
 0x37c   : > { %v5777_v35 = vpop.f32.mrf.mxu0 }
 0x37d   : > { %6067 = vst [vmem:[%s10662_s26 + $0x8] sm:$0xff] %v6001_v1  ;;  %v6002_v17 = vadd.f32 %v5936_v38, %v5776_v31  ;;  %v5778_v8 = vadd.f32 %v5777_v35, %v11006_v15  ;;  %v5939_v31 = vld [vmem:[%s10662_s26 + $0x28] sm:$0xff] }
 0x37e   : > { %v5779_v49 = vpop.f32.mrf.mxu0 }
 0x37f   : > { %6068 = vst [vmem:[%s10662_s26 + $0x10] sm:$0xff] %v6002_v17  ;;  %v6003_v56 = vadd.f32 %v5937_v63, %v5778_v8  ;;  %v5780_v58 = vadd.f32 %v5779_v49, %v11009_v59  ;;  %v5941_v17 = vld [vmem:[%s10662_s26 + $0x38] sm:$0xff]  ;;  %v5942_v49 = vld [vmem:[%s10662_s26 + $0x40] sm:$0xff] }
 0x380   : > { %v5781_v44 = vpop.f32.mrf.mxu0 }
 0x381   : > { %6069 = vst [vmem:[%s10662_s26 + $0x18] sm:$0xff] %v6003_v56  ;;  %v6004_v4 = vadd.f32 %v5938_v41, %v5780_v58  ;;  %v5782_v24 = vadd.f32 %v5781_v44, %v11019_v11  ;;  %v5943_v41 = vld [vmem:[%s10662_s26 + $0x48] sm:$0xff] }
 0x382   : > { %v5785_v12 = vpop.f32.mrf.mxu0 }
 0x383   : > { %6070 = vst [vmem:[%s10662_s26 + $0x20] sm:$0xff] %v6004_v4  ;;  %v6005_v15 = vadd.f32 %v5939_v31, %v5782_v24  ;;  %v5786_v35 = vadd.f32 %v5785_v12, %v11021_v39  ;;  %v5944_v24 = vld [vmem:[%s10662_s26 + $0x50] sm:$0xff] }
 0x384   : > { %v5787_v1 = vpop.f32.mrf.mxu0 }
 0x385   : > { %6071 = vst [vmem:[%s10662_s26 + $0x28] sm:$0xff] %v6005_v15  ;;  %v6006_v59 = vadd.f32 %v5940_v32, %v5786_v35  ;;  %v5788_v38 = vadd.f32 %v5787_v1, %v11029_v62  ;;  %v5945_v15 = vld [vmem:[%s10662_s26 + $0x58] sm:$0xff]  ;;  %v5946_v1 = vld [vmem:[%s10662_s26 + $0x60] sm:$0xff] }
 0x386   : > { %v5789_v8 = vpop.f32.mrf.mxu0 }
 0x387   : > { %6072 = vst [vmem:[%s10662_s26 + $0x30] sm:$0xff] %v6006_v59  ;;  %v6007_v11 = vadd.f32 %v5941_v17, %v5788_v38  ;;  %v5790_v63 = vadd.f32 %v5789_v8, %v11032_v48  ;;  %v5947_v17 = vld [vmem:[%s10662_s26 + $0x68] sm:$0xff] }
 0x388   : > { %v5791_v56 = vpop.f32.mrf.mxu0 }
 0x389   : > { %6073 = vst [vmem:[%s10662_s26 + $0x38] sm:$0xff] %v6007_v11  ;;  %v6008_v39 = vadd.f32 %v5942_v49, %v5790_v63  ;;  %v5792_v58 = vadd.f32 %v5791_v56, %v11041_v43  ;;  %v5948_v63 = vld [vmem:[%s10662_s26 + $0x70] sm:$0xff] }
 0x38a   : > { %v5795_v44 = vpop.f32.mrf.mxu0 }
 0x38b   : > { %6074 = vst [vmem:[%s10662_s26 + $0x40] sm:$0xff] %v6008_v39  ;;  %v6009_v62 = vadd.f32 %v5943_v41, %v5792_v58  ;;  %v5796_v4 = vadd.f32 %v5795_v44, %v11043_v29  ;;  %v5949_v39 = vld [vmem:[%s10662_s26 + $0x78] sm:$0xff]  ;;  %v5950_v44 = vld [vmem:[%s10662_s26 + $0x80] sm:$0xff] }
 0x38c   : > { %v5797_v31 = vpop.f32.mrf.mxu0 }
 0x38d   : > { %6075 = vst [vmem:[%s10662_s26 + $0x48] sm:$0xff] %v6009_v62  ;;  %v6010_v48 = vadd.f32 %v5944_v24, %v5796_v4  ;;  %v5798_v12 = vadd.f32 %v5797_v31, %v11051_v46  ;;  %v5951_v24 = vld [vmem:[%s10662_s26 + $0x88] sm:$0xff] }
 0x38e   : > { %v5799_v35 = vpop.f32.mrf.mxu0 }
 0x38f   : > { %6076 = vst [vmem:[%s10662_s26 + $0x50] sm:$0xff] %v6010_v48  ;;  %v6011_v43 = vadd.f32 %v5945_v15, %v5798_v12  ;;  %v5800_v32 = vadd.f32 %v5799_v35, %v11054_v53  ;;  %v5952_v12 = vld [vmem:[%s10662_s26 + $0x90] sm:$0xff] }
 0x390   : > { %v5801_v59 = vpop.f32.mrf.mxu0 }
 0x391   : > { %6077 = vst [vmem:[%s10662_s26 + $0x58] sm:$0xff] %v6011_v43  ;;  %v6012_v29 = vadd.f32 %v5946_v1, %v5800_v32  ;;  %v5802_v38 = vadd.f32 %v5801_v59, %v11063_v45  ;;  %v5953_v43 = vld [vmem:[%s10662_s26 + $0x98] sm:$0xff]  ;;  %v5954_v59 = vld [vmem:[%s10662_s26 + $0xa0] sm:$0xff] }
 0x392   : > { %v5805_v8 = vpop.f32.mrf.mxu0 }
 0x393   : > { %6078 = vst [vmem:[%s10662_s26 + $0x60] sm:$0xff] %v6012_v29  ;;  %v6013_v46 = vadd.f32 %v5947_v17, %v5802_v38  ;;  %v5806_v11 = vadd.f32 %v5805_v8, %v11065_v50  ;;  %v5955_v17 = vld [vmem:[%s10662_s26 + $0xa8] sm:$0xff] }
 0x394   : > { %v5807_v49 = vpop.f32.mrf.mxu0 }
 0x395   : > { %6079 = vst [vmem:[%s10662_s26 + $0x68] sm:$0xff] %v6013_v46  ;;  %v6014_v53 = vadd.f32 %v5948_v63, %v5806_v11  ;;  %v5808_v56 = vadd.f32 %v5807_v49, %v11073_v14  ;;  %v5956_v11 = vld [vmem:[%s10662_s26 + $0xb0] sm:$0xff] }
 0x396   : > { %v5809_v58 = vpop.f32.mrf.mxu0 }
 0x397   : > { %6080 = vst [vmem:[%s10662_s26 + $0x70] sm:$0xff] %v6014_v53  ;;  %v6015_v45 = vadd.f32 %v5949_v39, %v5808_v56  ;;  %v5810_v41 = vadd.f32 %v5809_v58, %v11076_v52  ;;  %v5957_v53 = vld [vmem:[%s10662_s26 + $0xb8] sm:$0xff]  ;;  %v5958_v58 = vld [vmem:[%s10662_s26 + $0xc0] sm:$0xff] }
 0x398   : > { %v5811_v62 = vpop.f32.mrf.mxu0 }
 0x399   : > { %6081 = vst [vmem:[%s10662_s26 + $0x78] sm:$0xff] %v6015_v45  ;;  %v6016_v50 = vadd.f32 %v5950_v44, %v5810_v41  ;;  %v5812_v4 = vadd.f32 %v5811_v62, %v11085_v0  ;;  %v5959_v44 = vld [vmem:[%s10662_s26 + $0xc8] sm:$0xff] }
 0x39a   : > { %v5815_v31 = vpop.f32.mrf.mxu0 }
 0x39b   : > { %6082 = vst [vmem:[%s10662_s26 + $0x80] sm:$0xff] %v6016_v50  ;;  %v6017_v14 = vadd.f32 %v5951_v24, %v5812_v4  ;;  %v5816_v48 = vadd.f32 %v5815_v31, %v11087_v6  ;;  %v5960_v24 = vld [vmem:[%s10662_s26 + $0xd0] sm:$0xff] }
 0x39c   : > { %v5817_v15 = vpop.f32.mrf.mxu0 }
 0x39d   : > { %6083 = vst [vmem:[%s10662_s26 + $0x88] sm:$0xff] %v6017_v14  ;;  %v6018_v52 = vadd.f32 %v5952_v12, %v5816_v48  ;;  %v5818_v35 = vadd.f32 %v5817_v15, %v11095_v16  ;;  %v5961_v48 = vld [vmem:[%s10662_s26 + $0xd8] sm:$0xff] }
 0x39e   : > { %v5819_v32 = vpop.f32.mrf.mxu0 }
 0x39f   : > { %6084 = vst [vmem:[%s10662_s26 + $0x90] sm:$0xff] %v6018_v52  ;;  %v6019_v0 = vadd.f32 %v5953_v43, %v5818_v35  ;;  %v5820_v1 = vadd.f32 %v5819_v32, %v11098_v3  ;;  %v5962_v35 = vld [vmem:[%s10662_s26 + $0xe0] sm:$0xff] }
 0x3a0   : > { %v5821_v29 = vpop.f32.mrf.mxu0 }
 0x3a1   : > { %6085 = vst [vmem:[%s10662_s26 + $0x98] sm:$0xff] %v6019_v0  ;;  %v6020_v6 = vadd.f32 %v5954_v59, %v5820_v1  ;;  %v5822_v38 = vadd.f32 %v5821_v29, %v11107_v30  ;;  %v5963_v1 = vld [vmem:[%s10662_s26 + $0xe8] sm:$0xff] }
 0x3a2   : > { %v5825_v8 = vpop.f32.mrf.mxu0 }
 0x3a3   : > { %6086 = vst [vmem:[%s10662_s26 + $0xa0] sm:$0xff] %v6020_v6  ;;  %v6021_v16 = vadd.f32 %v5955_v17, %v5822_v38  ;;  %v5826_v46 = vadd.f32 %v5825_v8, %v11109_v51  ;;  %v5964_v38 = vld [vmem:[%s10662_s26 + $0xf0] sm:$0xff] }
 0x3a4   : > { %v5827_v63 = vpop.f32.mrf.mxu0 }
 0x3a5   : > { %6087 = vst [vmem:[%s10662_s26 + $0xa8] sm:$0xff] %v6021_v16  ;;  %v6022_v3 = vadd.f32 %v5956_v11, %v5826_v46  ;;  %v5828_v49 = vadd.f32 %v5827_v63, %v11117_v9  ;;  %v5965_v46 = vld [vmem:[%s10662_s26 + $0xf8] sm:$0xff] }
 0x3a6   : > { %v5829_v56 = vpop.f32.mrf.mxu0 }
 0x3a7   : > { %6088 = vst [vmem:[%s10662_s26 + $0xb0] sm:$0xff] %v6022_v3  ;;  %v6023_v30 = vadd.f32 %v5957_v53, %v5828_v49  ;;  %v5830_v39 = vadd.f32 %v5829_v56, %v11120_v40  ;;  %v5966_v49 = vld [vmem:[%s10662_s26 + $0x100] sm:$0xff] }
 0x3a8   : > { %v5831_v45 = vpop.f32.mrf.mxu0 }
 0x3a9   : > { %6089 = vst [vmem:[%s10662_s26 + $0xb8] sm:$0xff] %v6023_v30  ;;  %v6024_v51 = vadd.f32 %v5958_v58, %v5830_v39  ;;  %v5832_v41 = vadd.f32 %v5831_v45, %v11129_v21 }
 0x3aa   : > { %v5835_v9 = vpop.f32.mrf.mxu0 }
 0x3ab   : > { %v11321_v62 = vpop.f32.mrf.mxu1  ;;  %6090 = vst [vmem:[%s10662_s26 + $0xc0] sm:$0xff] %v6024_v51  ;;  %v6025_v50 = vadd.f32 %v5959_v44, %v5832_v41  ;;  %v5836_v4 = vadd.f32 %v5835_v9, %v11131_v57  ;;  %v5968_v41 = vld [vmem:[%s10662_s26 + $0x110] sm:$0xff] }
 0x3ac   : > { %v5837_v31 = vpop.f32.mrf.mxu0 }
 0x3ad   : > { %v11326_v40 = vpop.f32.mrf.mxu1  ;;  %6091 = vst [vmem:[%s10662_s26 + $0xc8] sm:$0xff] %v6025_v50  ;;  %v6026_v14 = vadd.f32 %v5960_v24, %v5836_v4  ;;  %v5838_v21 = vadd.f32 %v5837_v31, %v11139_v18  ;;  %v5969_v50 = vld [vmem:[%s10662_s26 + $0x118] sm:$0xff]  ;;  %v5970_v31 = vld [vmem:[%s10662_s26 + $0x120] sm:$0xff] }
 0x3ae   : > { %v5839_v15 = vpop.f32.mrf.mxu0 }
 0x3af   : > { %v11331_v12 = vpop.f32.mrf.mxu1  ;;  %6092 = vst [vmem:[%s10662_s26 + $0xd0] sm:$0xff] %v6026_v14  ;;  %v6027_v52 = vadd.f32 %v5961_v48, %v5838_v21  ;;  %v5840_v57 = vadd.f32 %v5839_v15, %v11142_v28  ;;  %v5971_v48 = vld [vmem:[%s10662_s26 + $0x128] sm:$0xff] }
 0x3b0   : > { %v5841_v32 = vpop.f32.mrf.mxu0 }
 0x3b1   : > { %v11336_v43 = vpop.f32.mrf.mxu1  ;;  %6093 = vst [vmem:[%s10662_s26 + $0xd8] sm:$0xff] %v6027_v52  ;;  %v6028_v0 = vadd.f32 %v5962_v35, %v5840_v57  ;;  %v5842_v18 = vadd.f32 %v5841_v32, %v11151_v42  ;;  %v5972_v57 = vld [vmem:[%s10662_s26 + $0x130] sm:$0xff] }
 0x3b2   : > { %v5845_v29 = vpop.f32.mrf.mxu0 }
 0x3b3   : > { %v11341_v59 = vpop.f32.mrf.mxu1  ;;  %6094 = vst [vmem:[%s10662_s26 + $0xe0] sm:$0xff] %v6028_v0  ;;  %v6029_v6 = vadd.f32 %v5963_v1, %v5842_v18  ;;  %v5846_v28 = vadd.f32 %v5845_v29, %v11153_v47  ;;  %v5973_v0 = vld [vmem:[%s10662_s26 + $0x138] sm:$0xff]  ;;  %v5974_v29 = vld [vmem:[%s10662_s26 + $0x140] sm:$0xff] }
 0x3b4   : > { %v5847_v8 = vpop.f32.mrf.mxu0 }
 0x3b5   : > { %v11346_v17 = vpop.f32.mrf.mxu1  ;;  %6095 = vst [vmem:[%s10662_s26 + $0xe8] sm:$0xff] %v6029_v6  ;;  %v6030_v16 = vadd.f32 %v5964_v38, %v5846_v28  ;;  %v5848_v42 = vadd.f32 %v5847_v8, %v11159_v13  ;;  %v5967_v13 = vld [vmem:[%s10662_s26 + $0x108] sm:$0xff] }
 0x3b6   : > { %v5849_v11 = vpop.f32.mrf.mxu0  ;;  %v5975_v38 = vld [vmem:[%s10662_s26 + $0x148] sm:$0xff] }
 0x3b7   : > { %v6873_v63 = vpop.f32.mrf.mxu1  ;;  %6096 = vst [vmem:[%s10662_s26 + $0xf0] sm:$0xff] %v6030_v16  ;;  %v6031_v3 = vadd.f32 %v5965_v46, %v5848_v42  ;;  %v5850_v47 = vadd.f32 %v5849_v11, %v11163_v33  ;;  %v5976_v42 = vld [vmem:[%s10662_s26 + $0x150] sm:$0xff] }
 0x3b8   : > { %v5851_v53 = vpop.f32.mrf.mxu0  ;;  %v5977_v63 = vld [vmem:[%s10662_s26 + $0x158] sm:$0xff] }
 0x3b9   : > { %v6874_v56 = vpop.f32.mrf.mxu1  ;;  %6097 = vst [vmem:[%s10662_s26 + $0xf8] sm:$0xff] %v6031_v3  ;;  %v6032_v30 = vadd.f32 %v5966_v49, %v5850_v47  ;;  %v5852_v39 = vadd.f32 %v5851_v53, %v11166_v36  ;;  %v5978_v49 = vld [vmem:[%s10662_s26 + $0x160] sm:$0xff] }
 0x3ba   : > { %v5855_v58 = vpop.f32.mrf.mxu0 }
 0x3bb   : > { %6098 = vst [vmem:[%s10662_s26 + $0x100] sm:$0xff] %v6032_v30  ;;  %v6033_v45 = vadd.f32 %v5967_v13, %v5852_v39  ;;  %v5856_v51 = vadd.f32 %v5855_v58, %v11168_v61  ;;  %v5979_v30 = vld [vmem:[%s10662_s26 + $0x168] sm:$0xff]  ;;  %v5980_v58 = vld [vmem:[%s10662_s26 + $0x170] sm:$0xff] }
 0x3bc   : > { %v5857_v33 = vpop.f32.mrf.mxu0 }
 0x3bd   : > { %6099 = vst [vmem:[%s10662_s26 + $0x108] sm:$0xff] %v6033_v45  ;;  %v6034_v44 = vadd.f32 %v5968_v41, %v5856_v51  ;;  %v5858_v9 = vadd.f32 %v5857_v33, %v11170_v23  ;;  %v11669_v51 = vld [vmem:[#allocation26_spill] sm:$0xff]  ;;  %v5981_v33 = vld [vmem:[%s10662_s26 + $0x178] sm:$0xff] }
 0x3be   : > { %v5859_v4 = vpop.f32.mrf.mxu0 }
 0x3bf   : > { %6100 = vst [vmem:[%s10662_s26 + $0x110] sm:$0xff] %v6034_v44  ;;  %v6035_v36 = vadd.f32 %v5969_v50, %v5858_v9  ;;  %v5860_v24 = vadd.f32 %v5859_v4, %v11173_v20  ;;  %v11670_v9 = vld [vmem:[#allocation27_spill] sm:$0xff]  ;;  %v5982_v4 = vld [vmem:[%s10662_s26 + $0x180] sm:$0xff] }
 0x3c0   : > { %v5861_v14 = vpop.f32.mrf.mxu0 }
 0x3c1   : > { %6101 = vst [vmem:[%s10662_s26 + $0x118] sm:$0xff] %v6035_v36  ;;  %v6036_v61 = vadd.f32 %v5970_v31, %v5860_v24  ;;  %v5862_v21 = vadd.f32 %v5861_v14, %v11175_v5  ;;  %v11671_v24 = vld [vmem:[#allocation28_spill] sm:$0xff]  ;;  %v5983_v14 = vld [vmem:[%s10662_s26 + $0x188] sm:$0xff] }
 0x3c2   : > { %v5865_v15 = vpop.f32.mrf.mxu0 }
 0x3c3   : > { %6102 = vst [vmem:[%s10662_s26 + $0x120] sm:$0xff] %v6036_v61  ;;  %v6037_v23 = vadd.f32 %v5971_v48, %v5862_v21  ;;  %v5866_v52 = vadd.f32 %v5865_v15, %v11177_v19  ;;  %v11672_v48 = vld [vmem:[#allocation29_spill] sm:$0xff] }
 0x3c4   : > { %v5867_v35 = vpop.f32.mrf.mxu0 }
 0x3c5   : > { %6103 = vst [vmem:[%s10662_s26 + $0x128] sm:$0xff] %v6037_v23  ;;  %v6038_v20 = vadd.f32 %v5972_v57, %v5866_v52  ;;  %v5868_v32 = vadd.f32 %v5867_v35, %v11179_v27  ;;  %v5984_v23 = vld [vmem:[%s10662_s26 + $0x190] sm:$0xff]  ;;  %v11673_v35 = vld [vmem:[#allocation30_spill] sm:$0xff] }
 0x3c6   : > { %v5869_v18 = vpop.f32.mrf.mxu0 }
 0x3c7   : > { %6104 = vst [vmem:[%s10662_s26 + $0x130] sm:$0xff] %v6038_v20  ;;  %v6039_v5 = vadd.f32 %v5973_v0, %v5868_v32  ;;  %v5870_v1 = vadd.f32 %v5869_v18, %v11181_v25  ;;  %v5985_v32 = vld [vmem:[%s10662_s26 + $0x198] sm:$0xff] }
 0x3c8   : > { %v5871_v6 = vpop.f32.mrf.mxu0 }
 0x3c9   : > { %6105 = vst [vmem:[%s10662_s26 + $0x138] sm:$0xff] %v6039_v5  ;;  %v6040_v19 = vadd.f32 %v5974_v29, %v5870_v1  ;;  %v5872_v28 = vadd.f32 %v5871_v6, %v11183_v26  ;;  %v11674_v5 = vld [vmem:[#allocation31_spill] sm:$0xff]  ;;  %v5986_v29 = vld [vmem:[%s10662_s26 + $0x1a0] sm:$0xff] }
 0x3ca   : > { %v5875_v8 = vpop.f32.mrf.mxu0 }
 0x3cb   : > { %6106 = vst [vmem:[%s10662_s26 + $0x140] sm:$0xff] %v6040_v19  ;;  %v6041_v27 = vadd.f32 %v5975_v38, %v5872_v28  ;;  %v5876_v16 = vadd.f32 %v5875_v8, %v11185_v7  ;;  %v11675_v28 = vld [vmem:[#allocation32_spill] sm:$0xff]  ;;  %v5987_v8 = vld [vmem:[%s10662_s26 + $0x1a8] sm:$0xff] }
 0x3cc   : > { %v5877_v46 = vpop.f32.mrf.mxu0 }
 0x3cd   : > { %6107 = vst [vmem:[%s10662_s26 + $0x148] sm:$0xff] %v6041_v27  ;;  %v6042_v25 = vadd.f32 %v5976_v42, %v5876_v16  ;;  %v5878_v11 = vadd.f32 %v5877_v46, %v11187_v34  ;;  %v11676_v42 = vld [vmem:[#allocation33_spill] sm:$0xff] }
 0x3ce   : > { %v5879_v3 = vpop.f32.mrf.mxu0 }
 0x3cf   : > { %6108 = vst [vmem:[%s10662_s26 + $0x150] sm:$0xff] %v6042_v25  ;;  %v6043_v26 = vadd.f32 %v5977_v63, %v5878_v11  ;;  %v5880_v47 = vadd.f32 %v5879_v3, %v11189_v10  ;;  %v5988_v25 = vld [vmem:[%s10662_s26 + $0x1b0] sm:$0xff]  ;;  %v11677_v3 = vld [vmem:[#allocation34_spill] sm:$0xff] }
 0x3d0   : > { %v5881_v53 = vpop.f32.mrf.mxu0 }
 0x3d1   : > { %6109 = vst [vmem:[%s10662_s26 + $0x158] sm:$0xff] %v6043_v26  ;;  %v6044_v7 = vadd.f32 %v5978_v49, %v5880_v47  ;;  %v5882_v56 = vadd.f32 %v5881_v53, %v11191_v54  ;;  %v5989_v47 = vld [vmem:[%s10662_s26 + $0x1b8] sm:$0xff] }
 0x3d2   : > { %v5885_v39 = vpop.f32.mrf.mxu0 }
 0x3d3   : > { %6110 = vst [vmem:[%s10662_s26 + $0x160] sm:$0xff] %v6044_v7  ;;  %v6045_v34 = vadd.f32 %v5979_v30, %v5882_v56  ;;  %v5886_v13 = vadd.f32 %v5885_v39, %v11193_v22  ;;  %v11678_v7 = vld [vmem:[#allocation35_spill] sm:$0xff]  ;;  %v5990_v30 = vld [vmem:[%s10662_s26 + $0x1c0] sm:$0xff] }
 0x3d4   : > { %v5887_v45 = vpop.f32.mrf.mxu0 }
 0x3d5   : > { %6111 = vst [vmem:[%s10662_s26 + $0x168] sm:$0xff] %v6045_v34  ;;  %v6046_v10 = vadd.f32 %v5980_v58, %v5886_v13  ;;  %v5888_v41 = vadd.f32 %v5887_v45, %v11669_v51  ;;  %v6860_v34 = vadd.f32 %v11321_v62, %v11233_v60  ;;  %v11679_v58 = vld [vmem:[#allocation36_spill] sm:$0xff]  ;;  %v6864_v60 = vadd.f32 %v11331_v12, %v11237_v37  ;;  %v5993_v37 = vld [vmem:[%s10662_s26 + $0x1d8] sm:$0xff] }
 0x3d6   : > { %v5889_v44 = vpop.f32.mrf.mxu0  ;;  %v6132_v62 = vld [vmem:[%s10662_s26 + $0x210] sm:$0xff] }
 0x3d7   : > { %6112 = vst [vmem:[%s10662_s26 + $0x170] sm:$0xff] %v6046_v10  ;;  %v6047_v54 = vadd.f32 %v5981_v33, %v5888_v41  ;;  %v5890_v50 = vadd.f32 %v5889_v44, %v11670_v9  ;;  %v5991_v10 = vld [vmem:[%s10662_s26 + $0x1c8] sm:$0xff]  ;;  %v6862_v33 = vadd.f32 %v11326_v40, %v11235_v2  ;;  %v11680_v9 = vld [vmem:[#allocation37_spill] sm:$0xff] }
 0x3d8   : > { %v5891_v36 = vpop.f32.mrf.mxu0 }
 0x3d9   : > { %6113 = vst [vmem:[%s10662_s26 + $0x178] sm:$0xff] %v6047_v54  ;;  %v6048_v22 = vadd.f32 %v5982_v4, %v5890_v50  ;;  %v5892_v31 = vadd.f32 %v5891_v36, %v11671_v24  ;;  %v5992_v4 = vld [vmem:[%s10662_s26 + $0x1d0] sm:$0xff] }
 0x3da   : > { %v5895_v61 = vpop.f32.mrf.mxu0 }
 0x3db   : > { %6114 = vst [vmem:[%s10662_s26 + $0x180] sm:$0xff] %v6048_v22  ;;  %v6049_v21 = vadd.f32 %v5983_v14, %v5892_v31  ;;  %v5896_v15 = vadd.f32 %v5895_v61, %v11672_v48  ;;  %v11681_v31 = vld [vmem:[#allocation6_spill] sm:$0xff]  ;;  %v6866_v61 = vadd.f32 %v11336_v43, %v11239_v55 }
 0x3dc   : > { %v5897_v52 = vpop.f32.mrf.mxu0  ;;  %v6134_v55 = vld [vmem:[%s10662_s26 + $0x220] sm:$0xff] }
 0x3dd   : > { %6115 = vst [vmem:[%s10662_s26 + $0x188] sm:$0xff] %v6049_v21  ;;  %v6050_v57 = vadd.f32 %v5984_v23, %v5896_v15  ;;  %v5898_v20 = vadd.f32 %v5897_v52, %v11673_v35  ;;  %v6133_v21 = vld [vmem:[%s10662_s26 + $0x218] sm:$0xff]  ;;  %v5994_v43 = vld [vmem:[%s10662_s26 + $0x1e0] sm:$0xff] }
 0x3de   : > { %v5899_v0 = vpop.f32.mrf.mxu0 }
 0x3df   : > { %6116 = vst [vmem:[%s10662_s26 + $0x190] sm:$0xff] %v6050_v57  ;;  %v6051_v18 = vadd.f32 %v5985_v32, %v5898_v20  ;;  %v5900_v1 = vadd.f32 %v5899_v0, %v11674_v5  ;;  %v11682_v57 = vld [vmem:[#allocation7_spill] sm:$0xff]  ;;  %v11683_v20 = vld [vmem:[#allocation13_spill] sm:$0xff] }
 0x3e0   : > { %v5901_v6 = vpop.f32.mrf.mxu0  ;;  %v6870_v32 = vadd.f32 %v11341_v59, %v11683_v20  ;;  %v6135_v59 = vld [vmem:[%s10662_s26 + $0x228] sm:$0xff] }
 0x3e1   : > { %6117 = vst [vmem:[%s10662_s26 + $0x198] sm:$0xff] %v6051_v18  ;;  %v6052_v19 = vadd.f32 %v5986_v29, %v5900_v1  ;;  %v5902_v38 = vadd.f32 %v5901_v6, %v11675_v28  ;;  %v11684_v6 = vld [vmem:[#allocation8_spill] sm:$0xff]  ;;  %v11685_v28 = vld [vmem:[#allocation14_spill] sm:$0xff] }
 0x3e2   : > { %v5905_v27 = vpop.f32.mrf.mxu0 }
 0x3e3   : > { %6118 = vst [vmem:[%s10662_s26 + $0x1a0] sm:$0xff] %v6052_v19  ;;  %v6053_v16 = vadd.f32 %v5987_v8, %v5902_v38  ;;  %v5906_v46 = vadd.f32 %v5905_v27, %v11676_v42  ;;  %v6872_v38 = vadd.f32 %v11346_v17, %v11685_v28  ;;  %v5995_v8 = vld [vmem:[%s10662_s26 + $0x1e8] sm:$0xff] }
 0x3e4   : > { %v5907_v11 = vpop.f32.mrf.mxu0 }
 0x3e5   : > { %6119 = vst [vmem:[%s10662_s26 + $0x1a8] sm:$0xff] %v6053_v16  ;;  %v6054_v63 = vadd.f32 %v5988_v25, %v5906_v46  ;;  %v5908_v26 = vadd.f32 %v5907_v11, %v11677_v3  ;;  %v11686_v11 = vld [vmem:[#allocation9_spill] sm:$0xff]  ;;  %v6136_v3 = vld [vmem:[%s10662_s26 + $0x230] sm:$0xff] }
 0x3e6   : > { %v5909_v49 = vpop.f32.mrf.mxu0 }
 0x3e7   : > { %6120 = vst [vmem:[%s10662_s26 + $0x1b0] sm:$0xff] %v6054_v63  ;;  %v6055_v53 = vadd.f32 %v5989_v47, %v5908_v26  ;;  %v5910_v56 = vadd.f32 %v5909_v49, %v11678_v7  ;;  %v5996_v26 = vld [vmem:[%s10662_s26 + $0x1f0] sm:$0xff] }
 0x3e8   : > { %v5911_v39 = vpop.f32.mrf.mxu0 }
 0x3e9   : > { %6121 = vst [vmem:[%s10662_s26 + $0x1b8] sm:$0xff] %v6055_v53  ;;  %v6056_v13 = vadd.f32 %v5990_v30, %v5910_v56  ;;  %v5912_v45 = vadd.f32 %v5911_v39, %v11679_v58  ;;  %v11687_v56 = vld [vmem:[#allocation10_spill] sm:$0xff]  ;;  %v6137_v39 = vld [vmem:[%s10662_s26 + $0x238] sm:$0xff] }
 0x3ea   : > { %v5915_v41 = vpop.f32.mrf.mxu0 }
 0x3eb   : > { %v6910_v51 = vpop.f32.mrf.mxu1  ;;  %6122 = vst [vmem:[%s10662_s26 + $0x1c0] sm:$0xff] %v6056_v13  ;;  %v6057_v44 = vadd.f32 %v5991_v10, %v5912_v45  ;;  %v5916_v50 = vadd.f32 %v5915_v41, %v11680_v9 }
 0x3ec   : > { %v6911_v54 = vadd.f32 %v6910_v51, %v6860_v34  ;;  %v5917_v22 = vpop.f32.mrf.mxu0  ;;  %v5997_v34 = vld [vmem:[%s10662_s26 + $0x1f8] sm:$0xff]  ;;  %v11688_v51 = vld [vmem:[#allocation11_spill] sm:$0xff] }
 0x3ed   : > { %v6912_v36 = vpop.f32.mrf.mxu1  ;;  %6123 = vst [vmem:[%s10662_s26 + $0x1c8] sm:$0xff] %v6057_v44  ;;  %v6058_v2 = vadd.f32 %v5992_v4, %v5916_v50  ;;  %v5918_v14 = vadd.f32 %v5917_v22, %v11681_v31  ;;  %v11689_v50 = vld [vmem:[#allocation12_spill] sm:$0xff] }
 0x3ee   : > { %v6927_v24 = vadd.f32 %v6911_v54, %v6132_v62  ;;  %v6913_v40 = vadd.f32 %v6912_v36, %v6862_v33  ;;  %v5919_v48 = vpop.f32.mrf.mxu0  ;;  %v5998_v33 = vld [vmem:[%s10662_s26 + $0x200] sm:$0xff]  ;;  %v5999_v62 = vld [vmem:[%s10662_s26 + $0x208] sm:$0xff] }
 0x3ef   : > { %v6914_v12 = vpop.f32.mrf.mxu1  ;;  %6124 = vst [vmem:[%s10662_s26 + $0x1d0] sm:$0xff] %v6058_v2  ;;  %v6059_v23 = vadd.f32 %v5993_v37, %v5918_v14  ;;  %v5920_v35 = vadd.f32 %v5919_v48, %v11682_v57 }
 0x3f0   : > { %6933 = vst [vmem:[%s10662_s26 + $0x210] sm:$0xff] %v6927_v24  ;;  %v6928_v15 = vadd.f32 %v6913_v40, %v6133_v21  ;;  %v6915_v52 = vadd.f32 %v6914_v12, %v6864_v60  ;;  %v5921_v18 = vpop.f32.mrf.mxu0 }
 0x3f1   : > { %v6916_v0 = vpop.f32.mrf.mxu1  ;;  %6125 = vst [vmem:[%s10662_s26 + $0x1d8] sm:$0xff] %v6059_v23  ;;  %v6060_v1 = vadd.f32 %v5994_v43, %v5920_v35  ;;  %v5922_v19 = vadd.f32 %v5921_v18, %v11684_v6 }
 0x3f2   : > { %6934 = vst [vmem:[%s10662_s26 + $0x218] sm:$0xff] %v6928_v15  ;;  %v6929_v5 = vadd.f32 %v6915_v52, %v6134_v55  ;;  %v6917_v29 = vadd.f32 %v6916_v0, %v6866_v61  ;;  %v5925_v16 = vpop.f32.mrf.mxu0 }
 0x3f3   : > { %v6920_v27 = vpop.f32.mrf.mxu1  ;;  %6126 = vst [vmem:[%s10662_s26 + $0x1e0] sm:$0xff] %v6060_v1  ;;  %v6061_v46 = vadd.f32 %v5995_v8, %v5922_v19  ;;  %v5926_v63 = vadd.f32 %v5925_v16, %v11686_v11 }
 0x3f4   : > { %6935 = vst [vmem:[%s10662_s26 + $0x220] sm:$0xff] %v6929_v5  ;;  %v6930_v42 = vadd.f32 %v6917_v29, %v6135_v59  ;;  %v6921_v25 = vadd.f32 %v6920_v27, %v6870_v32  ;;  %v5927_v47 = vpop.f32.mrf.mxu0 }
 0x3f5   : > { %v6922_v17 = vpop.f32.mrf.mxu1  ;;  %6127 = vst [vmem:[%s10662_s26 + $0x1e8] sm:$0xff] %v6061_v46  ;;  %v6062_v53 = vadd.f32 %v5996_v26, %v5926_v63  ;;  %v5928_v30 = vadd.f32 %v5927_v47, %v11687_v56 }
 0x3f6   : > { %6936 = vst [vmem:[%s10662_s26 + $0x228] sm:$0xff] %v6930_v42  ;;  %v6931_v49 = vadd.f32 %v6921_v25, %v6136_v3  ;;  %v6923_v7 = vadd.f32 %v6922_v17, %v6872_v38  ;;  %v5929_v58 = vpop.f32.mrf.mxu0 }
 0x3f7   : > { %v6924_v13 = vpop.f32.mrf.mxu1  ;;  %6128 = vst [vmem:[%s10662_s26 + $0x1f0] sm:$0xff] %v6062_v53  ;;  %v6063_v10 = vadd.f32 %v5997_v34, %v5928_v30  ;;  %v5930_v41 = vadd.f32 %v5929_v58, %v11688_v51 }
 0x3f8   : > { %6937 = vst [vmem:[%s10662_s26 + $0x230] sm:$0xff] %v6931_v49  ;;  %v6932_v45 = vadd.f32 %v6923_v7, %v6137_v39  ;;  %v5931_v54 = vpop.f32.mrf.mxu0 }
 0x3f9   : > { %v6925_v44 = vpop.f32.mrf.mxu1  ;;  %6129 = vst [vmem:[%s10662_s26 + $0x1f8] sm:$0xff] %v6063_v10  ;;  %v6064_v9 = vadd.f32 %v5998_v33, %v5930_v41  ;;  %v5932_v60 = vadd.f32 %v5931_v54, %v11689_v50 }
 0x3fa   : > { %6938 = vst [vmem:[%s10662_s26 + $0x238] sm:$0xff] %v6932_v45 }
 0x3fb   : > { %6130 = vst [vmem:[%s10662_s26 + $0x200] sm:$0xff] %v6064_v9  ;;  %v6065_v4 = vadd.f32 %v5999_v62, %v5932_v60 }
 0x3fd   : > { %6131 = vst [vmem:[%s10662_s26 + $0x208] sm:$0xff] %v6065_v4 }
 0x3fe   : > { %8927 = shalt.err (!%p8924_p8)
}
 0x3ff   : > { %s8928_s14 = scalar_lea.hbm %s11482_s10, 9216  ;;  %s8932_s27 = scalar_lea.hbm %s11541_s4, 18432 }
 0x400   : > { %p8929_p12 = scmp.ne.s32.totalorder %s11482_s10, %s8928_s14  ;;  %p8933_p1 = scmp.lt.s32.totalorder %s11482_s10, %s11541_s4 }
 0x401   : > { %p8934_p2 = scmp.lt.s32.totalorder %s8932_s27, %s8928_s14 }
 0x402   : > { %p8930_p13 = pnand %p8929_p12, %p9077_p9 }
 0x403   : > { %p8935_p3 = por %p8934_p2, %p8933_p1 }
 0x404   : > { %p8931_p0 = pneg %p8930_p13 }
 0x406   : > { %p8936_p4 = pnand %p8935_p3, %p8931_p0 }
 0x408   : > { %8939 = shalt.err (!%p8936_p4)
}
 0x409   : > { %s8993_s13 = smov 256   ;;  %s8994_s21 = smov 16  }
 0x40a   : > { %7780 = dma.vmem_to_hbm [thread:$0]  (%p9077_p9), %s11484_s28, 9216, %s11482_s10, %s11490_s11, %s8993_s13, %s8993_s13, %s8994_s21  }
 0x40b PF: > { %s6969_s24 = sand.u32 1, %s8970_s15   ;;  %p7783_p5 = pnand %p7037_p11, %p9081_p10 }
 0x40c   : > { %s6970_s12 = scalar_lea.sflag [#allocation4], %s6969_s24 }
 0x40d   : > { %p7784_p6 = pneg %p7783_p5 }
 0x40f   : > { %8965 = dma.done.wait (%p7784_p6), %s6970_s12, 9216  }
 0x410   : > { %8967 = vsyncadd (%p7784_p6), %s6970_s12, 4294958080  ;;  %p14_p9 = scmp.ge.s32.totalorder %s9055_s23, 4   ;;  %s11690_s15 = smov %s8974_s16 }
 0x411   : > { %s11691_s16 = smov %s8978_s17  ;;  %s11692_s17 = smov %s9072_s6 }
 0x412   : > { %s11693_s18 = smov %s8986_s19  ;;  %s11694_s19 = smov %s9069_s5 }
 0x413   : > { %s11695_s20 = smov %s9055_s23  ;;  %16 = sbr.rel (!%p14_p9) target bundleno = 4 (0x4), region = 102 }
 0x418   :  { %6975 = vsyncpa [#allocation4], 1 }
 0x419   :  { %6977 = vsyncpa [#allocation4 + $0x1], 1 }

</bundles_post_ra>
